<compile_context>
chip_gen: v6e
topology: v6e:2x2x1
jax: 0.10.0
libtpu: 0.0.40
codegen_flags: <defaults>
</compile_context>

<pallas_src>
import functools

import jax
import jax.numpy as jnp
from jax.experimental import pallas as pl
from jax.experimental.pallas import tpu as pltpu

EPS = 1e-5
VMEM_LIMIT = 40 * 1024 * 1024   # scoped-VMEM budget: fits v5e/v6e (128 MiB) and v7x (64 MiB/TC)
NEG_INF = -1e30
MAX_SINGLE_K = 2048             # single K-step (no acc scratch) up to this reduction size


def _round_up(x, m):
    return (x + m - 1) // m * m


# --------------------------------------------------------------------------
# Pallas kernels
# --------------------------------------------------------------------------

def _mm_kernel_single(x_ref, w_ref, b_ref, *rest, relu, affine):
    """Single K-step matmul; epilogue = +bias [ReLU] [*scale+shift]. No scratch."""
    o_ref = rest[-1]
    y = jnp.dot(x_ref[...], w_ref[...], preferred_element_type=jnp.float32)
    y = y + b_ref[...]
    if relu:                       # module order is Conv -> ReLU -> BatchNorm
        y = jnp.maximum(y, 0.0)
    if affine:                     # eval-mode BatchNorm folded to scale/shift
        y = y * rest[0][...] + rest[1][...]
    o_ref[...] = y.astype(o_ref.dtype)


def _mm_kernel_multi(x_ref, w_ref, b_ref, *rest, relu, affine):
    """K-tiled matmul with f32 VMEM accumulator and pl.when init/finalize."""
    o_ref, acc_ref = rest[-2], rest[-1]

    @pl.when(pl.program_id(2) == 0)
    def _():
        acc_ref[...] = jnp.zeros_like(acc_ref)

    acc_ref[...] += jnp.dot(x_ref[...], w_ref[...],
                            preferred_element_type=jnp.float32)

    @pl.when(pl.program_id(2) == pl.num_programs(2) - 1)
    def _():
        y = acc_ref[...] + b_ref[...]
        if relu:
            y = jnp.maximum(y, 0.0)
        if affine:
            y = y * rest[0][...] + rest[1][...]
        o_ref[...] = y.astype(o_ref.dtype)


def fused_matmul(x, w, b, scale=None, shift=None, *, relu=False,
                 out_dtype=jnp.float32, tm=1024, tn=512):
    """y = [BN]([ReLU](x @ w + b)); bf16 MXU operands, f32 accumulation."""
    M, K = x.shape
    Kw, Nc = w.shape
    assert K == Kw
    affine = scale is not None

    # K tiling: never pad beyond 128-alignment; single K step when it fits.
    Kp = _round_up(K, 128)
    if Kp <= MAX_SINGLE_K:
        tk = Kp
    else:
        tk = 128
        for cand in (2048, 1536, 1024, 768, 640, 512, 384, 256):
            if Kp % cand == 0:
                tk = cand
                break
    nk = Kp // tk

    tm = min(tm, _round_up(M, 8))
    tn = min(tn, _round_up(Nc, 128))
    Mp = _round_up(M, tm)
    Np = _round_up(Nc, tn)

    xp = jnp.pad(x, ((0, Mp - M), (0, Kp - K))).astype(jnp.bfloat16)
    wp = jnp.pad(w, ((0, Kp - K), (0, Np - Nc))).astype(jnp.bfloat16)
    bp = jnp.pad(b.astype(jnp.float32), (0, Np - Nc)).reshape(1, Np)

    ins = [xp, wp, bp]
    in_specs = [
        pl.BlockSpec((tm, tk), lambda i, j, k: (i, k)),
        pl.BlockSpec((tk, tn), lambda i, j, k: (k, j)),
        pl.BlockSpec((1, tn), lambda i, j, k: (0, j)),
    ]
    if affine:
        sc = jnp.pad(scale.astype(jnp.float32), (0, Np - Nc)).reshape(1, Np)
        sh = jnp.pad(shift.astype(jnp.float32), (0, Np - Nc)).reshape(1, Np)
        ins += [sc, sh]
        in_specs += [pl.BlockSpec((1, tn), lambda i, j, k: (0, j)),
                     pl.BlockSpec((1, tn), lambda i, j, k: (0, j))]

    if nk == 1:
        kern = functools.partial(_mm_kernel_single, relu=relu, affine=affine)
        scratch = []
    else:
        kern = functools.partial(_mm_kernel_multi, relu=relu, affine=affine)
        scratch = [pltpu.VMEM((tm, tn), jnp.float32)]

    out = pl.pallas_call(
        kern,
        out_shape=jax.ShapeDtypeStruct((Mp, Np), out_dtype),
        grid=(Mp // tm, Np // tn, nk),
        in_specs=in_specs,
        out_specs=pl.BlockSpec((tm, tn), lambda i, j, k: (i, j)),
        scratch_shapes=scratch,
        compiler_params=pltpu.CompilerParams(
            dimension_semantics=("parallel", "parallel", "arbitrary"),
            vmem_limit_bytes=VMEM_LIMIT),
    )(*ins)
    return out[:M, :Nc]


def _bilstm_kernel(xg_ref, whh_ref, o_ref, h_s, c_s, *, Tc, Hdp):
    # Grid = (direction, time-chunk).  Direction axis is "parallel" (second
    # TensorCore on v7x); time-chunk axis is sequential (carried h/c scratch).
    # xg block: (Tc, N, 4*Hdp) bf16 gate pre-activations for this direction,
    # lane-dense (gate g occupies lanes [g*Hdp, (g+1)*Hdp)).  For the backward
    # direction the index_map already picks time blocks in reverse order; the
    # in-chunk row order is reversed with a runtime row index.
    d = pl.program_id(0)
    tb = pl.program_id(1)

    @pl.when(tb == 0)
    def _():
        h_s[...] = jnp.zeros_like(h_s)
        c_s[...] = jnp.zeros_like(c_s)

    w = whh_ref[0]                       # (Hdp, 4*Hdp) bf16, gates fused
    h = h_s[...]
    c = c_s[...]
    for t in range(Tc):                  # short unrolled chunk (Tc <= 8)
        row = (1 - d) * t + d * (Tc - 1 - t)
        g = xg_ref[row].astype(jnp.float32) + jnp.dot(
            h.astype(jnp.bfloat16), w, preferred_element_type=jnp.float32)
        i_g = jax.nn.sigmoid(g[:, 0 * Hdp:1 * Hdp])
        f_g = jax.nn.sigmoid(g[:, 1 * Hdp:2 * Hdp])
        g_g = jnp.tanh(g[:, 2 * Hdp:3 * Hdp])
        o_g = jax.nn.sigmoid(g[:, 3 * Hdp:4 * Hdp])
        c = f_g * c + i_g * g_g
        h = o_g * jnp.tanh(c)
        o_ref[row] = h                   # stored at the original time position
    h_s[...] = h
    c_s[...] = c


def bilstm(xg, w_hh_cat, *, Tc):
    """xg: (Tp, N, 8*Hdp) bf16 gate pre-activations, columns = [fwd|bwd] x
    [i,f,g,o] x Hdp.  w_hh_cat: (2, Hdp, 4*Hdp) bf16.
    Returns (Tp, N, 2*Hdp) f32 hidden states, columns = [fwd Hdp | bwd Hdp],
    already in original time order for both directions."""
    Tp, N, eight_hdp = xg.shape
    Hdp = eight_hdp // 8
    nTb = Tp // Tc

    def x_map(d, tb):
        t = d * (nTb - 1 - tb) + (1 - d) * tb    # reverse block order for bwd
        return (t, 0, d)

    def o_map(d, tb):
        t = d * (nTb - 1 - tb) + (1 - d) * tb
        return (t, 0, d)

    return pl.pallas_call(
        functools.partial(_bilstm_kernel, Tc=Tc, Hdp=Hdp),
        out_shape=jax.ShapeDtypeStruct((Tp, N, 2 * Hdp), jnp.float32),
        grid=(2, nTb),
        in_specs=[
            pl.BlockSpec((Tc, N, 4 * Hdp), x_map),
            pl.BlockSpec((1, Hdp, 4 * Hdp), lambda d, tb: (d, 0, 0)),
        ],
        out_specs=pl.BlockSpec((Tc, N, Hdp), o_map),
        scratch_shapes=[pltpu.VMEM((N, Hdp), jnp.float32),
                        pltpu.VMEM((N, Hdp), jnp.float32)],
        compiler_params=pltpu.CompilerParams(
            dimension_semantics=("parallel", "arbitrary"),
            vmem_limit_bytes=VMEM_LIMIT),
    )(xg, w_hh_cat)


def _emb_logsoftmax_kernel(x_ref, w_ref, b_ref, o_ref):
    y = jnp.dot(x_ref[...], w_ref[...], preferred_element_type=jnp.float32)
    y = y + b_ref[...]                  # padded classes carry a -1e30 bias
    m = jnp.max(y, axis=-1, keepdims=True)
    s = jnp.sum(jnp.exp(y - m), axis=-1, keepdims=True)
    o_ref[...] = y - m - jnp.log(s)


def embedding_log_softmax(x, w, b):
    M, K = x.shape
    _, Nc = w.shape
    # >= 2 row blocks so both v7x TensorCores get work on this small matmul.
    tm = min(512, max(8, _round_up(pl.cdiv(M, 2), 8)))
    Mp = _round_up(M, tm)
    Kp = _round_up(K, 128)
    Ncp = _round_up(Nc, 128)   # lane-dense output; padded classes are masked
                               # out of the softmax via the -1e30 bias (f32).
    xp = jnp.pad(x, ((0, Mp - M), (0, Kp - K))).astype(jnp.bfloat16)
    wp = jnp.pad(w, ((0, Kp - K), (0, Ncp - Nc))).astype(jnp.bfloat16)
    bp = jnp.pad(b.astype(jnp.float32), (0, Ncp - Nc),
                 constant_values=NEG_INF).reshape(1, Ncp)

    out = pl.pallas_call(
        _emb_logsoftmax_kernel,
        out_shape=jax.ShapeDtypeStruct((Mp, Ncp), jnp.float32),
        grid=(Mp // tm,),
        in_specs=[
            pl.BlockSpec((tm, Kp), lambda i: (i, 0)),
            pl.BlockSpec((Kp, Ncp), lambda i: (0, 0)),
            pl.BlockSpec((1, Ncp), lambda i: (0, 0)),
        ],
        out_specs=pl.BlockSpec((tm, Ncp), lambda i: (i, 0)),
        compiler_params=pltpu.CompilerParams(
            dimension_semantics=("parallel",),
            vmem_limit_bytes=VMEM_LIMIT),
    )(xp, wp, bp)
    return out[:M, :Nc]


# --------------------------------------------------------------------------
# Plain-JAX glue (layout / patch extraction / pooling)
# --------------------------------------------------------------------------

def im2col_3x3(x):
    """x: (N, H, W, C) -> (N, H, W, 9*C) patches for a 3x3 / pad=1 conv."""
    # TODO(synk): direct conv (taps folded into the matmul K grid / manual DMA
    # of shifted windows) would cut conv HBM traffic ~3x; deferred because the
    # overlapping-halo BlockSpecs at these non-aligned small shapes are the
    # main lowering risk.
    N, H, W, C = x.shape
    xp = jnp.pad(x, ((0, 0), (1, 1), (1, 1), (0, 0)))
    cols = [xp[:, dh:dh + H, dw:dw + W, :] for dh in range(3) for dw in range(3)]
    return jnp.concatenate(cols, axis=-1)


def maxpool_2x2(x, sh, sw):
    """MaxPool2d kernel (2,2), stride (sh, sw) on NHWC input (small glue op)."""
    N, H, W, C = x.shape
    Ho = (H - 2) // sh + 1
    Wo = (W - 2) // sw + 1
    out = None
    for dh in range(2):
        for dw in range(2):
            v = jax.lax.slice(
                x, (0, dh, dw, 0),
                (N, dh + (Ho - 1) * sh + 1, dw + (Wo - 1) * sw + 1, C),
                (1, sh, sw, 1))
            out = v if out is None else jnp.maximum(out, v)
    return out


# --------------------------------------------------------------------------
# Parameter initialization (deterministic, synthetic).  All LSTM / embedding
# weight re-layouts happen HERE (one time), not in the forward pass.
# --------------------------------------------------------------------------

def init_params(key, in_channels, conv_channels, calc_size, lin_dim, hidden,
                n_classes):
    keys = iter(jax.random.split(key, 64))

    def nrm(shape, scale=0.1):
        return scale * jax.random.normal(next(keys), shape, dtype=jnp.float32)

    def uni(shape):
        return jax.random.uniform(next(keys), shape, jnp.float32, 0.5, 1.5)

    def bn_affine(c):
        gamma, beta, rmean, rvar = uni((c,)), nrm((c,)), nrm((c,)), uni((c,))
        scale = gamma / jnp.sqrt(rvar + EPS)
        shift = beta - rmean * scale
        return scale, shift

    params = {}

    blocks = []
    cin = in_channels
    for cout in conv_channels:
        w = nrm((cout, cin, 3, 3))                     # PyTorch (Cout,Cin,kh,kw)
        b = nrm((cout,))
        scale, shift = bn_affine(cout)
        blocks.append(dict(
            w_mat=jnp.transpose(w, (2, 3, 1, 0)).reshape(9 * cin, cout),
            bias=b, bn_scale=scale, bn_shift=shift))
        cin = cout
    params["conv_blocks"] = blocks

    w_lin = nrm((lin_dim, calc_size))                  # PyTorch Linear (out,in)
    b_lin = nrm((lin_dim,))
    scale, shift = bn_affine(lin_dim)
    params["linear"] = dict(w=jnp.transpose(w_lin), b=b_lin,
                            bn_scale=scale, bn_shift=shift)

    Hd = hidden
    Hdp = _round_up(Hd, 128)                           # lane-dense hidden size

    def lstm_dir(inp):
        w_ih = nrm((4 * Hd, inp))                      # gates stacked [i,f,g,o]
        w_hh = nrm((4 * Hd, Hd))
        b_ih = nrm((4 * Hd,))
        b_hh = nrm((4 * Hd,))
        # input projection: columns laid out gate-major, each gate padded to Hdp
        w_ih_g = jnp.transpose(w_ih).reshape(inp, 4, Hd)
        w_ih_p = jnp.pad(w_ih_g, ((0, 0), (0, 0), (0, Hdp - Hd))).reshape(inp, 4 * Hdp)
        # recurrent projection: all 4 gates fused into one (Hdp, 4*Hdp) matrix
        w_hh_g = jnp.transpose(w_hh).reshape(Hd, 4, Hd)
        w_hh_p = jnp.pad(w_hh_g, ((0, Hdp - Hd), (0, 0), (0, Hdp - Hd))).reshape(Hdp, 4 * Hdp)
        bias = jnp.pad((b_ih + b_hh).reshape(4, Hd),
                       ((0, 0), (0, Hdp - Hd))).reshape(4 * Hdp)
        return w_ih_p, w_hh_p, bias

    wif, whf, bf_ = lstm_dir(lin_dim)
    wib, whb, bb_ = lstm_dir(lin_dim)
    params["rnn"] = dict(
        w_ih_cat=jnp.concatenate([wif, wib], axis=1),            # (D, 8*Hdp)
        b_cat=jnp.concatenate([bf_, bb_], axis=0),               # (8*Hdp,)
        w_hh_cat=jnp.stack([whf, whb], axis=0).astype(jnp.bfloat16))  # (2,Hdp,4*Hdp)

    # Embedding rows reordered/zero-padded to match the bilstm output layout
    # [fwd Hdp | bwd Hdp] (padded hidden lanes are exactly zero in the output).
    w_emb = nrm((n_classes, 2 * Hd))                   # PyTorch Linear (out,in)
    b_emb = nrm((n_classes,))
    w_e = jnp.transpose(w_emb)                         # (2*Hd, n_classes)
    w_e_pad = jnp.concatenate([
        jnp.pad(w_e[:Hd], ((0, Hdp - Hd), (0, 0))),
        jnp.pad(w_e[Hd:], ((0, Hdp - Hd), (0, 0)))], axis=0)     # (2*Hdp, classes)
    params["embedding"] = dict(w=w_e_pad, b=b_emb)
    return params


# --------------------------------------------------------------------------
# CRNN forward
# --------------------------------------------------------------------------

def crnn_forward(x_nchw, params):
    # TODO(synk): Dropout and training-mode BatchNorm (batch statistics) are
    # stochastic/training-only; this implements eval-mode semantics.
    x = jnp.transpose(x_nchw, (0, 2, 3, 1)).astype(jnp.bfloat16)  # NHWC, bf16

    pool_strides = [(2, 2), (2, 2), (2, 1), (2, 1), None]
    for blk, pool in zip(params["conv_blocks"], pool_strides):
        N, H, W, C = x.shape
        cols = im2col_3x3(x).reshape(N * H * W, 9 * C)
        y = fused_matmul(cols, blk["w_mat"], blk["bias"],
                         blk["bn_scale"], blk["bn_shift"],
                         relu=True, out_dtype=jnp.bfloat16)
        x = y.reshape(N, H, W, -1)
        if pool is not None:
            x = maxpool_2x2(x, pool[0], pool[1])

    # permute(0,3,1,2) + reshape(N, W, C*H) of the NCHW tensor, i.e. features
    # ordered (c, h): from NHWC transpose to (N, W, C, H) then flatten.
    N, H, W, C = x.shape
    x = jnp.transpose(x, (0, 2, 3, 1)).reshape(N, W, C * H)

    # Linear + BatchNorm1d (eval) fused in one Pallas matmul; bf16 output since
    # it only feeds the (bf16-operand) LSTM input projection.
    lin = params["linear"]
    y = fused_matmul(x.reshape(N * W, C * H), lin["w"], lin["b"],
                     lin["bn_scale"], lin["bn_shift"],
                     relu=False, out_dtype=jnp.bfloat16)
    D = y.shape[-1]
    T = W
    seq = jnp.transpose(y.reshape(N, W, D), (1, 0, 2))   # (T, N, D) time-major

    # Bidirectional LSTM.  ONE matmul produces both directions' gate
    # pre-activations already in the kernel's lane-dense layout (weights were
    # reordered at init); no transpose/stack/flip passes over the gate tensor.
    rnn = params["rnn"]
    Hdp = rnn["w_ih_cat"].shape[1] // 8                  # static (padded) size
    xg = fused_matmul(seq.reshape(T * N, D), rnn["w_ih_cat"], rnn["b_cat"],
                      relu=False, out_dtype=jnp.bfloat16)   # (T*N, 8*Hdp) bf16
    xg = xg.reshape(T, N, 8 * Hdp)

    Tc = min(8, T)                                       # short chunks: low vreg pressure
    Tp = _round_up(T, Tc)
    if Tp != T:
        # Zero (bias-free) pre-activations for padded steps keep h/c at exactly
        # zero, so the backward direction (which sees them first) is unaffected.
        xg = jnp.pad(xg, ((0, Tp - T), (0, 0), (0, 0)))

    h_all = bilstm(xg, rnn["w_hh_cat"], Tc=Tc)           # (Tp, N, 2*Hdp) f32
    h = h_all[:T].reshape(T * N, 2 * Hdp)                # padded lanes are 0

    # Embedding linear + log_softmax(dim=2); embedding weight rows were padded
    # to the [fwd Hdp | bwd Hdp] layout, so no concat/slice of hidden states.
    emb = params["embedding"]
    out = embedding_log_softmax(h, emb["w"], emb["b"])
    return out.reshape(T, N, -1)


# --------------------------------------------------------------------------

if __name__ == "__main__":
    # Small shapes consistent with the module structure.
    N, Cin, H0, W0 = 2, 1, 32, 32
    conv_channels = (8, 16, 32, 64, 64)     # stand-in for (64,128,256,512,512)
    lin_dim = 32                            # stand-in for 256
    hidden = 32                             # stand-in for 1024
    n_classes = 10

    # Height after the four pools with stride 2 in H: 32 -> 16 -> 8 -> 4 -> 2.
    h_final = H0 // 16
    calc_size = conv_channels[-1] * h_final  # == C * H (self.calculated_size)
    # Width after pools: 32 -> 16 -> 8 -> 7 -> 6 (seq length T).
    t_final = ((W0 // 2) // 2 - 1) - 1

    key = jax.random.PRNGKey(0)
    kx, kp = jax.random.split(key)
    x = jax.random.normal(kx, (N, Cin, H0, W0), dtype=jnp.float32)
    params = init_params(kp, Cin, conv_channels, calc_size, lin_dim, hidden,
                         n_classes)

    out = jax.jit(crnn_forward)(x, params)
    out = jax.block_until_ready(out)
    assert out.shape == (t_final, N, n_classes), out.shape
    assert bool(jnp.all(jnp.isfinite(out)))
    # log_softmax rows must normalize (checks class-padding was masked out).
    probs = jnp.sum(jnp.exp(out), axis=2)
    assert bool(jnp.all(jnp.abs(probs - 1.0) < 1e-2))
    print("KERNEL_OK")
</pallas_src>

<mosaic_0001>
module attributes {stable_mosaic.version = 11 : i64} {
  func.func @_mm_kernel_single(%arg0: i32, %arg1: i32, %arg2: i32, %arg3: memref<1024x128xbf16, #tpu.memory_space<vmem>>, %arg4: memref<128x128xbf16, #tpu.memory_space<vmem>>, %arg5: memref<1x128xf32, #tpu.memory_space<vmem>>, %arg6: memref<1x128xf32, #tpu.memory_space<vmem>>, %arg7: memref<1x128xf32, #tpu.memory_space<vmem>>, %arg8: memref<1024x128xbf16, #tpu.memory_space<vmem>>) attributes {dimension_semantics = [#tpu.dimension_semantics<parallel>, #tpu.dimension_semantics<parallel>, #tpu.dimension_semantics<arbitrary>], iteration_bounds = array<i64: 2, 1, 1>, scalar_prefetch = 0 : i64, scratch_operands = 0 : i64, tpu.core_type = #tpu.core_type<tc>, window_params = [{transform_indices = @transform_0, window_bounds = array<i64: 1024, 128>}, {transform_indices = @transform_1, window_bounds = array<i64: 128, 128>}, {transform_indices = @transform_2, window_bounds = array<i64: 1, 128>}, {transform_indices = @transform_3, window_bounds = array<i64: 1, 128>}, {transform_indices = @transform_4, window_bounds = array<i64: 1, 128>}, {transform_indices = @transform_5, window_bounds = array<i64: 1024, 128>}]} {
    %c0 = arith.constant 0 : index
    %c0_0 = arith.constant 0 : index
    %0 = vector.load %arg3[%c0, %c0_0] : memref<1024x128xbf16, #tpu.memory_space<vmem>>, vector<1024x128xbf16>
    %c0_1 = arith.constant 0 : index
    %c0_2 = arith.constant 0 : index
    %1 = vector.load %arg4[%c0_1, %c0_2] : memref<128x128xbf16, #tpu.memory_space<vmem>>, vector<128x128xbf16>
    %cst = arith.constant dense<0.000000e+00> : vector<1024x128xf32>
    %2 = tpu.matmul %0, %1, %cst {dimension_numbers = #tpu.dot_dimension_numbers<[1], [0], [0], [1], [0, 0, 1, 1], [], []>} : vector<1024x128xbf16>, vector<128x128xbf16>, vector<1024x128xf32> -> vector<1024x128xf32>
    %c0_3 = arith.constant 0 : index
    %c0_4 = arith.constant 0 : index
    %3 = vector.load %arg5[%c0_3, %c0_4] : memref<1x128xf32, #tpu.memory_space<vmem>>, vector<1x128xf32>
    %4 = vector.broadcast %3 : vector<1x128xf32> to vector<1024x128xf32>
    %5 = arith.addf %2, %4 : vector<1024x128xf32>
    %cst_5 = arith.constant 0.000000e+00 : f32
    %6 = vector.broadcast %cst_5 : f32 to vector<1024x128xf32>
    %7 = arith.maximumf %5, %6 : vector<1024x128xf32>
    %c0_6 = arith.constant 0 : index
    %c0_7 = arith.constant 0 : index
    %8 = vector.load %arg6[%c0_6, %c0_7] : memref<1x128xf32, #tpu.memory_space<vmem>>, vector<1x128xf32>
    %9 = vector.broadcast %8 : vector<1x128xf32> to vector<1024x128xf32>
    %10 = arith.mulf %7, %9 : vector<1024x128xf32>
    %c0_8 = arith.constant 0 : index
    %c0_9 = arith.constant 0 : index
    %11 = vector.load %arg7[%c0_8, %c0_9] : memref<1x128xf32, #tpu.memory_space<vmem>>, vector<1x128xf32>
    %12 = vector.broadcast %11 : vector<1x128xf32> to vector<1024x128xf32>
    %13 = arith.addf %10, %12 : vector<1024x128xf32>
    %14 = arith.truncf %13 : vector<1024x128xf32> to vector<1024x128xbf16>
    %c0_10 = arith.constant 0 : index
    %c0_11 = arith.constant 0 : index
    %15 = vector.load %arg8[%c0_10, %c0_11] : memref<1024x128xbf16, #tpu.memory_space<vmem>>, vector<1024x128xbf16>
    tpu.vector_store %arg8[%c0_10, %c0_11], %14 {strides = array<i32>} : memref<1024x128xbf16, #tpu.memory_space<vmem>>, vector<1024x128xbf16>,
    return
  }
  func.func @transform_0(%arg0: i32, %arg1: i32, %arg2: i32) -> (i32, i32) {
    %c0_i32 = arith.constant 0 : i32
    return %arg0, %arg2 : i32, i32
  }
  func.func @transform_1(%arg0: i32, %arg1: i32, %arg2: i32) -> (i32, i32) {
    %c0_i32 = arith.constant 0 : i32
    return %arg2, %arg1 : i32, i32
  }
  func.func @transform_2(%arg0: i32, %arg1: i32, %arg2: i32) -> (i32, i32) {
    %c0_i32 = arith.constant 0 : i32
    %c0_i32_0 = arith.constant 0 : i32
    return %c0_i32, %arg1 : i32, i32
  }
  func.func @transform_3(%arg0: i32, %arg1: i32, %arg2: i32) -> (i32, i32) {
    %c0_i32 = arith.constant 0 : i32
    %c0_i32_0 = arith.constant 0 : i32
    return %c0_i32, %arg1 : i32, i32
  }
  func.func @transform_4(%arg0: i32, %arg1: i32, %arg2: i32) -> (i32, i32) {
    %c0_i32 = arith.constant 0 : i32
    %c0_i32_0 = arith.constant 0 : i32
    return %c0_i32, %arg1 : i32, i32
  }
  func.func @transform_5(%arg0: i32, %arg1: i32, %arg2: i32) -> (i32, i32) {
    %c0_i32 = arith.constant 0 : i32
    return %arg0, %arg1 : i32, i32
  }
}

module attributes {stable_mosaic.version = 11 : i64} {
  func.func @_mm_kernel_single(%arg0: i32, %arg1: i32, %arg2: i32, %arg3: memref<512x128xbf16, #tpu.memory_space<vmem>>, %arg4: memref<128x128xbf16, #tpu.memory_space<vmem>>, %arg5: memref<1x128xf32, #tpu.memory_space<vmem>>, %arg6: memref<1x128xf32, #tpu.memory_space<vmem>>, %arg7: memref<1x128xf32, #tpu.memory_space<vmem>>, %arg8: memref<512x128xbf16, #tpu.memory_space<vmem>>) attributes {dimension_semantics = [#tpu.dimension_semantics<parallel>, #tpu.dimension_semantics<parallel>, #tpu.dimension_semantics<arbitrary>], iteration_bounds = array<i64: 1, 1, 1>, scalar_prefetch = 0 : i64, scratch_operands = 0 : i64, tpu.core_type = #tpu.core_type<tc>, window_params = [{transform_indices = @transform_0, window_bounds = array<i64: 512, 128>}, {transform_indices = @transform_1, window_bounds = array<i64: 128, 128>}, {transform_indices = @transform_2, window_bounds = array<i64: 1, 128>}, {transform_indices = @transform_3, window_bounds = array<i64: 1, 128>}, {transform_indices = @transform_4, window_bounds = array<i64: 1, 128>}, {transform_indices = @transform_5, window_bounds = array<i64: 512, 128>}]} {
    %c0 = arith.constant 0 : index
    %c0_0 = arith.constant 0 : index
    %0 = vector.load %arg3[%c0, %c0_0] : memref<512x128xbf16, #tpu.memory_space<vmem>>, vector<512x128xbf16>
    %c0_1 = arith.constant 0 : index
    %c0_2 = arith.constant 0 : index
    %1 = vector.load %arg4[%c0_1, %c0_2] : memref<128x128xbf16, #tpu.memory_space<vmem>>, vector<128x128xbf16>
    %cst = arith.constant dense<0.000000e+00> : vector<512x128xf32>
    %2 = tpu.matmul %0, %1, %cst {dimension_numbers = #tpu.dot_dimension_numbers<[1], [0], [0], [1], [0, 0, 1, 1], [], []>} : vector<512x128xbf16>, vector<128x128xbf16>, vector<512x128xf32> -> vector<512x128xf32>
    %c0_3 = arith.constant 0 : index
    %c0_4 = arith.constant 0 : index
    %3 = vector.load %arg5[%c0_3, %c0_4] : memref<1x128xf32, #tpu.memory_space<vmem>>, vector<1x128xf32>
    %4 = vector.broadcast %3 : vector<1x128xf32> to vector<512x128xf32>
    %5 = arith.addf %2, %4 : vector<512x128xf32>
    %cst_5 = arith.constant 0.000000e+00 : f32
    %6 = vector.broadcast %cst_5 : f32 to vector<512x128xf32>
    %7 = arith.maximumf %5, %6 : vector<512x128xf32>
    %c0_6 = arith.constant 0 : index
    %c0_7 = arith.constant 0 : index
    %8 = vector.load %arg6[%c0_6, %c0_7] : memref<1x128xf32, #tpu.memory_space<vmem>>, vector<1x128xf32>
    %9 = vector.broadcast %8 : vector<1x128xf32> to vector<512x128xf32>
    %10 = arith.mulf %7, %9 : vector<512x128xf32>
    %c0_8 = arith.constant 0 : index
    %c0_9 = arith.constant 0 : index
    %11 = vector.load %arg7[%c0_8, %c0_9] : memref<1x128xf32, #tpu.memory_space<vmem>>, vector<1x128xf32>
    %12 = vector.broadcast %11 : vector<1x128xf32> to vector<512x128xf32>
    %13 = arith.addf %10, %12 : vector<512x128xf32>
    %14 = arith.truncf %13 : vector<512x128xf32> to vector<512x128xbf16>
    %c0_10 = arith.constant 0 : index
    %c0_11 = arith.constant 0 : index
    %15 = vector.load %arg8[%c0_10, %c0_11] : memref<512x128xbf16, #tpu.memory_space<vmem>>, vector<512x128xbf16>
    tpu.vector_store %arg8[%c0_10, %c0_11], %14 {strides = array<i32>} : memref<512x128xbf16, #tpu.memory_space<vmem>>, vector<512x128xbf16>,
    return
  }
  func.func @transform_0(%arg0: i32, %arg1: i32, %arg2: i32) -> (i32, i32) {
    %c0_i32 = arith.constant 0 : i32
    return %arg0, %arg2 : i32, i32
  }
  func.func @transform_1(%arg0: i32, %arg1: i32, %arg2: i32) -> (i32, i32) {
    %c0_i32 = arith.constant 0 : i32
    return %arg2, %arg1 : i32, i32
  }
  func.func @transform_2(%arg0: i32, %arg1: i32, %arg2: i32) -> (i32, i32) {
    %c0_i32 = arith.constant 0 : i32
    %c0_i32_0 = arith.constant 0 : i32
    return %c0_i32, %arg1 : i32, i32
  }
  func.func @transform_3(%arg0: i32, %arg1: i32, %arg2: i32) -> (i32, i32) {
    %c0_i32 = arith.constant 0 : i32
    %c0_i32_0 = arith.constant 0 : i32
    return %c0_i32, %arg1 : i32, i32
  }
  func.func @transform_4(%arg0: i32, %arg1: i32, %arg2: i32) -> (i32, i32) {
    %c0_i32 = arith.constant 0 : i32
    %c0_i32_0 = arith.constant 0 : i32
    return %c0_i32, %arg1 : i32, i32
  }
  func.func @transform_5(%arg0: i32, %arg1: i32, %arg2: i32) -> (i32, i32) {
    %c0_i32 = arith.constant 0 : i32
    return %arg0, %arg1 : i32, i32
  }
}

module attributes {stable_mosaic.version = 11 : i64} {
  func.func @_mm_kernel_single(%arg0: i32, %arg1: i32, %arg2: i32, %arg3: memref<128x256xbf16, #tpu.memory_space<vmem>>, %arg4: memref<256x128xbf16, #tpu.memory_space<vmem>>, %arg5: memref<1x128xf32, #tpu.memory_space<vmem>>, %arg6: memref<1x128xf32, #tpu.memory_space<vmem>>, %arg7: memref<1x128xf32, #tpu.memory_space<vmem>>, %arg8: memref<128x128xbf16, #tpu.memory_space<vmem>>) attributes {dimension_semantics = [#tpu.dimension_semantics<parallel>, #tpu.dimension_semantics<parallel>, #tpu.dimension_semantics<arbitrary>], iteration_bounds = array<i64: 1, 1, 1>, scalar_prefetch = 0 : i64, scratch_operands = 0 : i64, tpu.core_type = #tpu.core_type<tc>, window_params = [{transform_indices = @transform_0, window_bounds = array<i64: 128, 256>}, {transform_indices = @transform_1, window_bounds = array<i64: 256, 128>}, {transform_indices = @transform_2, window_bounds = array<i64: 1, 128>}, {transform_indices = @transform_3, window_bounds = array<i64: 1, 128>}, {transform_indices = @transform_4, window_bounds = array<i64: 1, 128>}, {transform_indices = @transform_5, window_bounds = array<i64: 128, 128>}]} {
    %c0 = arith.constant 0 : index
    %c0_0 = arith.constant 0 : index
    %0 = vector.load %arg3[%c0, %c0_0] : memref<128x256xbf16, #tpu.memory_space<vmem>>, vector<128x256xbf16>
    %c0_1 = arith.constant 0 : index
    %c0_2 = arith.constant 0 : index
    %1 = vector.load %arg4[%c0_1, %c0_2] : memref<256x128xbf16, #tpu.memory_space<vmem>>, vector<256x128xbf16>
    %cst = arith.constant dense<0.000000e+00> : vector<128x128xf32>
    %2 = tpu.matmul %0, %1, %cst {dimension_numbers = #tpu.dot_dimension_numbers<[1], [0], [0], [1], [0, 0, 1, 1], [], []>} : vector<128x256xbf16>, vector<256x128xbf16>, vector<128x128xf32> -> vector<128x128xf32>
    %c0_3 = arith.constant 0 : index
    %c0_4 = arith.constant 0 : index
    %3 = vector.load %arg5[%c0_3, %c0_4] : memref<1x128xf32, #tpu.memory_space<vmem>>, vector<1x128xf32>
    %4 = vector.broadcast %3 : vector<1x128xf32> to vector<128x128xf32>
    %5 = arith.addf %2, %4 : vector<128x128xf32>
    %cst_5 = arith.constant 0.000000e+00 : f32
    %6 = vector.broadcast %cst_5 : f32 to vector<128x128xf32>
    %7 = arith.maximumf %5, %6 : vector<128x128xf32>
    %c0_6 = arith.constant 0 : index
    %c0_7 = arith.constant 0 : index
    %8 = vector.load %arg6[%c0_6, %c0_7] : memref<1x128xf32, #tpu.memory_space<vmem>>, vector<1x128xf32>
    %9 = vector.broadcast %8 : vector<1x128xf32> to vector<128x128xf32>
    %10 = arith.mulf %7, %9 : vector<128x128xf32>
    %c0_8 = arith.constant 0 : index
    %c0_9 = arith.constant 0 : index
    %11 = vector.load %arg7[%c0_8, %c0_9] : memref<1x128xf32, #tpu.memory_space<vmem>>, vector<1x128xf32>
    %12 = vector.broadcast %11 : vector<1x128xf32> to vector<128x128xf32>
    %13 = arith.addf %10, %12 : vector<128x128xf32>
    %14 = arith.truncf %13 : vector<128x128xf32> to vector<128x128xbf16>
    %c0_10 = arith.constant 0 : index
    %c0_11 = arith.constant 0 : index
    %15 = vector.load %arg8[%c0_10, %c0_11] : memref<128x128xbf16, #tpu.memory_space<vmem>>, vector<128x128xbf16>
    tpu.vector_store %arg8[%c0_10, %c0_11], %14 {strides = array<i32>} : memref<128x128xbf16, #tpu.memory_space<vmem>>, vector<128x128xbf16>,
    return
  }
  func.func @transform_0(%arg0: i32, %arg1: i32, %arg2: i32) -> (i32, i32) {
    %c0_i32 = arith.constant 0 : i32
    return %arg0, %arg2 : i32, i32
  }
  func.func @transform_1(%arg0: i32, %arg1: i32, %arg2: i32) -> (i32, i32) {
    %c0_i32 = arith.constant 0 : i32
    return %arg2, %arg1 : i32, i32
  }
  func.func @transform_2(%arg0: i32, %arg1: i32, %arg2: i32) -> (i32, i32) {
    %c0_i32 = arith.constant 0 : i32
    %c0_i32_0 = arith.constant 0 : i32
    return %c0_i32, %arg1 : i32, i32
  }
  func.func @transform_3(%arg0: i32, %arg1: i32, %arg2: i32) -> (i32, i32) {
    %c0_i32 = arith.constant 0 : i32
    %c0_i32_0 = arith.constant 0 : i32
    return %c0_i32, %arg1 : i32, i32
  }
  func.func @transform_4(%arg0: i32, %arg1: i32, %arg2: i32) -> (i32, i32) {
    %c0_i32 = arith.constant 0 : i32
    %c0_i32_0 = arith.constant 0 : i32
    return %c0_i32, %arg1 : i32, i32
  }
  func.func @transform_5(%arg0: i32, %arg1: i32, %arg2: i32) -> (i32, i32) {
    %c0_i32 = arith.constant 0 : i32
    return %arg0, %arg1 : i32, i32
  }
}

module attributes {stable_mosaic.version = 11 : i64} {
  func.func @_mm_kernel_single(%arg0: i32, %arg1: i32, %arg2: i32, %arg3: memref<56x384xbf16, #tpu.memory_space<vmem>>, %arg4: memref<384x128xbf16, #tpu.memory_space<vmem>>, %arg5: memref<1x128xf32, #tpu.memory_space<vmem>>, %arg6: memref<1x128xf32, #tpu.memory_space<vmem>>, %arg7: memref<1x128xf32, #tpu.memory_space<vmem>>, %arg8: memref<56x128xbf16, #tpu.memory_space<vmem>>) attributes {dimension_semantics = [#tpu.dimension_semantics<parallel>, #tpu.dimension_semantics<parallel>, #tpu.dimension_semantics<arbitrary>], iteration_bounds = array<i64: 1, 1, 1>, scalar_prefetch = 0 : i64, scratch_operands = 0 : i64, tpu.core_type = #tpu.core_type<tc>, window_params = [{transform_indices = @transform_0, window_bounds = array<i64: 56, 384>}, {transform_indices = @transform_1, window_bounds = array<i64: 384, 128>}, {transform_indices = @transform_2, window_bounds = array<i64: 1, 128>}, {transform_indices = @transform_3, window_bounds = array<i64: 1, 128>}, {transform_indices = @transform_4, window_bounds = array<i64: 1, 128>}, {transform_indices = @transform_5, window_bounds = array<i64: 56, 128>}]} {
    %c0 = arith.constant 0 : index
    %c0_0 = arith.constant 0 : index
    %0 = vector.load %arg3[%c0, %c0_0] : memref<56x384xbf16, #tpu.memory_space<vmem>>, vector<56x384xbf16>
    %c0_1 = arith.constant 0 : index
    %c0_2 = arith.constant 0 : index
    %1 = vector.load %arg4[%c0_1, %c0_2] : memref<384x128xbf16, #tpu.memory_space<vmem>>, vector<384x128xbf16>
    %cst = arith.constant dense<0.000000e+00> : vector<56x128xf32>
    %2 = tpu.matmul %0, %1, %cst {dimension_numbers = #tpu.dot_dimension_numbers<[1], [0], [0], [1], [0, 0, 1, 1], [], []>} : vector<56x384xbf16>, vector<384x128xbf16>, vector<56x128xf32> -> vector<56x128xf32>
    %c0_3 = arith.constant 0 : index
    %c0_4 = arith.constant 0 : index
    %3 = vector.load %arg5[%c0_3, %c0_4] : memref<1x128xf32, #tpu.memory_space<vmem>>, vector<1x128xf32>
    %4 = vector.broadcast %3 : vector<1x128xf32> to vector<56x128xf32>
    %5 = arith.addf %2, %4 : vector<56x128xf32>
    %cst_5 = arith.constant 0.000000e+00 : f32
    %6 = vector.broadcast %cst_5 : f32 to vector<56x128xf32>
    %7 = arith.maximumf %5, %6 : vector<56x128xf32>
    %c0_6 = arith.constant 0 : index
    %c0_7 = arith.constant 0 : index
    %8 = vector.load %arg6[%c0_6, %c0_7] : memref<1x128xf32, #tpu.memory_space<vmem>>, vector<1x128xf32>
    %9 = vector.broadcast %8 : vector<1x128xf32> to vector<56x128xf32>
    %10 = arith.mulf %7, %9 : vector<56x128xf32>
    %c0_8 = arith.constant 0 : index
    %c0_9 = arith.constant 0 : index
    %11 = vector.load %arg7[%c0_8, %c0_9] : memref<1x128xf32, #tpu.memory_space<vmem>>, vector<1x128xf32>
    %12 = vector.broadcast %11 : vector<1x128xf32> to vector<56x128xf32>
    %13 = arith.addf %10, %12 : vector<56x128xf32>
    %14 = arith.truncf %13 : vector<56x128xf32> to vector<56x128xbf16>
    %c0_10 = arith.constant 0 : index
    %c0_11 = arith.constant 0 : index
    %15 = vector.load %arg8[%c0_10, %c0_11] : memref<56x128xbf16, #tpu.memory_space<vmem>>, vector<56x128xbf16>
    tpu.vector_store %arg8[%c0_10, %c0_11], %14 {strides = array<i32>} : memref<56x128xbf16, #tpu.memory_space<vmem>>, vector<56x128xbf16>,
    return
  }
  func.func @transform_0(%arg0: i32, %arg1: i32, %arg2: i32) -> (i32, i32) {
    %c0_i32 = arith.constant 0 : i32
    return %arg0, %arg2 : i32, i32
  }
  func.func @transform_1(%arg0: i32, %arg1: i32, %arg2: i32) -> (i32, i32) {
    %c0_i32 = arith.constant 0 : i32
    return %arg2, %arg1 : i32, i32
  }
  func.func @transform_2(%arg0: i32, %arg1: i32, %arg2: i32) -> (i32, i32) {
    %c0_i32 = arith.constant 0 : i32
    %c0_i32_0 = arith.constant 0 : i32
    return %c0_i32, %arg1 : i32, i32
  }
  func.func @transform_3(%arg0: i32, %arg1: i32, %arg2: i32) -> (i32, i32) {
    %c0_i32 = arith.constant 0 : i32
    %c0_i32_0 = arith.constant 0 : i32
    return %c0_i32, %arg1 : i32, i32
  }
  func.func @transform_4(%arg0: i32, %arg1: i32, %arg2: i32) -> (i32, i32) {
    %c0_i32 = arith.constant 0 : i32
    %c0_i32_0 = arith.constant 0 : i32
    return %c0_i32, %arg1 : i32, i32
  }
  func.func @transform_5(%arg0: i32, %arg1: i32, %arg2: i32) -> (i32, i32) {
    %c0_i32 = arith.constant 0 : i32
    return %arg0, %arg1 : i32, i32
  }
}

module attributes {stable_mosaic.version = 11 : i64} {
  func.func @_mm_kernel_single(%arg0: i32, %arg1: i32, %arg2: i32, %arg3: memref<24x640xbf16, #tpu.memory_space<vmem>>, %arg4: memref<640x128xbf16, #tpu.memory_space<vmem>>, %arg5: memref<1x128xf32, #tpu.memory_space<vmem>>, %arg6: memref<1x128xf32, #tpu.memory_space<vmem>>, %arg7: memref<1x128xf32, #tpu.memory_space<vmem>>, %arg8: memref<24x128xbf16, #tpu.memory_space<vmem>>) attributes {dimension_semantics = [#tpu.dimension_semantics<parallel>, #tpu.dimension_semantics<parallel>, #tpu.dimension_semantics<arbitrary>], iteration_bounds = array<i64: 1, 1, 1>, scalar_prefetch = 0 : i64, scratch_operands = 0 : i64, tpu.core_type = #tpu.core_type<tc>, window_params = [{transform_indices = @transform_0, window_bounds = array<i64: 24, 640>}, {transform_indices = @transform_1, window_bounds = array<i64: 640, 128>}, {transform_indices = @transform_2, window_bounds = array<i64: 1, 128>}, {transform_indices = @transform_3, window_bounds = array<i64: 1, 128>}, {transform_indices = @transform_4, window_bounds = array<i64: 1, 128>}, {transform_indices = @transform_5, window_bounds = array<i64: 24, 128>}]} {
    %c0 = arith.constant 0 : index
    %c0_0 = arith.constant 0 : index
    %0 = vector.load %arg3[%c0, %c0_0] : memref<24x640xbf16, #tpu.memory_space<vmem>>, vector<24x640xbf16>
    %c0_1 = arith.constant 0 : index
    %c0_2 = arith.constant 0 : index
    %1 = vector.load %arg4[%c0_1, %c0_2] : memref<640x128xbf16, #tpu.memory_space<vmem>>, vector<640x128xbf16>
    %cst = arith.constant dense<0.000000e+00> : vector<24x128xf32>
    %2 = tpu.matmul %0, %1, %cst {dimension_numbers = #tpu.dot_dimension_numbers<[1], [0], [0], [1], [0, 0, 1, 1], [], []>} : vector<24x640xbf16>, vector<640x128xbf16>, vector<24x128xf32> -> vector<24x128xf32>
    %c0_3 = arith.constant 0 : index
    %c0_4 = arith.constant 0 : index
    %3 = vector.load %arg5[%c0_3, %c0_4] : memref<1x128xf32, #tpu.memory_space<vmem>>, vector<1x128xf32>
    %4 = vector.broadcast %3 : vector<1x128xf32> to vector<24x128xf32>
    %5 = arith.addf %2, %4 : vector<24x128xf32>
    %cst_5 = arith.constant 0.000000e+00 : f32
    %6 = vector.broadcast %cst_5 : f32 to vector<24x128xf32>
    %7 = arith.maximumf %5, %6 : vector<24x128xf32>
    %c0_6 = arith.constant 0 : index
    %c0_7 = arith.constant 0 : index
    %8 = vector.load %arg6[%c0_6, %c0_7] : memref<1x128xf32, #tpu.memory_space<vmem>>, vector<1x128xf32>
    %9 = vector.broadcast %8 : vector<1x128xf32> to vector<24x128xf32>
    %10 = arith.mulf %7, %9 : vector<24x128xf32>
    %c0_8 = arith.constant 0 : index
    %c0_9 = arith.constant 0 : index
    %11 = vector.load %arg7[%c0_8, %c0_9] : memref<1x128xf32, #tpu.memory_space<vmem>>, vector<1x128xf32>
    %12 = vector.broadcast %11 : vector<1x128xf32> to vector<24x128xf32>
    %13 = arith.addf %10, %12 : vector<24x128xf32>
    %14 = arith.truncf %13 : vector<24x128xf32> to vector<24x128xbf16>
    %c0_10 = arith.constant 0 : index
    %c0_11 = arith.constant 0 : index
    %15 = vector.load %arg8[%c0_10, %c0_11] : memref<24x128xbf16, #tpu.memory_space<vmem>>, vector<24x128xbf16>
    tpu.vector_store %arg8[%c0_10, %c0_11], %14 {strides = array<i32>} : memref<24x128xbf16, #tpu.memory_space<vmem>>, vector<24x128xbf16>,
    return
  }
  func.func @transform_0(%arg0: i32, %arg1: i32, %arg2: i32) -> (i32, i32) {
    %c0_i32 = arith.constant 0 : i32
    return %arg0, %arg2 : i32, i32
  }
  func.func @transform_1(%arg0: i32, %arg1: i32, %arg2: i32) -> (i32, i32) {
    %c0_i32 = arith.constant 0 : i32
    return %arg2, %arg1 : i32, i32
  }
  func.func @transform_2(%arg0: i32, %arg1: i32, %arg2: i32) -> (i32, i32) {
    %c0_i32 = arith.constant 0 : i32
    %c0_i32_0 = arith.constant 0 : i32
    return %c0_i32, %arg1 : i32, i32
  }
  func.func @transform_3(%arg0: i32, %arg1: i32, %arg2: i32) -> (i32, i32) {
    %c0_i32 = arith.constant 0 : i32
    %c0_i32_0 = arith.constant 0 : i32
    return %c0_i32, %arg1 : i32, i32
  }
  func.func @transform_4(%arg0: i32, %arg1: i32, %arg2: i32) -> (i32, i32) {
    %c0_i32 = arith.constant 0 : i32
    %c0_i32_0 = arith.constant 0 : i32
    return %c0_i32, %arg1 : i32, i32
  }
  func.func @transform_5(%arg0: i32, %arg1: i32, %arg2: i32) -> (i32, i32) {
    %c0_i32 = arith.constant 0 : i32
    return %arg0, %arg1 : i32, i32
  }
}

module attributes {stable_mosaic.version = 11 : i64} {
  func.func @_mm_kernel_single(%arg0: i32, %arg1: i32, %arg2: i32, %arg3: memref<16x128xbf16, #tpu.memory_space<vmem>>, %arg4: memref<128x128xbf16, #tpu.memory_space<vmem>>, %arg5: memref<1x128xf32, #tpu.memory_space<vmem>>, %arg6: memref<1x128xf32, #tpu.memory_space<vmem>>, %arg7: memref<1x128xf32, #tpu.memory_space<vmem>>, %arg8: memref<16x128xbf16, #tpu.memory_space<vmem>>) attributes {dimension_semantics = [#tpu.dimension_semantics<parallel>, #tpu.dimension_semantics<parallel>, #tpu.dimension_semantics<arbitrary>], iteration_bounds = array<i64: 1, 1, 1>, scalar_prefetch = 0 : i64, scratch_operands = 0 : i64, tpu.core_type = #tpu.core_type<tc>, window_params = [{transform_indices = @transform_0, window_bounds = array<i64: 16, 128>}, {transform_indices = @transform_1, window_bounds = array<i64: 128, 128>}, {transform_indices = @transform_2, window_bounds = array<i64: 1, 128>}, {transform_indices = @transform_3, window_bounds = array<i64: 1, 128>}, {transform_indices = @transform_4, window_bounds = array<i64: 1, 128>}, {transform_indices = @transform_5, window_bounds = array<i64: 16, 128>}]} {
    %c0 = arith.constant 0 : index
    %c0_0 = arith.constant 0 : index
    %0 = vector.load %arg3[%c0, %c0_0] : memref<16x128xbf16, #tpu.memory_space<vmem>>, vector<16x128xbf16>
    %c0_1 = arith.constant 0 : index
    %c0_2 = arith.constant 0 : index
    %1 = vector.load %arg4[%c0_1, %c0_2] : memref<128x128xbf16, #tpu.memory_space<vmem>>, vector<128x128xbf16>
    %cst = arith.constant dense<0.000000e+00> : vector<16x128xf32>
    %2 = tpu.matmul %0, %1, %cst {dimension_numbers = #tpu.dot_dimension_numbers<[1], [0], [0], [1], [0, 0, 1, 1], [], []>} : vector<16x128xbf16>, vector<128x128xbf16>, vector<16x128xf32> -> vector<16x128xf32>
    %c0_3 = arith.constant 0 : index
    %c0_4 = arith.constant 0 : index
    %3 = vector.load %arg5[%c0_3, %c0_4] : memref<1x128xf32, #tpu.memory_space<vmem>>, vector<1x128xf32>
    %4 = vector.broadcast %3 : vector<1x128xf32> to vector<16x128xf32>
    %5 = arith.addf %2, %4 : vector<16x128xf32>
    %c0_5 = arith.constant 0 : index
    %c0_6 = arith.constant 0 : index
    %6 = vector.load %arg6[%c0_5, %c0_6] : memref<1x128xf32, #tpu.memory_space<vmem>>, vector<1x128xf32>
    %7 = vector.broadcast %6 : vector<1x128xf32> to vector<16x128xf32>
    %8 = arith.mulf %5, %7 : vector<16x128xf32>
    %c0_7 = arith.constant 0 : index
    %c0_8 = arith.constant 0 : index
    %9 = vector.load %arg7[%c0_7, %c0_8] : memref<1x128xf32, #tpu.memory_space<vmem>>, vector<1x128xf32>
    %10 = vector.broadcast %9 : vector<1x128xf32> to vector<16x128xf32>
    %11 = arith.addf %8, %10 : vector<16x128xf32>
    %12 = arith.truncf %11 : vector<16x128xf32> to vector<16x128xbf16>
    %c0_9 = arith.constant 0 : index
    %c0_10 = arith.constant 0 : index
    %13 = vector.load %arg8[%c0_9, %c0_10] : memref<16x128xbf16, #tpu.memory_space<vmem>>, vector<16x128xbf16>
    tpu.vector_store %arg8[%c0_9, %c0_10], %12 {strides = array<i32>} : memref<16x128xbf16, #tpu.memory_space<vmem>>, vector<16x128xbf16>,
    return
  }
  func.func @transform_0(%arg0: i32, %arg1: i32, %arg2: i32) -> (i32, i32) {
    %c0_i32 = arith.constant 0 : i32
    return %arg0, %arg2 : i32, i32
  }
  func.func @transform_1(%arg0: i32, %arg1: i32, %arg2: i32) -> (i32, i32) {
    %c0_i32 = arith.constant 0 : i32
    return %arg2, %arg1 : i32, i32
  }
  func.func @transform_2(%arg0: i32, %arg1: i32, %arg2: i32) -> (i32, i32) {
    %c0_i32 = arith.constant 0 : i32
    %c0_i32_0 = arith.constant 0 : i32
    return %c0_i32, %arg1 : i32, i32
  }
  func.func @transform_3(%arg0: i32, %arg1: i32, %arg2: i32) -> (i32, i32) {
    %c0_i32 = arith.constant 0 : i32
    %c0_i32_0 = arith.constant 0 : i32
    return %c0_i32, %arg1 : i32, i32
  }
  func.func @transform_4(%arg0: i32, %arg1: i32, %arg2: i32) -> (i32, i32) {
    %c0_i32 = arith.constant 0 : i32
    %c0_i32_0 = arith.constant 0 : i32
    return %c0_i32, %arg1 : i32, i32
  }
  func.func @transform_5(%arg0: i32, %arg1: i32, %arg2: i32) -> (i32, i32) {
    %c0_i32 = arith.constant 0 : i32
    return %arg0, %arg1 : i32, i32
  }
}

module attributes {stable_mosaic.version = 11 : i64} {
  func.func @_mm_kernel_single(%arg0: i32, %arg1: i32, %arg2: i32, %arg3: memref<16x128xbf16, #tpu.memory_space<vmem>>, %arg4: memref<128x512xbf16, #tpu.memory_space<vmem>>, %arg5: memref<1x512xf32, #tpu.memory_space<vmem>>, %arg6: memref<16x512xbf16, #tpu.memory_space<vmem>>) attributes {dimension_semantics = [#tpu.dimension_semantics<parallel>, #tpu.dimension_semantics<parallel>, #tpu.dimension_semantics<arbitrary>], iteration_bounds = array<i64: 1, 2, 1>, scalar_prefetch = 0 : i64, scratch_operands = 0 : i64, tpu.core_type = #tpu.core_type<tc>, window_params = [{transform_indices = @transform_0, window_bounds = array<i64: 16, 128>}, {transform_indices = @transform_1, window_bounds = array<i64: 128, 512>}, {transform_indices = @transform_2, window_bounds = array<i64: 1, 512>}, {transform_indices = @transform_3, window_bounds = array<i64: 16, 512>}]} {
    %c0 = arith.constant 0 : index
    %c0_0 = arith.constant 0 : index
    %0 = vector.load %arg3[%c0, %c0_0] : memref<16x128xbf16, #tpu.memory_space<vmem>>, vector<16x128xbf16>
    %c0_1 = arith.constant 0 : index
    %c0_2 = arith.constant 0 : index
    %1 = vector.load %arg4[%c0_1, %c0_2] : memref<128x512xbf16, #tpu.memory_space<vmem>>, vector<128x512xbf16>
    %cst = arith.constant dense<0.000000e+00> : vector<16x512xf32>
    %2 = tpu.matmul %0, %1, %cst {dimension_numbers = #tpu.dot_dimension_numbers<[1], [0], [0], [1], [0, 0, 1, 1], [], []>} : vector<16x128xbf16>, vector<128x512xbf16>, vector<16x512xf32> -> vector<16x512xf32>
    %c0_3 = arith.constant 0 : index
    %c0_4 = arith.constant 0 : index
    %3 = vector.load %arg5[%c0_3, %c0_4] : memref<1x512xf32, #tpu.memory_space<vmem>>, vector<1x512xf32>
    %4 = vector.broadcast %3 : vector<1x512xf32> to vector<16x512xf32>
    %5 = arith.addf %2, %4 : vector<16x512xf32>
    %6 = arith.truncf %5 : vector<16x512xf32> to vector<16x512xbf16>
    %c0_5 = arith.constant 0 : index
    %c0_6 = arith.constant 0 : index
    %7 = vector.load %arg6[%c0_5, %c0_6] : memref<16x512xbf16, #tpu.memory_space<vmem>>, vector<16x512xbf16>
    tpu.vector_store %arg6[%c0_5, %c0_6], %6 {strides = array<i32>} : memref<16x512xbf16, #tpu.memory_space<vmem>>, vector<16x512xbf16>,
    return
  }
  func.func @transform_0(%arg0: i32, %arg1: i32, %arg2: i32) -> (i32, i32) {
    %c0_i32 = arith.constant 0 : i32
    return %arg0, %arg2 : i32, i32
  }
  func.func @transform_1(%arg0: i32, %arg1: i32, %arg2: i32) -> (i32, i32) {
    %c0_i32 = arith.constant 0 : i32
    return %arg2, %arg1 : i32, i32
  }
  func.func @transform_2(%arg0: i32, %arg1: i32, %arg2: i32) -> (i32, i32) {
    %c0_i32 = arith.constant 0 : i32
    %c0_i32_0 = arith.constant 0 : i32
    return %c0_i32, %arg1 : i32, i32
  }
  func.func @transform_3(%arg0: i32, %arg1: i32, %arg2: i32) -> (i32, i32) {
    %c0_i32 = arith.constant 0 : i32
    return %arg0, %arg1 : i32, i32
  }
}

module attributes {stable_mosaic.version = 11 : i64} {
  func.func @_bilstm_kernel(%arg0: i32, %arg1: i32, %arg2: memref<6x2x512xbf16, #tpu.memory_space<vmem>>, %arg3: memref<1x128x512xbf16, #tpu.memory_space<vmem>>, %arg4: memref<6x2x128xf32, #tpu.memory_space<vmem>>, %arg5: memref<2x128xf32, #tpu.memory_space<vmem>>, %arg6: memref<2x128xf32, #tpu.memory_space<vmem>>) attributes {dimension_semantics = [#tpu.dimension_semantics<parallel>, #tpu.dimension_semantics<arbitrary>], iteration_bounds = array<i64: 2, 1>, scalar_prefetch = 0 : i64, scratch_operands = 2 : i64, tpu.core_type = #tpu.core_type<tc>, window_params = [{transform_indices = @transform_0, window_bounds = array<i64: 6, 2, 512>}, {transform_indices = @transform_1, window_bounds = array<i64: 1, 128, 512>}, {transform_indices = @transform_2, window_bounds = array<i64: 6, 2, 128>}]} {
    %c0_i32 = arith.constant 0 : i32
    %0 = arith.cmpi eq, %arg1, %c0_i32 : i32
    %1 = arith.extui %0 : i1 to i32
    %c0_i32_0 = arith.constant 0 : i32
    %2 = arith.cmpi ne, %1, %c0_i32_0 : i32
    scf.if %2 {
      %cst_71 = arith.constant 0.000000e+00 : f32
      %249 = vector.broadcast %cst_71 : f32 to vector<2x128xf32>
      %c0_72 = arith.constant 0 : index
      %c0_73 = arith.constant 0 : index
      %250 = vector.load %arg5[%c0_72, %c0_73] : memref<2x128xf32, #tpu.memory_space<vmem>>, vector<2x128xf32>
      tpu.vector_store %arg5[%c0_72, %c0_73], %249 {strides = array<i32>} : memref<2x128xf32, #tpu.memory_space<vmem>>, vector<2x128xf32>,
      %cst_74 = arith.constant 0.000000e+00 : f32
      %251 = vector.broadcast %cst_74 : f32 to vector<2x128xf32>
      %c0_75 = arith.constant 0 : index
      %c0_76 = arith.constant 0 : index
      %252 = vector.load %arg6[%c0_75, %c0_76] : memref<2x128xf32, #tpu.memory_space<vmem>>, vector<2x128xf32>
      tpu.vector_store %arg6[%c0_75, %c0_76], %251 {strides = array<i32>} : memref<2x128xf32, #tpu.memory_space<vmem>>, vector<2x128xf32>,
    } else {
    }
    %c0 = arith.constant 0 : index
    %c0_1 = arith.constant 0 : index
    %c0_2 = arith.constant 0 : index
    %3 = vector.load %arg3[%c0, %c0_1, %c0_2] : memref<1x128x512xbf16, #tpu.memory_space<vmem>>, vector<1x128x512xbf16>
    %4 = vector.shape_cast %3 : vector<1x128x512xbf16> to vector<128x512xbf16>
    %c0_3 = arith.constant 0 : index
    %c0_4 = arith.constant 0 : index
    %5 = vector.load %arg5[%c0_3, %c0_4] : memref<2x128xf32, #tpu.memory_space<vmem>>, vector<2x128xf32>
    %c0_5 = arith.constant 0 : index
    %c0_6 = arith.constant 0 : index
    %6 = vector.load %arg6[%c0_5, %c0_6] : memref<2x128xf32, #tpu.memory_space<vmem>>, vector<2x128xf32>
    %c1_i32 = arith.constant 1 : i32
    %7 = arith.subi %c1_i32, %arg0 : i32
    %c0_i32_7 = arith.constant 0 : i32
    %8 = arith.muli %7, %c0_i32_7 : i32
    %c5_i32 = arith.constant 5 : i32
    %9 = arith.muli %arg0, %c5_i32 : i32
    %10 = arith.addi %8, %9 : i32
    %11 = arith.index_cast %10 : i32 to index
    %c0_8 = arith.constant 0 : index
    %c0_9 = arith.constant 0 : index
    %12 = vector.load %arg2[%11, %c0_8, %c0_9] : memref<6x2x512xbf16, #tpu.memory_space<vmem>>, vector<1x2x512xbf16>
    %13 = vector.shape_cast %12 : vector<1x2x512xbf16> to vector<2x512xbf16>
    %14 = arith.extf %13 : vector<2x512xbf16> to vector<2x512xf32>
    %15 = arith.truncf %5 : vector<2x128xf32> to vector<2x128xbf16>
    %cst = arith.constant dense<0.000000e+00> : vector<2x512xf32>
    %16 = tpu.matmul %15, %4, %cst {dimension_numbers = #tpu.dot_dimension_numbers<[1], [0], [0], [1], [0, 0, 1, 1], [], []>} : vector<2x128xbf16>, vector<128x512xbf16>, vector<2x512xf32> -> vector<2x512xf32>
    %17 = arith.addf %14, %16 : vector<2x512xf32>
    %18 = vector.extract_strided_slice %17 {offsets = [0, 0], sizes = [2, 128], strides = [1, 1]} : vector<2x512xf32> to vector<2x128xf32>
    %19 = arith.negf %18 : vector<2x128xf32>
    %20 = math.exp %19 : vector<2x128xf32>
    %cst_10 = arith.constant 1.000000e+00 : f32
    %21 = vector.broadcast %cst_10 : f32 to vector<2x128xf32>
    %22 = arith.addf %21, %20 : vector<2x128xf32>
    %23 = arith.divf %21, %22 : vector<2x128xf32>
    %24 = vector.extract_strided_slice %17 {offsets = [0, 128], sizes = [2, 128], strides = [1, 1]} : vector<2x512xf32> to vector<2x128xf32>
    %25 = arith.negf %24 : vector<2x128xf32>
    %26 = math.exp %25 : vector<2x128xf32>
    %cst_11 = arith.constant 1.000000e+00 : f32
    %27 = vector.broadcast %cst_11 : f32 to vector<2x128xf32>
    %28 = arith.addf %27, %26 : vector<2x128xf32>
    %29 = arith.divf %27, %28 : vector<2x128xf32>
    %30 = vector.extract_strided_slice %17 {offsets = [0, 256], sizes = [2, 128], strides = [1, 1]} : vector<2x512xf32> to vector<2x128xf32>
    %31 = math.tanh %30 : vector<2x128xf32>
    %32 = vector.extract_strided_slice %17 {offsets = [0, 384], sizes = [2, 128], strides = [1, 1]} : vector<2x512xf32> to vector<2x128xf32>
    %33 = arith.negf %32 : vector<2x128xf32>
    %34 = math.exp %33 : vector<2x128xf32>
    %cst_12 = arith.constant 1.000000e+00 : f32
    %35 = vector.broadcast %cst_12 : f32 to vector<2x128xf32>
    %36 = arith.addf %35, %34 : vector<2x128xf32>
    %37 = arith.divf %35, %36 : vector<2x128xf32>
    %38 = arith.mulf %29, %6 : vector<2x128xf32>
    %39 = arith.mulf %23, %31 : vector<2x128xf32>
    %40 = arith.addf %38, %39 : vector<2x128xf32>
    %41 = math.tanh %40 : vector<2x128xf32>
    %42 = arith.mulf %37, %41 : vector<2x128xf32>
    %43 = arith.index_cast %10 : i32 to index
    %c0_13 = arith.constant 0 : index
    %c0_14 = arith.constant 0 : index
    %44 = vector.load %arg4[%43, %c0_13, %c0_14] : memref<6x2x128xf32, #tpu.memory_space<vmem>>, vector<1x2x128xf32>
    %45 = vector.shape_cast %44 : vector<1x2x128xf32> to vector<2x128xf32>
    %46 = vector.shape_cast %42 : vector<2x128xf32> to vector<1x2x128xf32>
    tpu.vector_store %arg4[%43, %c0_13, %c0_14], %46 {strides = array<i32>} : memref<6x2x128xf32, #tpu.memory_space<vmem>>, vector<1x2x128xf32>,
    %c1_i32_15 = arith.constant 1 : i32
    %47 = arith.subi %c1_i32_15, %arg0 : i32
    %c1_i32_16 = arith.constant 1 : i32
    %48 = arith.muli %47, %c1_i32_16 : i32
    %c4_i32 = arith.constant 4 : i32
    %49 = arith.muli %arg0, %c4_i32 : i32
    %50 = arith.addi %48, %49 : i32
    %51 = arith.index_cast %50 : i32 to index
    %c0_17 = arith.constant 0 : index
    %c0_18 = arith.constant 0 : index
    %52 = vector.load %arg2[%51, %c0_17, %c0_18] : memref<6x2x512xbf16, #tpu.memory_space<vmem>>, vector<1x2x512xbf16>
    %53 = vector.shape_cast %52 : vector<1x2x512xbf16> to vector<2x512xbf16>
    %54 = arith.extf %53 : vector<2x512xbf16> to vector<2x512xf32>
    %55 = arith.truncf %42 : vector<2x128xf32> to vector<2x128xbf16>
    %cst_19 = arith.constant dense<0.000000e+00> : vector<2x512xf32>
    %56 = tpu.matmul %55, %4, %cst_19 {dimension_numbers = #tpu.dot_dimension_numbers<[1], [0], [0], [1], [0, 0, 1, 1], [], []>} : vector<2x128xbf16>, vector<128x512xbf16>, vector<2x512xf32> -> vector<2x512xf32>
    %57 = arith.addf %54, %56 : vector<2x512xf32>
    %58 = vector.extract_strided_slice %57 {offsets = [0, 0], sizes = [2, 128], strides = [1, 1]} : vector<2x512xf32> to vector<2x128xf32>
    %59 = arith.negf %58 : vector<2x128xf32>
    %60 = math.exp %59 : vector<2x128xf32>
    %cst_20 = arith.constant 1.000000e+00 : f32
    %61 = vector.broadcast %cst_20 : f32 to vector<2x128xf32>
    %62 = arith.addf %61, %60 : vector<2x128xf32>
    %63 = arith.divf %61, %62 : vector<2x128xf32>
    %64 = vector.extract_strided_slice %57 {offsets = [0, 128], sizes = [2, 128], strides = [1, 1]} : vector<2x512xf32> to vector<2x128xf32>
    %65 = arith.negf %64 : vector<2x128xf32>
    %66 = math.exp %65 : vector<2x128xf32>
    %cst_21 = arith.constant 1.000000e+00 : f32
    %67 = vector.broadcast %cst_21 : f32 to vector<2x128xf32>
    %68 = arith.addf %67, %66 : vector<2x128xf32>
    %69 = arith.divf %67, %68 : vector<2x128xf32>
    %70 = vector.extract_strided_slice %57 {offsets = [0, 256], sizes = [2, 128], strides = [1, 1]} : vector<2x512xf32> to vector<2x128xf32>
    %71 = math.tanh %70 : vector<2x128xf32>
    %72 = vector.extract_strided_slice %57 {offsets = [0, 384], sizes = [2, 128], strides = [1, 1]} : vector<2x512xf32> to vector<2x128xf32>
    %73 = arith.negf %72 : vector<2x128xf32>
    %74 = math.exp %73 : vector<2x128xf32>
    %cst_22 = arith.constant 1.000000e+00 : f32
    %75 = vector.broadcast %cst_22 : f32 to vector<2x128xf32>
    %76 = arith.addf %75, %74 : vector<2x128xf32>
    %77 = arith.divf %75, %76 : vector<2x128xf32>
    %78 = arith.mulf %69, %40 : vector<2x128xf32>
    %79 = arith.mulf %63, %71 : vector<2x128xf32>
    %80 = arith.addf %78, %79 : vector<2x128xf32>
    %81 = math.tanh %80 : vector<2x128xf32>
    %82 = arith.mulf %77, %81 : vector<2x128xf32>
    %83 = arith.index_cast %50 : i32 to index
    %c0_23 = arith.constant 0 : index
    %c0_24 = arith.constant 0 : index
    %84 = vector.load %arg4[%83, %c0_23, %c0_24] : memref<6x2x128xf32, #tpu.memory_space<vmem>>, vector<1x2x128xf32>
    %85 = vector.shape_cast %84 : vector<1x2x128xf32> to vector<2x128xf32>
    %86 = vector.shape_cast %82 : vector<2x128xf32> to vector<1x2x128xf32>
    tpu.vector_store %arg4[%83, %c0_23, %c0_24], %86 {strides = array<i32>} : memref<6x2x128xf32, #tpu.memory_space<vmem>>, vector<1x2x128xf32>,
    %c1_i32_25 = arith.constant 1 : i32
    %87 = arith.subi %c1_i32_25, %arg0 : i32
    %c2_i32 = arith.constant 2 : i32
    %88 = arith.muli %87, %c2_i32 : i32
    %c3_i32 = arith.constant 3 : i32
    %89 = arith.muli %arg0, %c3_i32 : i32
    %90 = arith.addi %88, %89 : i32
    %91 = arith.index_cast %90 : i32 to index
    %c0_26 = arith.constant 0 : index
    %c0_27 = arith.constant 0 : index
    %92 = vector.load %arg2[%91, %c0_26, %c0_27] : memref<6x2x512xbf16, #tpu.memory_space<vmem>>, vector<1x2x512xbf16>
    %93 = vector.shape_cast %92 : vector<1x2x512xbf16> to vector<2x512xbf16>
    %94 = arith.extf %93 : vector<2x512xbf16> to vector<2x512xf32>
    %95 = arith.truncf %82 : vector<2x128xf32> to vector<2x128xbf16>
    %cst_28 = arith.constant dense<0.000000e+00> : vector<2x512xf32>
    %96 = tpu.matmul %95, %4, %cst_28 {dimension_numbers = #tpu.dot_dimension_numbers<[1], [0], [0], [1], [0, 0, 1, 1], [], []>} : vector<2x128xbf16>, vector<128x512xbf16>, vector<2x512xf32> -> vector<2x512xf32>
    %97 = arith.addf %94, %96 : vector<2x512xf32>
    %98 = vector.extract_strided_slice %97 {offsets = [0, 0], sizes = [2, 128], strides = [1, 1]} : vector<2x512xf32> to vector<2x128xf32>
    %99 = arith.negf %98 : vector<2x128xf32>
    %100 = math.exp %99 : vector<2x128xf32>
    %cst_29 = arith.constant 1.000000e+00 : f32
    %101 = vector.broadcast %cst_29 : f32 to vector<2x128xf32>
    %102 = arith.addf %101, %100 : vector<2x128xf32>
    %103 = arith.divf %101, %102 : vector<2x128xf32>
    %104 = vector.extract_strided_slice %97 {offsets = [0, 128], sizes = [2, 128], strides = [1, 1]} : vector<2x512xf32> to vector<2x128xf32>
    %105 = arith.negf %104 : vector<2x128xf32>
    %106 = math.exp %105 : vector<2x128xf32>
    %cst_30 = arith.constant 1.000000e+00 : f32
    %107 = vector.broadcast %cst_30 : f32 to vector<2x128xf32>
    %108 = arith.addf %107, %106 : vector<2x128xf32>
    %109 = arith.divf %107, %108 : vector<2x128xf32>
    %110 = vector.extract_strided_slice %97 {offsets = [0, 256], sizes = [2, 128], strides = [1, 1]} : vector<2x512xf32> to vector<2x128xf32>
    %111 = math.tanh %110 : vector<2x128xf32>
    %112 = vector.extract_strided_slice %97 {offsets = [0, 384], sizes = [2, 128], strides = [1, 1]} : vector<2x512xf32> to vector<2x128xf32>
    %113 = arith.negf %112 : vector<2x128xf32>
    %114 = math.exp %113 : vector<2x128xf32>
    %cst_31 = arith.constant 1.000000e+00 : f32
    %115 = vector.broadcast %cst_31 : f32 to vector<2x128xf32>
    %116 = arith.addf %115, %114 : vector<2x128xf32>
    %117 = arith.divf %115, %116 : vector<2x128xf32>
    %118 = arith.mulf %109, %80 : vector<2x128xf32>
    %119 = arith.mulf %103, %111 : vector<2x128xf32>
    %120 = arith.addf %118, %119 : vector<2x128xf32>
    %121 = math.tanh %120 : vector<2x128xf32>
    %122 = arith.mulf %117, %121 : vector<2x128xf32>
    %123 = arith.index_cast %90 : i32 to index
    %c0_32 = arith.constant 0 : index
    %c0_33 = arith.constant 0 : index
    %124 = vector.load %arg4[%123, %c0_32, %c0_33] : memref<6x2x128xf32, #tpu.memory_space<vmem>>, vector<1x2x128xf32>
    %125 = vector.shape_cast %124 : vector<1x2x128xf32> to vector<2x128xf32>
    %126 = vector.shape_cast %122 : vector<2x128xf32> to vector<1x2x128xf32>
    tpu.vector_store %arg4[%123, %c0_32, %c0_33], %126 {strides = array<i32>} : memref<6x2x128xf32, #tpu.memory_space<vmem>>, vector<1x2x128xf32>,
    %c1_i32_34 = arith.constant 1 : i32
    %127 = arith.subi %c1_i32_34, %arg0 : i32
    %c3_i32_35 = arith.constant 3 : i32
    %128 = arith.muli %127, %c3_i32_35 : i32
    %c2_i32_36 = arith.constant 2 : i32
    %129 = arith.muli %arg0, %c2_i32_36 : i32
    %130 = arith.addi %128, %129 : i32
    %131 = arith.index_cast %130 : i32 to index
    %c0_37 = arith.constant 0 : index
    %c0_38 = arith.constant 0 : index
    %132 = vector.load %arg2[%131, %c0_37, %c0_38] : memref<6x2x512xbf16, #tpu.memory_space<vmem>>, vector<1x2x512xbf16>
    %133 = vector.shape_cast %132 : vector<1x2x512xbf16> to vector<2x512xbf16>
    %134 = arith.extf %133 : vector<2x512xbf16> to vector<2x512xf32>
    %135 = arith.truncf %122 : vector<2x128xf32> to vector<2x128xbf16>
    %cst_39 = arith.constant dense<0.000000e+00> : vector<2x512xf32>
    %136 = tpu.matmul %135, %4, %cst_39 {dimension_numbers = #tpu.dot_dimension_numbers<[1], [0], [0], [1], [0, 0, 1, 1], [], []>} : vector<2x128xbf16>, vector<128x512xbf16>, vector<2x512xf32> -> vector<2x512xf32>
    %137 = arith.addf %134, %136 : vector<2x512xf32>
    %138 = vector.extract_strided_slice %137 {offsets = [0, 0], sizes = [2, 128], strides = [1, 1]} : vector<2x512xf32> to vector<2x128xf32>
    %139 = arith.negf %138 : vector<2x128xf32>
    %140 = math.exp %139 : vector<2x128xf32>
    %cst_40 = arith.constant 1.000000e+00 : f32
    %141 = vector.broadcast %cst_40 : f32 to vector<2x128xf32>
    %142 = arith.addf %141, %140 : vector<2x128xf32>
    %143 = arith.divf %141, %142 : vector<2x128xf32>
    %144 = vector.extract_strided_slice %137 {offsets = [0, 128], sizes = [2, 128], strides = [1, 1]} : vector<2x512xf32> to vector<2x128xf32>
    %145 = arith.negf %144 : vector<2x128xf32>
    %146 = math.exp %145 : vector<2x128xf32>
    %cst_41 = arith.constant 1.000000e+00 : f32
    %147 = vector.broadcast %cst_41 : f32 to vector<2x128xf32>
    %148 = arith.addf %147, %146 : vector<2x128xf32>
    %149 = arith.divf %147, %148 : vector<2x128xf32>
    %150 = vector.extract_strided_slice %137 {offsets = [0, 256], sizes = [2, 128], strides = [1, 1]} : vector<2x512xf32> to vector<2x128xf32>
    %151 = math.tanh %150 : vector<2x128xf32>
    %152 = vector.extract_strided_slice %137 {offsets = [0, 384], sizes = [2, 128], strides = [1, 1]} : vector<2x512xf32> to vector<2x128xf32>
    %153 = arith.negf %152 : vector<2x128xf32>
    %154 = math.exp %153 : vector<2x128xf32>
    %cst_42 = arith.constant 1.000000e+00 : f32
    %155 = vector.broadcast %cst_42 : f32 to vector<2x128xf32>
    %156 = arith.addf %155, %154 : vector<2x128xf32>
    %157 = arith.divf %155, %156 : vector<2x128xf32>
    %158 = arith.mulf %149, %120 : vector<2x128xf32>
    %159 = arith.mulf %143, %151 : vector<2x128xf32>
    %160 = arith.addf %158, %159 : vector<2x128xf32>
    %161 = math.tanh %160 : vector<2x128xf32>
    %162 = arith.mulf %157, %161 : vector<2x128xf32>
    %163 = arith.index_cast %130 : i32 to index
    %c0_43 = arith.constant 0 : index
    %c0_44 = arith.constant 0 : index
    %164 = vector.load %arg4[%163, %c0_43, %c0_44] : memref<6x2x128xf32, #tpu.memory_space<vmem>>, vector<1x2x128xf32>
    %165 = vector.shape_cast %164 : vector<1x2x128xf32> to vector<2x128xf32>
    %166 = vector.shape_cast %162 : vector<2x128xf32> to vector<1x2x128xf32>
    tpu.vector_store %arg4[%163, %c0_43, %c0_44], %166 {strides = array<i32>} : memref<6x2x128xf32, #tpu.memory_space<vmem>>, vector<1x2x128xf32>,
    %c1_i32_45 = arith.constant 1 : i32
    %167 = arith.subi %c1_i32_45, %arg0 : i32
    %c4_i32_46 = arith.constant 4 : i32
    %168 = arith.muli %167, %c4_i32_46 : i32
    %c1_i32_47 = arith.constant 1 : i32
    %169 = arith.muli %arg0, %c1_i32_47 : i32
    %170 = arith.addi %168, %169 : i32
    %171 = arith.index_cast %170 : i32 to index
    %c0_48 = arith.constant 0 : index
    %c0_49 = arith.constant 0 : index
    %172 = vector.load %arg2[%171, %c0_48, %c0_49] : memref<6x2x512xbf16, #tpu.memory_space<vmem>>, vector<1x2x512xbf16>
    %173 = vector.shape_cast %172 : vector<1x2x512xbf16> to vector<2x512xbf16>
    %174 = arith.extf %173 : vector<2x512xbf16> to vector<2x512xf32>
    %175 = arith.truncf %162 : vector<2x128xf32> to vector<2x128xbf16>
    %cst_50 = arith.constant dense<0.000000e+00> : vector<2x512xf32>
    %176 = tpu.matmul %175, %4, %cst_50 {dimension_numbers = #tpu.dot_dimension_numbers<[1], [0], [0], [1], [0, 0, 1, 1], [], []>} : vector<2x128xbf16>, vector<128x512xbf16>, vector<2x512xf32> -> vector<2x512xf32>
    %177 = arith.addf %174, %176 : vector<2x512xf32>
    %178 = vector.extract_strided_slice %177 {offsets = [0, 0], sizes = [2, 128], strides = [1, 1]} : vector<2x512xf32> to vector<2x128xf32>
    %179 = arith.negf %178 : vector<2x128xf32>
    %180 = math.exp %179 : vector<2x128xf32>
    %cst_51 = arith.constant 1.000000e+00 : f32
    %181 = vector.broadcast %cst_51 : f32 to vector<2x128xf32>
    %182 = arith.addf %181, %180 : vector<2x128xf32>
    %183 = arith.divf %181, %182 : vector<2x128xf32>
    %184 = vector.extract_strided_slice %177 {offsets = [0, 128], sizes = [2, 128], strides = [1, 1]} : vector<2x512xf32> to vector<2x128xf32>
    %185 = arith.negf %184 : vector<2x128xf32>
    %186 = math.exp %185 : vector<2x128xf32>
    %cst_52 = arith.constant 1.000000e+00 : f32
    %187 = vector.broadcast %cst_52 : f32 to vector<2x128xf32>
    %188 = arith.addf %187, %186 : vector<2x128xf32>
    %189 = arith.divf %187, %188 : vector<2x128xf32>
    %190 = vector.extract_strided_slice %177 {offsets = [0, 256], sizes = [2, 128], strides = [1, 1]} : vector<2x512xf32> to vector<2x128xf32>
    %191 = math.tanh %190 : vector<2x128xf32>
    %192 = vector.extract_strided_slice %177 {offsets = [0, 384], sizes = [2, 128], strides = [1, 1]} : vector<2x512xf32> to vector<2x128xf32>
    %193 = arith.negf %192 : vector<2x128xf32>
    %194 = math.exp %193 : vector<2x128xf32>
    %cst_53 = arith.constant 1.000000e+00 : f32
    %195 = vector.broadcast %cst_53 : f32 to vector<2x128xf32>
    %196 = arith.addf %195, %194 : vector<2x128xf32>
    %197 = arith.divf %195, %196 : vector<2x128xf32>
    %198 = arith.mulf %189, %160 : vector<2x128xf32>
    %199 = arith.mulf %183, %191 : vector<2x128xf32>
    %200 = arith.addf %198, %199 : vector<2x128xf32>
    %201 = math.tanh %200 : vector<2x128xf32>
    %202 = arith.mulf %197, %201 : vector<2x128xf32>
    %203 = arith.index_cast %170 : i32 to index
    %c0_54 = arith.constant 0 : index
    %c0_55 = arith.constant 0 : index
    %204 = vector.load %arg4[%203, %c0_54, %c0_55] : memref<6x2x128xf32, #tpu.memory_space<vmem>>, vector<1x2x128xf32>
    %205 = vector.shape_cast %204 : vector<1x2x128xf32> to vector<2x128xf32>
    %206 = vector.shape_cast %202 : vector<2x128xf32> to vector<1x2x128xf32>
    tpu.vector_store %arg4[%203, %c0_54, %c0_55], %206 {strides = array<i32>} : memref<6x2x128xf32, #tpu.memory_space<vmem>>, vector<1x2x128xf32>,
    %c1_i32_56 = arith.constant 1 : i32
    %207 = arith.subi %c1_i32_56, %arg0 : i32
    %c5_i32_57 = arith.constant 5 : i32
    %208 = arith.muli %207, %c5_i32_57 : i32
    %c0_i32_58 = arith.constant 0 : i32
    %209 = arith.muli %arg0, %c0_i32_58 : i32
    %210 = arith.addi %208, %209 : i32
    %211 = arith.index_cast %210 : i32 to index
    %c0_59 = arith.constant 0 : index
    %c0_60 = arith.constant 0 : index
    %212 = vector.load %arg2[%211, %c0_59, %c0_60] : memref<6x2x512xbf16, #tpu.memory_space<vmem>>, vector<1x2x512xbf16>
    %213 = vector.shape_cast %212 : vector<1x2x512xbf16> to vector<2x512xbf16>
    %214 = arith.extf %213 : vector<2x512xbf16> to vector<2x512xf32>
    %215 = arith.truncf %202 : vector<2x128xf32> to vector<2x128xbf16>
    %cst_61 = arith.constant dense<0.000000e+00> : vector<2x512xf32>
    %216 = tpu.matmul %215, %4, %cst_61 {dimension_numbers = #tpu.dot_dimension_numbers<[1], [0], [0], [1], [0, 0, 1, 1], [], []>} : vector<2x128xbf16>, vector<128x512xbf16>, vector<2x512xf32> -> vector<2x512xf32>
    %217 = arith.addf %214, %216 : vector<2x512xf32>
    %218 = vector.extract_strided_slice %217 {offsets = [0, 0], sizes = [2, 128], strides = [1, 1]} : vector<2x512xf32> to vector<2x128xf32>
    %219 = arith.negf %218 : vector<2x128xf32>
    %220 = math.exp %219 : vector<2x128xf32>
    %cst_62 = arith.constant 1.000000e+00 : f32
    %221 = vector.broadcast %cst_62 : f32 to vector<2x128xf32>
    %222 = arith.addf %221, %220 : vector<2x128xf32>
    %223 = arith.divf %221, %222 : vector<2x128xf32>
    %224 = vector.extract_strided_slice %217 {offsets = [0, 128], sizes = [2, 128], strides = [1, 1]} : vector<2x512xf32> to vector<2x128xf32>
    %225 = arith.negf %224 : vector<2x128xf32>
    %226 = math.exp %225 : vector<2x128xf32>
    %cst_63 = arith.constant 1.000000e+00 : f32
    %227 = vector.broadcast %cst_63 : f32 to vector<2x128xf32>
    %228 = arith.addf %227, %226 : vector<2x128xf32>
    %229 = arith.divf %227, %228 : vector<2x128xf32>
    %230 = vector.extract_strided_slice %217 {offsets = [0, 256], sizes = [2, 128], strides = [1, 1]} : vector<2x512xf32> to vector<2x128xf32>
    %231 = math.tanh %230 : vector<2x128xf32>
    %232 = vector.extract_strided_slice %217 {offsets = [0, 384], sizes = [2, 128], strides = [1, 1]} : vector<2x512xf32> to vector<2x128xf32>
    %233 = arith.negf %232 : vector<2x128xf32>
    %234 = math.exp %233 : vector<2x128xf32>
    %cst_64 = arith.constant 1.000000e+00 : f32
    %235 = vector.broadcast %cst_64 : f32 to vector<2x128xf32>
    %236 = arith.addf %235, %234 : vector<2x128xf32>
    %237 = arith.divf %235, %236 : vector<2x128xf32>
    %238 = arith.mulf %229, %200 : vector<2x128xf32>
    %239 = arith.mulf %223, %231 : vector<2x128xf32>
    %240 = arith.addf %238, %239 : vector<2x128xf32>
    %241 = math.tanh %240 : vector<2x128xf32>
    %242 = arith.mulf %237, %241 : vector<2x128xf32>
    %243 = arith.index_cast %210 : i32 to index
    %c0_65 = arith.constant 0 : index
    %c0_66 = arith.constant 0 : index
    %244 = vector.load %arg4[%243, %c0_65, %c0_66] : memref<6x2x128xf32, #tpu.memory_space<vmem>>, vector<1x2x128xf32>
    %245 = vector.shape_cast %244 : vector<1x2x128xf32> to vector<2x128xf32>
    %246 = vector.shape_cast %242 : vector<2x128xf32> to vector<1x2x128xf32>
    tpu.vector_store %arg4[%243, %c0_65, %c0_66], %246 {strides = array<i32>} : memref<6x2x128xf32, #tpu.memory_space<vmem>>, vector<1x2x128xf32>,
    %c0_67 = arith.constant 0 : index
    %c0_68 = arith.constant 0 : index
    %247 = vector.load %arg5[%c0_67, %c0_68] : memref<2x128xf32, #tpu.memory_space<vmem>>, vector<2x128xf32>
    tpu.vector_store %arg5[%c0_67, %c0_68], %242 {strides = array<i32>} : memref<2x128xf32, #tpu.memory_space<vmem>>, vector<2x128xf32>,
    %c0_69 = arith.constant 0 : index
    %c0_70 = arith.constant 0 : index
    %248 = vector.load %arg6[%c0_69, %c0_70] : memref<2x128xf32, #tpu.memory_space<vmem>>, vector<2x128xf32>
    tpu.vector_store %arg6[%c0_69, %c0_70], %240 {strides = array<i32>} : memref<2x128xf32, #tpu.memory_space<vmem>>, vector<2x128xf32>,
    return
  }
  func.func @transform_0(%arg0: i32, %arg1: i32) -> (i32, i32, i32) {
    %c0_i32 = arith.constant 0 : i32
    %0 = arith.subi %c0_i32, %arg1 : i32
    %1 = arith.muli %arg0, %0 : i32
    %c1_i32 = arith.constant 1 : i32
    %2 = arith.subi %c1_i32, %arg0 : i32
    %3 = arith.muli %2, %arg1 : i32
    %4 = arith.addi %1, %3 : i32
    %c0_i32_0 = arith.constant 0 : i32
    %c0_i32_1 = arith.constant 0 : i32
    return %4, %c0_i32_0, %arg0 : i32, i32, i32
  }
  func.func @transform_1(%arg0: i32, %arg1: i32) -> (i32, i32, i32) {
    %c0_i32 = arith.constant 0 : i32
    %c0_i32_0 = arith.constant 0 : i32
    %c0_i32_1 = arith.constant 0 : i32
    return %arg0, %c0_i32, %c0_i32_0 : i32, i32, i32
  }
  func.func @transform_2(%arg0: i32, %arg1: i32) -> (i32, i32, i32) {
    %c0_i32 = arith.constant 0 : i32
    %0 = arith.subi %c0_i32, %arg1 : i32
    %1 = arith.muli %arg0, %0 : i32
    %c1_i32 = arith.constant 1 : i32
    %2 = arith.subi %c1_i32, %arg0 : i32
    %3 = arith.muli %2, %arg1 : i32
    %4 = arith.addi %1, %3 : i32
    %c0_i32_0 = arith.constant 0 : i32
    %c0_i32_1 = arith.constant 0 : i32
    return %4, %c0_i32_0, %arg0 : i32, i32, i32
  }
}

module attributes {stable_mosaic.version = 11 : i64} {
  func.func @_emb_logsoftmax_kernel(%arg0: i32, %arg1: memref<8x256xbf16, #tpu.memory_space<vmem>>, %arg2: memref<256x128xbf16, #tpu.memory_space<vmem>>, %arg3: memref<1x128xf32, #tpu.memory_space<vmem>>, %arg4: memref<8x128xf32, #tpu.memory_space<vmem>>) attributes {dimension_semantics = [#tpu.dimension_semantics<parallel>], iteration_bounds = array<i64: 2>, scalar_prefetch = 0 : i64, scratch_operands = 0 : i64, tpu.core_type = #tpu.core_type<tc>, window_params = [{transform_indices = @transform_0, window_bounds = array<i64: 8, 256>}, {pipeline_mode = #tpu.pipeline_mode<synchronous>, transform_indices = @transform_1, window_bounds = array<i64: 256, 128>}, {pipeline_mode = #tpu.pipeline_mode<synchronous>, transform_indices = @transform_2, window_bounds = array<i64: 1, 128>}, {transform_indices = @transform_3, window_bounds = array<i64: 8, 128>}]} {
    %c0 = arith.constant 0 : index
    %c0_0 = arith.constant 0 : index
    %0 = vector.load %arg1[%c0, %c0_0] : memref<8x256xbf16, #tpu.memory_space<vmem>>, vector<8x256xbf16>
    %c0_1 = arith.constant 0 : index
    %c0_2 = arith.constant 0 : index
    %1 = vector.load %arg2[%c0_1, %c0_2] : memref<256x128xbf16, #tpu.memory_space<vmem>>, vector<256x128xbf16>
    %cst = arith.constant dense<0.000000e+00> : vector<8x128xf32>
    %2 = tpu.matmul %0, %1, %cst {dimension_numbers = #tpu.dot_dimension_numbers<[1], [0], [0], [1], [0, 0, 1, 1], [], []>} : vector<8x256xbf16>, vector<256x128xbf16>, vector<8x128xf32> -> vector<8x128xf32>
    %c0_3 = arith.constant 0 : index
    %c0_4 = arith.constant 0 : index
    %3 = vector.load %arg3[%c0_3, %c0_4] : memref<1x128xf32, #tpu.memory_space<vmem>>, vector<1x128xf32>
    %4 = vector.broadcast %3 : vector<1x128xf32> to vector<8x128xf32>
    %5 = arith.addf %2, %4 : vector<8x128xf32>
    %cst_5 = arith.constant dense<0xFF800000> : vector<8xf32>
    %6 = vector.multi_reduction <maximumf>, %5, %cst_5 [1] : vector<8x128xf32> to vector<8xf32>
    %7 = vector.shape_cast %6 : vector<8xf32> to vector<8x1xf32>
    %8 = vector.broadcast %7 : vector<8x1xf32> to vector<8x128xf32>
    %9 = arith.subf %5, %8 : vector<8x128xf32>
    %10 = math.exp %9 : vector<8x128xf32>
    %cst_6 = arith.constant dense<0.000000e+00> : vector<8xf32>
    %11 = vector.multi_reduction <add>, %10, %cst_6 [1] : vector<8x128xf32> to vector<8xf32>
    %12 = vector.shape_cast %11 : vector<8xf32> to vector<8x1xf32>
    %13 = vector.broadcast %7 : vector<8x1xf32> to vector<8x128xf32>
    %14 = arith.subf %5, %13 : vector<8x128xf32>
    %15 = math.log %12 : vector<8x1xf32>
    %16 = vector.broadcast %15 : vector<8x1xf32> to vector<8x128xf32>
    %17 = arith.subf %14, %16 : vector<8x128xf32>
    %c0_7 = arith.constant 0 : index
    %c0_8 = arith.constant 0 : index
    %18 = vector.load %arg4[%c0_7, %c0_8] : memref<8x128xf32, #tpu.memory_space<vmem>>, vector<8x128xf32>
    tpu.vector_store %arg4[%c0_7, %c0_8], %17 {strides = array<i32>} : memref<8x128xf32, #tpu.memory_space<vmem>>, vector<8x128xf32>,
    return
  }
  func.func @transform_0(%arg0: i32) -> (i32, i32) {
    %c0_i32 = arith.constant 0 : i32
    %c0_i32_0 = arith.constant 0 : i32
    return %arg0, %c0_i32 : i32, i32
  }
  func.func @transform_1(%arg0: i32) -> (i32, i32) {
    %c0_i32 = arith.constant 0 : i32
    %c0_i32_0 = arith.constant 0 : i32
    %c0_i32_1 = arith.constant 0 : i32
    return %c0_i32, %c0_i32_0 : i32, i32
  }
  func.func @transform_2(%arg0: i32) -> (i32, i32) {
    %c0_i32 = arith.constant 0 : i32
    %c0_i32_0 = arith.constant 0 : i32
    %c0_i32_1 = arith.constant 0 : i32
    return %c0_i32, %c0_i32_0 : i32, i32
  }
  func.func @transform_3(%arg0: i32) -> (i32, i32) {
    %c0_i32 = arith.constant 0 : i32
    %c0_i32_0 = arith.constant 0 : i32
    return %arg0, %c0_i32 : i32, i32
  }
}

</mosaic_0001>

<bundles_post_ra>
// kernel: crnn_forward.10
= control target key start
LH: loop header
LB: loop body
LE: loop exit
PB: predicated region body
PF: predicated region fallthrough
CT: control target
= control target key end

     0   :  { %s2158_s1 = inlined_call_operand.vmem [shape: bf16[128,128], index: 1, kind: input, shape index: {}]   ;;  %s2159_s0 = inlined_call_operand.vmem [shape: bf16[512,128], index: 0, kind: input, shape index: {}]   ;;  %s2160_s2 = inlined_call_operand.vmem [shape: f32[1,128], index: 2, kind: input, shape index: {}]   ;;  %s2161_s3 = inlined_call_operand.vmem [shape: f32[1,128], index: 3, kind: input, shape index: {}]   ;;  %s2162_s4 = inlined_call_operand.vmem [shape: f32[1,128], index: 4, kind: input, shape index: {}]   ;;  %s2163_s5 = inlined_call_operand.vmem [shape: bf16[512,128], index: 5, kind: output, shape index: {}]  }
   0x1   :  { %v1665_v0 = vld [vmem:[%s2158_s1 + $0x38] sm:$0xff]   ;;  %v1666_v1 = vld [vmem:[%s2158_s1 + $0x30] sm:$0xff]   ;;  %v1667_v2 = vld [vmem:[%s2158_s1 + $0x28] sm:$0xff]  }
   0x2   :  { %1569 = vmatprep.subr.bf16.mxu0 %v1665_v0  ;;  %1649 = vmatprep.subr.bf16.mxu1 %v1665_v0  ;;  %v1668_v3 = vld [vmem:[%s2158_s1 + $0x20] sm:$0xff]   ;;  %v1669_v6 = vld [vmem:[%s2158_s1 + $0x18] sm:$0xff]   ;;  %v1670_v7 = vld [vmem:[%s2158_s1 + $0x10] sm:$0xff]  }
   0x3   :  { %1570 = vmatpush3.bf16.msra.mxu0 %v1665_v0  ;;  %1657 = vmatpush3.bf16.msra.mxu1 %v1665_v0  ;;  %v1673_v4 = vld [vmem:[%s2159_s0] sm:$0xff]   ;;  %v1671_v8 = vld [vmem:[%s2158_s1 + $0x8] sm:$0xff]   ;;  %v1677_v12 = vld [vmem:[%s2159_s0 + $0x10] sm:$0xff]  }
   0x4   :  { %1571 = vmatprep.subr.bf16.mxu0 %v1666_v1  ;;  %1650 = vmatprep.subr.bf16.mxu1 %v1666_v1  ;;  %v1674_v5 = vld [vmem:[%s2159_s0 + $0x80] sm:$0xff]   ;;  %v1675_v10 = vld [vmem:[%s2159_s0 + $0x8] sm:$0xff]   ;;  %v1678_v13 = vld [vmem:[%s2159_s0 + $0x90] sm:$0xff]  }
   0x5   :  { %1585 = vmatprep.mubr.bf16.mxu0 %v1673_v4  ;;  %1617 = vmatprep.mubr.bf16.mxu1 %v1674_v5  ;;  %v1672_v9 = vld [vmem:[%s2158_s1] sm:$0xff]   ;;  %v1676_v11 = vld [vmem:[%s2159_s0 + $0x88] sm:$0xff]   ;;  %v1679_v14 = vld [vmem:[%s2159_s0 + $0x18] sm:$0xff]  }
   0x6   :  { %v1680_v15 = vld [vmem:[%s2159_s0 + $0x98] sm:$0xff]   ;;  %v1681_v16 = vld [vmem:[%s2159_s0 + $0x20] sm:$0xff]   ;;  %v1683_v18 = vld [vmem:[%s2159_s0 + $0x28] sm:$0xff]  }
   0x7   :  { %1572 = vmatpush3.bf16.msra.mxu0 %v1666_v1  ;;  %1658 = vmatpush3.bf16.msra.mxu1 %v1666_v1  ;;  %v1682_v17 = vld [vmem:[%s2159_s0 + $0xa0] sm:$0xff]   ;;  %v1684_v19 = vld [vmem:[%s2159_s0 + $0xa8] sm:$0xff]   ;;  %v1685_v20 = vld [vmem:[%s2159_s0 + $0x30] sm:$0xff]  }
   0x8   :  { %1573 = vmatprep.subr.bf16.mxu0 %v1667_v2  ;;  %1651 = vmatprep.subr.bf16.mxu1 %v1667_v2  ;;  %v1686_v21 = vld [vmem:[%s2159_s0 + $0xb0] sm:$0xff]   ;;  %v1687_v22 = vld [vmem:[%s2159_s0 + $0x38] sm:$0xff]   ;;  %v1689_v24 = vld [vmem:[%s2159_s0 + $0x40] sm:$0xff]  }
   0x9   :  { %v1688_v23 = vld [vmem:[%s2159_s0 + $0xb8] sm:$0xff]   ;;  %v1690_v25 = vld [vmem:[%s2159_s0 + $0xc0] sm:$0xff]   ;;  %v1691_v26 = vld [vmem:[%s2159_s0 + $0x48] sm:$0xff]  }
   0xa   :  { %v1692_v27 = vld [vmem:[%s2159_s0 + $0xc8] sm:$0xff]   ;;  %v1693_v28 = vld [vmem:[%s2159_s0 + $0x50] sm:$0xff]   ;;  %v1695_v30 = vld [vmem:[%s2159_s0 + $0x58] sm:$0xff]  }
   0xb   :  { %1574 = vmatpush3.bf16.msra.mxu0 %v1667_v2  ;;  %1659 = vmatpush3.bf16.msra.mxu1 %v1667_v2  ;;  %v1694_v29 = vld [vmem:[%s2159_s0 + $0xd0] sm:$0xff]   ;;  %v1696_v31 = vld [vmem:[%s2159_s0 + $0xd8] sm:$0xff]   ;;  %v1697_v32 = vld [vmem:[%s2159_s0 + $0x60] sm:$0xff]  }
   0xc   :  { %1575 = vmatprep.subr.bf16.mxu0 %v1668_v3  ;;  %1652 = vmatprep.subr.bf16.mxu1 %v1668_v3  ;;  %v1698_v33 = vld [vmem:[%s2159_s0 + $0xe0] sm:$0xff]   ;;  %v1699_v34 = vld [vmem:[%s2159_s0 + $0x68] sm:$0xff]   ;;  %v1701_v36 = vld [vmem:[%s2159_s0 + $0x70] sm:$0xff]  }
   0xd   :  { %v1700_v35 = vld [vmem:[%s2159_s0 + $0xe8] sm:$0xff]   ;;  %v1702_v37 = vld [vmem:[%s2159_s0 + $0xf0] sm:$0xff]   ;;  %v1703_v38 = vld [vmem:[%s2159_s0 + $0x78] sm:$0xff]  }
   0xe   :  { %v1704_v39 = vld [vmem:[%s2159_s0 + $0xf8] sm:$0xff]   ;;  %v1858_v40 = vld [vmem:[%s2160_s2] ss:$0 sm:$0xff] }
   0xf   :  { %1576 = vmatpush3.bf16.msra.mxu0 %v1668_v3  ;;  %1660 = vmatpush3.bf16.msra.mxu1 %v1668_v3  ;;  %v1865_v45 = vld [vmem:[%s2161_s3] ss:$0 sm:$0xff] }
  0x10   :  { %1577 = vmatprep.subr.bf16.mxu0 %v1669_v6  ;;  %1653 = vmatprep.subr.bf16.mxu1 %v1669_v6  ;;  %v1872_v52 = vld [vmem:[%s2162_s4] ss:$0 sm:$0xff] }
  0x13   :  { %1578 = vmatpush3.bf16.msra.mxu0 %v1669_v6  ;;  %1661 = vmatpush3.bf16.msra.mxu1 %v1669_v6 }
  0x14   :  { %1579 = vmatprep.subr.bf16.mxu0 %v1670_v7  ;;  %1654 = vmatprep.subr.bf16.mxu1 %v1670_v7 }
  0x17   :  { %1580 = vmatpush3.bf16.msra.mxu0 %v1670_v7  ;;  %1662 = vmatpush3.bf16.msra.mxu1 %v1670_v7 }
  0x18   :  { %1581 = vmatprep.subr.bf16.mxu0 %v1671_v8  ;;  %1655 = vmatprep.subr.bf16.mxu1 %v1671_v8 }
  0x1b   :  { %1582 = vmatpush3.bf16.msra.mxu0 %v1671_v8  ;;  %1663 = vmatpush3.bf16.msra.mxu1 %v1671_v8 }
  0x1c   :  { %1583 = vmatprep.subr.bf16.mxu0 %v1672_v9  ;;  %1656 = vmatprep.subr.bf16.mxu1 %v1672_v9 }
  0x1f   :  { %1584 = vmatpush3.bf16.msra.mxu0 %v1672_v9  ;;  %1664 = vmatpush3.bf16.msra.mxu1 %v1672_v9 }
  0x22   :  { %1586 = vmatmul.mubr.bf16.vlgmr.msra.gmra.mxu0 %v1675_v10  ;;  %1618 = vmatmul.mubr.bf16.vlgmr.msra.gmra.mxu1 %v1676_v11 }
  0x23   :  { %1589 = vmatprep.mubr.bf16.mxu0 %v1677_v12  ;;  %1621 = vmatprep.mubr.bf16.mxu1 %v1678_v13 }
  0x2a   :  { %1590 = vmatmul.mubr.bf16.gmra.mxu0 %v1679_v14  ;;  %1622 = vmatmul.mubr.bf16.gmra.mxu1 %v1680_v15 }
  0x2b   :  { %1593 = vmatprep.mubr.bf16.mxu0 %v1681_v16  ;;  %1625 = vmatprep.mubr.bf16.mxu1 %v1682_v17 }
  0x32   :  { %1594 = vmatmul.mubr.bf16.gmra.mxu0 %v1683_v18  ;;  %1626 = vmatmul.mubr.bf16.gmra.mxu1 %v1684_v19 }
  0x33   :  { %1597 = vmatprep.mubr.bf16.mxu0 %v1685_v20  ;;  %1629 = vmatprep.mubr.bf16.mxu1 %v1686_v21 }
  0x3a   :  { %1598 = vmatmul.mubr.bf16.gmra.mxu0 %v1687_v22  ;;  %1630 = vmatmul.mubr.bf16.gmra.mxu1 %v1688_v23 }
  0x3b   :  { %1601 = vmatprep.mubr.bf16.mxu0 %v1689_v24  ;;  %1633 = vmatprep.mubr.bf16.mxu1 %v1690_v25 }
  0x42   :  { %1602 = vmatmul.mubr.bf16.gmra.mxu0 %v1691_v26  ;;  %1634 = vmatmul.mubr.bf16.gmra.mxu1 %v1692_v27 }
  0x43   :  { %1605 = vmatprep.mubr.bf16.mxu0 %v1693_v28  ;;  %1637 = vmatprep.mubr.bf16.mxu1 %v1694_v29 }
  0x4a   :  { %1606 = vmatmul.mubr.bf16.gmra.mxu0 %v1695_v30  ;;  %1638 = vmatmul.mubr.bf16.gmra.mxu1 %v1696_v31 }
  0x4b   :  { %1609 = vmatprep.mubr.bf16.mxu0 %v1697_v32  ;;  %1641 = vmatprep.mubr.bf16.mxu1 %v1698_v33 }
  0x52   :  { %1610 = vmatmul.mubr.bf16.gmra.mxu0 %v1699_v34  ;;  %1642 = vmatmul.mubr.bf16.gmra.mxu1 %v1700_v35 }
  0x53   :  { %1613 = vmatprep.mubr.bf16.mxu0 %v1701_v36  ;;  %1645 = vmatprep.mubr.bf16.mxu1 %v1702_v37 }
  0x5a   :  { %1614 = vmatmul.mubr.bf16.gmra.mxu0 %v1703_v38  ;;  %1646 = vmatmul.mubr.bf16.gmra.mxu1 %v1704_v39 }
  0xe2   :  { %v1587_v41 = vpop.f32.mrf.mxu0  ;;  %v1619_v42 = vpop.f32.mrf.mxu1 }
  0xe3   :  { %v391_v43 = vadd.f32 %v1587_v41, %v1858_v40  ;;  %v519_v44 = vadd.f32 %v1619_v42, %v1858_v40 }
  0xe4   :  { %v382_v46 = vpop.f32.mrf.mxu0  ;;  %v510_v47 = vpop.f32.mrf.mxu1 }
  0xe5   :  { %v639_v48 = vmax.f32 %v391_v43, 0.0  ;;  %v671_v49 = vmax.f32 %v519_v44, 0.0  ;;  %v383_v50 = vadd.f32 %v1858_v40, %v382_v46  ;;  %v511_v51 = vadd.f32 %v1858_v40, %v510_v47 }
  0xe6   :  { %v1588_v53 = vpop.f32.mrf.mxu0  ;;  %v1620_v54 = vpop.f32.mrf.mxu1 }
  0xe7   :  { %v710_v55 = vmul.f32 %v1865_v45, %v639_v48  ;;  %v742_v56 = vmul.f32 %v1865_v45, %v671_v49  ;;  %v637_v57 = vmax.f32 %v383_v50, 0.0  ;;  %v669_v58 = vmax.f32 %v511_v51, 0.0 }
  0xe8   :  { %v394_v59 = vadd.f32 %v1588_v53, %v1858_v40  ;;  %v522_v60 = vadd.f32 %v1620_v54, %v1858_v40  ;;  %v385_v61 = vpop.f32.mrf.mxu0  ;;  %v513_v62 = vpop.f32.mrf.mxu1 }
  0xe9   :  { %v781_v63 = vadd.f32 %v1872_v52, %v710_v55  ;;  %v813_v0 = vadd.f32 %v1872_v52, %v742_v56  ;;  %v386_v3 = vadd.f32 %v1858_v40, %v385_v61  ;;  %v514_v4 = vadd.f32 %v1858_v40, %v513_v62 }
  0xea   :  { %v640_v1 = vmax.f32 %v394_v59, 0.0  ;;  %v672_v2 = vmax.f32 %v522_v60, 0.0  ;;  %v1591_v5 = vpop.f32.mrf.mxu0  ;;  %v1623_v6 = vpop.f32.mrf.mxu1  ;;  %v708_v7 = vmul.f32 %v1865_v45, %v637_v57  ;;  %v740_v8 = vmul.f32 %v1865_v45, %v669_v58 }
  0xeb   :  { %v407_v9 = vadd.f32 %v1591_v5, %v1858_v40  ;;  %v535_v10 = vadd.f32 %v1623_v6, %v1858_v40  ;;  %v638_v13 = vmax.f32 %v386_v3, 0.0  ;;  %v670_v14 = vmax.f32 %v514_v4, 0.0 }
  0xec   :  { %v711_v11 = vmul.f32 %v1865_v45, %v640_v1  ;;  %v743_v12 = vmul.f32 %v1865_v45, %v672_v2  ;;  %v398_v15 = vpop.f32.mrf.mxu0  ;;  %v526_v16 = vpop.f32.mrf.mxu1  ;;  %v779_v27 = vadd.f32 %v1872_v52, %v708_v7  ;;  %v811_v28 = vadd.f32 %v1872_v52, %v740_v8 }
  0xed   :  { %v643_v17 = vmax.f32 %v407_v9, 0.0  ;;  %v675_v18 = vmax.f32 %v535_v10, 0.0  ;;  %v399_v19 = vadd.f32 %v1858_v40, %v398_v15  ;;  %v527_v20 = vadd.f32 %v1858_v40, %v526_v16 }
  0xee   :  { %v782_v21 = vadd.f32 %v1872_v52, %v711_v11  ;;  %v814_v22 = vadd.f32 %v1872_v52, %v743_v12  ;;  %v709_v23 = vmul.f32 %v1865_v45, %v638_v13  ;;  %v741_v24 = vmul.f32 %v1865_v45, %v670_v14  ;;  %v1592_v25 = vpop.f32.mrf.mxu0  ;;  %v1624_v26 = vpop.f32.mrf.mxu1 }
  0xef   :  { %v641_v29 = vmax.f32 %v399_v19, 0.0  ;;  %v673_v30 = vmax.f32 %v527_v20, 0.0  ;;  %v714_v37 = vmul.f32 %v1865_v45, %v643_v17  ;;  %v746_v38 = vmul.f32 %v1865_v45, %v675_v18 }
  0xf0   :  { %v1346_v31 = vpack.c.bf16 %v782_v21, %v781_v63  ;;  %v1426_v32 = vpack.c.bf16 %v814_v22, %v813_v0  ;;  %v780_v33 = vadd.f32 %v1872_v52, %v709_v23  ;;  %v812_v34 = vadd.f32 %v1872_v52, %v741_v24  ;;  %v401_v35 = vpop.f32.mrf.mxu0  ;;  %v529_v36 = vpop.f32.mrf.mxu1 }
  0xf1   :  { %v410_v42 = vadd.f32 %v1592_v25, %v1858_v40  ;;  %v538_v43 = vadd.f32 %v1624_v26, %v1858_v40  ;;  %v712_v47 = vmul.f32 %v1865_v45, %v641_v29  ;;  %v744_v48 = vmul.f32 %v1865_v45, %v673_v30 }
  0xf2   :  { %1498 = vst [vmem:[%s2163_s5 + $0x8] sm:$0xff] %v1346_v31   ;;  %1514 = vst [vmem:[%s2163_s5 + $0x88] sm:$0xff] %v1426_v32   ;;  %v1341_v39 = vpack.c.bf16 %v780_v33, %v779_v27  ;;  %v1421_v41 = vpack.c.bf16 %v812_v34, %v811_v28  ;;  %v1595_v44 = vpop.f32.mrf.mxu0  ;;  %v1627_v46 = vpop.f32.mrf.mxu1  ;;  %v402_v49 = vadd.f32 %v1858_v40, %v401_v35 }
  0xf3   :  { %v530_v50 = vadd.f32 %v1858_v40, %v529_v36  ;;  %v644_v51 = vmax.f32 %v410_v42, 0.0  ;;  %v676_v53 = vmax.f32 %v538_v43, 0.0  ;;  %v423_v54 = vadd.f32 %v1595_v44, %v1858_v40 }
  0xf4   :  { %1342 = vst [vmem:[%s2163_s5] sm:$0xff] %v1341_v39   ;;  %1513 = vst [vmem:[%s2163_s5 + $0x80] sm:$0xff] %v1421_v41   ;;  %v551_v55 = vadd.f32 %v1627_v46, %v1858_v40  ;;  %v414_v56 = vpop.f32.mrf.mxu0  ;;  %v542_v57 = vpop.f32.mrf.mxu1  ;;  %v642_v58 = vmax.f32 %v402_v49, 0.0  ;;  %v785_v8 = vadd.f32 %v1872_v52, %v714_v37  ;;  %v817_v9 = vadd.f32 %v1872_v52, %v746_v38 }
  0xf5   :  { %v674_v59 = vmax.f32 %v530_v50, 0.0  ;;  %v415_v60 = vadd.f32 %v1858_v40, %v414_v56  ;;  %v543_v61 = vadd.f32 %v1858_v40, %v542_v57  ;;  %v715_v62 = vmul.f32 %v1865_v45, %v644_v51 }
  0xf6   :  { %v747_v63 = vmul.f32 %v1865_v45, %v676_v53  ;;  %v647_v0 = vmax.f32 %v423_v54, 0.0  ;;  %v679_v1 = vmax.f32 %v551_v55, 0.0  ;;  %v1596_v2 = vpop.f32.mrf.mxu0  ;;  %v1628_v3 = vpop.f32.mrf.mxu1  ;;  %v713_v4 = vmul.f32 %v1865_v45, %v642_v58 }
  0xf7   :  { %v745_v5 = vmul.f32 %v1865_v45, %v674_v59  ;;  %v645_v6 = vmax.f32 %v415_v60, 0.0  ;;  %v677_v7 = vmax.f32 %v543_v61, 0.0  ;;  %v786_v10 = vadd.f32 %v1872_v52, %v715_v62 }
  0xf8   :  { %v818_v11 = vadd.f32 %v1872_v52, %v747_v63  ;;  %v417_v12 = vpop.f32.mrf.mxu0  ;;  %v545_v13 = vpop.f32.mrf.mxu1  ;;  %v783_v14 = vadd.f32 %v1872_v52, %v712_v47  ;;  %v815_v15 = vadd.f32 %v1872_v52, %v744_v48  ;;  %v784_v16 = vadd.f32 %v1872_v52, %v713_v4 }
  0xf9   :  { %v816_v17 = vadd.f32 %v1872_v52, %v745_v5  ;;  %v1356_v18 = vpack.c.bf16 %v786_v10, %v785_v8  ;;  %v718_v20 = vmul.f32 %v1865_v45, %v647_v0  ;;  %v750_v21 = vmul.f32 %v1865_v45, %v679_v1 }
  0xfa   :  { %v1436_v19 = vpack.c.bf16 %v818_v11, %v817_v9  ;;  %v1599_v22 = vpop.f32.mrf.mxu0  ;;  %v1631_v23 = vpop.f32.mrf.mxu1  ;;  %v1351_v24 = vpack.c.bf16 %v784_v16, %v783_v14  ;;  %v716_v26 = vmul.f32 %v1865_v45, %v645_v6  ;;  %v748_v27 = vmul.f32 %v1865_v45, %v677_v7 }
  0xfb   :  { %v1431_v25 = vpack.c.bf16 %v816_v17, %v815_v15  ;;  %1500 = vst [vmem:[%s2163_s5 + $0x18] sm:$0xff] %v1356_v18   ;;  %v426_v28 = vadd.f32 %v1596_v2, %v1858_v40  ;;  %v554_v29 = vadd.f32 %v1628_v3, %v1858_v40  ;;  %v418_v30 = vadd.f32 %v1858_v40, %v417_v12 }
  0xfc   :  { %1516 = vst [vmem:[%s2163_s5 + $0x98] sm:$0xff] %v1436_v19   ;;  %v546_v31 = vadd.f32 %v1858_v40, %v545_v13  ;;  %v430_v32 = vpop.f32.mrf.mxu0  ;;  %v558_v33 = vpop.f32.mrf.mxu1  ;;  %1499 = vst [vmem:[%s2163_s5 + $0x10] sm:$0xff] %v1351_v24   ;;  %v439_v34 = vadd.f32 %v1599_v22, %v1858_v40  ;;  %v567_v35 = vadd.f32 %v1631_v23, %v1858_v40 }
  0xfd   :  { %1515 = vst [vmem:[%s2163_s5 + $0x90] sm:$0xff] %v1431_v25   ;;  %v431_v36 = vadd.f32 %v1858_v40, %v430_v32  ;;  %v559_v37 = vadd.f32 %v1858_v40, %v558_v33  ;;  %v648_v38 = vmax.f32 %v426_v28, 0.0  ;;  %v680_v39 = vmax.f32 %v554_v29, 0.0 }
  0xfe   :  { %v646_v41 = vmax.f32 %v418_v30, 0.0  ;;  %v678_v42 = vmax.f32 %v546_v31, 0.0  ;;  %v1600_v43 = vpop.f32.mrf.mxu0  ;;  %v1632_v44 = vpop.f32.mrf.mxu1  ;;  %v651_v46 = vmax.f32 %v439_v34, 0.0  ;;  %v683_v47 = vmax.f32 %v567_v35, 0.0 }
  0xff   :  { %v649_v48 = vmax.f32 %v431_v36, 0.0  ;;  %v681_v49 = vmax.f32 %v559_v37, 0.0  ;;  %v719_v50 = vmul.f32 %v1865_v45, %v648_v38  ;;  %v751_v51 = vmul.f32 %v1865_v45, %v680_v39 }
 0x100   :  { %v717_v53 = vmul.f32 %v1865_v45, %v646_v41  ;;  %v749_v54 = vmul.f32 %v1865_v45, %v678_v42  ;;  %v433_v55 = vpop.f32.mrf.mxu0  ;;  %v561_v56 = vpop.f32.mrf.mxu1  ;;  %v789_v57 = vadd.f32 %v1872_v52, %v718_v20  ;;  %v821_v58 = vadd.f32 %v1872_v52, %v750_v21 }
 0x101   :  { %v787_v59 = vadd.f32 %v1872_v52, %v716_v26  ;;  %v819_v60 = vadd.f32 %v1872_v52, %v748_v27  ;;  %v790_v61 = vadd.f32 %v1872_v52, %v719_v50  ;;  %v822_v62 = vadd.f32 %v1872_v52, %v751_v51 }
 0x102   :  { %v788_v63 = vadd.f32 %v1872_v52, %v717_v53  ;;  %v820_v0 = vadd.f32 %v1872_v52, %v749_v54  ;;  %v1603_v1 = vpop.f32.mrf.mxu0  ;;  %v1635_v2 = vpop.f32.mrf.mxu1  ;;  %v722_v3 = vmul.f32 %v1865_v45, %v651_v46  ;;  %v754_v4 = vmul.f32 %v1865_v45, %v683_v47 }
 0x103   :  { %v720_v5 = vmul.f32 %v1865_v45, %v649_v48  ;;  %v752_v6 = vmul.f32 %v1865_v45, %v681_v49  ;;  %v1366_v7 = vpack.c.bf16 %v790_v61, %v789_v57  ;;  %v1446_v8 = vpack.c.bf16 %v822_v62, %v821_v58 }
 0x104   :  { %v1361_v9 = vpack.c.bf16 %v788_v63, %v787_v59  ;;  %v1441_v10 = vpack.c.bf16 %v820_v0, %v819_v60  ;;  %v446_v11 = vpop.f32.mrf.mxu0  ;;  %v574_v12 = vpop.f32.mrf.mxu1  ;;  %v442_v13 = vadd.f32 %v1600_v43, %v1858_v40  ;;  %v570_v14 = vadd.f32 %v1632_v44, %v1858_v40 }
 0x105   :  { %v434_v15 = vadd.f32 %v1858_v40, %v433_v55  ;;  %v562_v16 = vadd.f32 %v1858_v40, %v561_v56  ;;  %1502 = vst [vmem:[%s2163_s5 + $0x28] sm:$0xff] %v1366_v7   ;;  %1518 = vst [vmem:[%s2163_s5 + $0xa8] sm:$0xff] %v1446_v8   ;;  %v455_v17 = vadd.f32 %v1603_v1, %v1858_v40 }
 0x106   :  { %1501 = vst [vmem:[%s2163_s5 + $0x20] sm:$0xff] %v1361_v9   ;;  %1517 = vst [vmem:[%s2163_s5 + $0xa0] sm:$0xff] %v1441_v10   ;;  %v583_v18 = vadd.f32 %v1635_v2, %v1858_v40  ;;  %v447_v19 = vadd.f32 %v1858_v40, %v446_v11  ;;  %v575_v20 = vadd.f32 %v1858_v40, %v574_v12  ;;  %v1604_v21 = vpop.f32.mrf.mxu0  ;;  %v1636_v22 = vpop.f32.mrf.mxu1  ;;  %v652_v23 = vmax.f32 %v442_v13, 0.0 }
 0x107   :  { %v684_v24 = vmax.f32 %v570_v14, 0.0  ;;  %v650_v25 = vmax.f32 %v434_v15, 0.0  ;;  %v682_v26 = vmax.f32 %v562_v16, 0.0  ;;  %v655_v27 = vmax.f32 %v455_v17, 0.0 }
 0x108   :  { %v687_v28 = vmax.f32 %v583_v18, 0.0  ;;  %v653_v29 = vmax.f32 %v447_v19, 0.0  ;;  %v685_v30 = vmax.f32 %v575_v20, 0.0  ;;  %v449_v31 = vpop.f32.mrf.mxu0  ;;  %v577_v32 = vpop.f32.mrf.mxu1  ;;  %v723_v33 = vmul.f32 %v1865_v45, %v652_v23 }
 0x109   :  { %v755_v34 = vmul.f32 %v1865_v45, %v684_v24  ;;  %v721_v35 = vmul.f32 %v1865_v45, %v650_v25  ;;  %v753_v36 = vmul.f32 %v1865_v45, %v682_v26  ;;  %v793_v37 = vadd.f32 %v1872_v52, %v722_v3 }
 0x10a   :  { %v825_v38 = vadd.f32 %v1872_v52, %v754_v4  ;;  %v791_v39 = vadd.f32 %v1872_v52, %v720_v5  ;;  %v823_v41 = vadd.f32 %v1872_v52, %v752_v6  ;;  %v1607_v42 = vpop.f32.mrf.mxu0  ;;  %v1639_v43 = vpop.f32.mrf.mxu1  ;;  %v794_v44 = vadd.f32 %v1872_v52, %v723_v33 }
 0x10b   :  { %v826_v46 = vadd.f32 %v1872_v52, %v755_v34  ;;  %v792_v47 = vadd.f32 %v1872_v52, %v721_v35  ;;  %v824_v48 = vadd.f32 %v1872_v52, %v753_v36  ;;  %v726_v49 = vmul.f32 %v1865_v45, %v655_v27 }
 0x10c   :  { %v758_v50 = vmul.f32 %v1865_v45, %v687_v28  ;;  %v724_v51 = vmul.f32 %v1865_v45, %v653_v29  ;;  %v756_v53 = vmul.f32 %v1865_v45, %v685_v30  ;;  %v462_v54 = vpop.f32.mrf.mxu0  ;;  %v590_v55 = vpop.f32.mrf.mxu1  ;;  %v1376_v56 = vpack.c.bf16 %v794_v44, %v793_v37 }
 0x10d   :  { %v1456_v57 = vpack.c.bf16 %v826_v46, %v825_v38  ;;  %v1371_v58 = vpack.c.bf16 %v792_v47, %v791_v39  ;;  %v1451_v59 = vpack.c.bf16 %v824_v48, %v823_v41  ;;  %v458_v60 = vadd.f32 %v1604_v21, %v1858_v40 }
 0x10e   :  { %v586_v61 = vadd.f32 %v1636_v22, %v1858_v40  ;;  %v450_v62 = vadd.f32 %v1858_v40, %v449_v31  ;;  %v578_v63 = vadd.f32 %v1858_v40, %v577_v32  ;;  %v1608_v0 = vpop.f32.mrf.mxu0  ;;  %v1640_v1 = vpop.f32.mrf.mxu1  ;;  %1504 = vst [vmem:[%s2163_s5 + $0x38] sm:$0xff] %v1376_v56   ;;  %v471_v2 = vadd.f32 %v1607_v42, %v1858_v40 }
 0x10f   :  { %1520 = vst [vmem:[%s2163_s5 + $0xb8] sm:$0xff] %v1456_v57   ;;  %1503 = vst [vmem:[%s2163_s5 + $0x30] sm:$0xff] %v1371_v58   ;;  %v599_v3 = vadd.f32 %v1639_v43, %v1858_v40  ;;  %v463_v4 = vadd.f32 %v1858_v40, %v462_v54  ;;  %v591_v5 = vadd.f32 %v1858_v40, %v590_v55  ;;  %v656_v6 = vmax.f32 %v458_v60, 0.0 }
 0x110   :  { %1519 = vst [vmem:[%s2163_s5 + $0xb0] sm:$0xff] %v1451_v59   ;;  %v688_v7 = vmax.f32 %v586_v61, 0.0  ;;  %v654_v8 = vmax.f32 %v450_v62, 0.0  ;;  %v686_v9 = vmax.f32 %v578_v63, 0.0  ;;  %v465_v10 = vpop.f32.mrf.mxu0  ;;  %v593_v11 = vpop.f32.mrf.mxu1  ;;  %v659_v12 = vmax.f32 %v471_v2, 0.0 }
 0x111   :  { %v691_v13 = vmax.f32 %v599_v3, 0.0  ;;  %v657_v14 = vmax.f32 %v463_v4, 0.0  ;;  %v689_v15 = vmax.f32 %v591_v5, 0.0  ;;  %v727_v16 = vmul.f32 %v1865_v45, %v656_v6 }
 0x112   :  { %v759_v17 = vmul.f32 %v1865_v45, %v688_v7  ;;  %v725_v18 = vmul.f32 %v1865_v45, %v654_v8  ;;  %v757_v19 = vmul.f32 %v1865_v45, %v686_v9  ;;  %v1611_v20 = vpop.f32.mrf.mxu0  ;;  %v1643_v21 = vpop.f32.mrf.mxu1  ;;  %v797_v22 = vadd.f32 %v1872_v52, %v726_v49 }
 0x113   :  { %v829_v23 = vadd.f32 %v1872_v52, %v758_v50  ;;  %v795_v24 = vadd.f32 %v1872_v52, %v724_v51  ;;  %v827_v25 = vadd.f32 %v1872_v52, %v756_v53  ;;  %v798_v26 = vadd.f32 %v1872_v52, %v727_v16 }
 0x114   :  { %v830_v27 = vadd.f32 %v1872_v52, %v759_v17  ;;  %v796_v28 = vadd.f32 %v1872_v52, %v725_v18  ;;  %v828_v29 = vadd.f32 %v1872_v52, %v757_v19  ;;  %v478_v30 = vpop.f32.mrf.mxu0  ;;  %v606_v31 = vpop.f32.mrf.mxu1  ;;  %v730_v32 = vmul.f32 %v1865_v45, %v659_v12 }
 0x115   :  { %v762_v33 = vmul.f32 %v1865_v45, %v691_v13  ;;  %v728_v34 = vmul.f32 %v1865_v45, %v657_v14  ;;  %v760_v35 = vmul.f32 %v1865_v45, %v689_v15  ;;  %v1386_v36 = vpack.c.bf16 %v798_v26, %v797_v22 }
 0x116   :  { %v1466_v37 = vpack.c.bf16 %v830_v27, %v829_v23  ;;  %v1381_v38 = vpack.c.bf16 %v796_v28, %v795_v24  ;;  %v1461_v39 = vpack.c.bf16 %v828_v29, %v827_v25  ;;  %v1612_v41 = vpop.f32.mrf.mxu0  ;;  %v1644_v42 = vpop.f32.mrf.mxu1  ;;  %v474_v43 = vadd.f32 %v1608_v0, %v1858_v40 }
 0x117   :  { %v602_v44 = vadd.f32 %v1640_v1, %v1858_v40  ;;  %v466_v46 = vadd.f32 %v1858_v40, %v465_v10  ;;  %v594_v47 = vadd.f32 %v1858_v40, %v593_v11  ;;  %1506 = vst [vmem:[%s2163_s5 + $0x48] sm:$0xff] %v1386_v36   ;;  %v487_v48 = vadd.f32 %v1611_v20, %v1858_v40 }
 0x118   :  { %1522 = vst [vmem:[%s2163_s5 + $0xc8] sm:$0xff] %v1466_v37   ;;  %1505 = vst [vmem:[%s2163_s5 + $0x40] sm:$0xff] %v1381_v38   ;;  %v615_v49 = vadd.f32 %v1643_v21, %v1858_v40  ;;  %v479_v50 = vadd.f32 %v1858_v40, %v478_v30  ;;  %v607_v51 = vadd.f32 %v1858_v40, %v606_v31  ;;  %v481_v53 = vpop.f32.mrf.mxu0  ;;  %v609_v54 = vpop.f32.mrf.mxu1  ;;  %v660_v55 = vmax.f32 %v474_v43, 0.0 }
 0x119   :  { %1521 = vst [vmem:[%s2163_s5 + $0xc0] sm:$0xff] %v1461_v39   ;;  %v692_v56 = vmax.f32 %v602_v44, 0.0  ;;  %v658_v57 = vmax.f32 %v466_v46, 0.0  ;;  %v690_v58 = vmax.f32 %v594_v47, 0.0  ;;  %v663_v59 = vmax.f32 %v487_v48, 0.0 }
 0x11a   :  { %v695_v60 = vmax.f32 %v615_v49, 0.0  ;;  %v661_v61 = vmax.f32 %v479_v50, 0.0  ;;  %v693_v62 = vmax.f32 %v607_v51, 0.0  ;;  %v1615_v63 = vpop.f32.mrf.mxu0  ;;  %v1647_v0 = vpop.f32.mrf.mxu1  ;;  %v731_v1 = vmul.f32 %v1865_v45, %v660_v55 }
 0x11b   :  { %v763_v2 = vmul.f32 %v1865_v45, %v692_v56  ;;  %v729_v3 = vmul.f32 %v1865_v45, %v658_v57  ;;  %v761_v4 = vmul.f32 %v1865_v45, %v690_v58  ;;  %v801_v5 = vadd.f32 %v1872_v52, %v730_v32 }
 0x11c   :  { %v833_v6 = vadd.f32 %v1872_v52, %v762_v33  ;;  %v799_v7 = vadd.f32 %v1872_v52, %v728_v34  ;;  %v831_v8 = vadd.f32 %v1872_v52, %v760_v35  ;;  %v802_v9 = vadd.f32 %v1872_v52, %v731_v1  ;;  %v494_v17 = vpop.f32.mrf.mxu0  ;;  %v622_v18 = vpop.f32.mrf.mxu1 }
 0x11d   :  { %v834_v10 = vadd.f32 %v1872_v52, %v763_v2  ;;  %v800_v11 = vadd.f32 %v1872_v52, %v729_v3  ;;  %v832_v12 = vadd.f32 %v1872_v52, %v761_v4  ;;  %v734_v13 = vmul.f32 %v1865_v45, %v663_v59 }
 0x11e   :  { %v766_v14 = vmul.f32 %v1865_v45, %v695_v60  ;;  %v732_v15 = vmul.f32 %v1865_v45, %v661_v61  ;;  %v764_v16 = vmul.f32 %v1865_v45, %v693_v62  ;;  %v1396_v19 = vpack.c.bf16 %v802_v9, %v801_v5  ;;  %v1616_v35 = vpop.f32.mrf.mxu0  ;;  %v1648_v36 = vpop.f32.mrf.mxu1 }
 0x11f   :  { %v1476_v20 = vpack.c.bf16 %v834_v10, %v833_v6  ;;  %v1391_v21 = vpack.c.bf16 %v800_v11, %v799_v7  ;;  %v1471_v22 = vpack.c.bf16 %v832_v12, %v831_v8  ;;  %v490_v23 = vadd.f32 %v1612_v41, %v1858_v40 }
 0x120   :  { %v618_v24 = vadd.f32 %v1644_v42, %v1858_v40  ;;  %v482_v25 = vadd.f32 %v1858_v40, %v481_v53  ;;  %v610_v26 = vadd.f32 %v1858_v40, %v609_v54  ;;  %1508 = vst [vmem:[%s2163_s5 + $0x58] sm:$0xff] %v1396_v19   ;;  %v503_v27 = vadd.f32 %v1615_v63, %v1858_v40  ;;  %v497_v56 = vpop.f32.mrf.mxu0  ;;  %v625_v57 = vpop.f32.mrf.mxu1 }
 0x121   :  { %1524 = vst [vmem:[%s2163_s5 + $0xd8] sm:$0xff] %v1476_v20   ;;  %1507 = vst [vmem:[%s2163_s5 + $0x50] sm:$0xff] %v1391_v21   ;;  %v631_v28 = vadd.f32 %v1647_v0, %v1858_v40  ;;  %v495_v29 = vadd.f32 %v1858_v40, %v494_v17  ;;  %v623_v30 = vadd.f32 %v1858_v40, %v622_v18  ;;  %v664_v31 = vmax.f32 %v490_v23, 0.0 }
 0x122   :  { %1523 = vst [vmem:[%s2163_s5 + $0xd0] sm:$0xff] %v1471_v22   ;;  %v696_v32 = vmax.f32 %v618_v24, 0.0  ;;  %v662_v33 = vmax.f32 %v482_v25, 0.0  ;;  %v694_v34 = vmax.f32 %v610_v26, 0.0  ;;  %v805_v37 = vadd.f32 %v1872_v52, %v734_v13 }
 0x123   :  { %v837_v38 = vadd.f32 %v1872_v52, %v766_v14  ;;  %v803_v39 = vadd.f32 %v1872_v52, %v732_v15  ;;  %v835_v41 = vadd.f32 %v1872_v52, %v764_v16  ;;  %v735_v42 = vmul.f32 %v1865_v45, %v664_v31 }
 0x124   :  { %v767_v43 = vmul.f32 %v1865_v45, %v696_v32  ;;  %v733_v44 = vmul.f32 %v1865_v45, %v662_v33  ;;  %v765_v46 = vmul.f32 %v1865_v45, %v694_v34  ;;  %v667_v47 = vmax.f32 %v503_v27, 0.0 }
 0x125   :  { %v699_v48 = vmax.f32 %v631_v28, 0.0  ;;  %v665_v49 = vmax.f32 %v495_v29, 0.0  ;;  %v697_v50 = vmax.f32 %v623_v30, 0.0  ;;  %v806_v51 = vadd.f32 %v1872_v52, %v735_v42 }
 0x126   :  { %v838_v53 = vadd.f32 %v1872_v52, %v767_v43  ;;  %v804_v54 = vadd.f32 %v1872_v52, %v733_v44  ;;  %v836_v55 = vadd.f32 %v1872_v52, %v765_v46  ;;  %v506_v62 = vadd.f32 %v1616_v35, %v1858_v40 }
 0x127   :  { %v1406_v58 = vpack.c.bf16 %v806_v51, %v805_v37  ;;  %v634_v63 = vadd.f32 %v1648_v36, %v1858_v40  ;;  %v498_v0 = vadd.f32 %v1858_v40, %v497_v56  ;;  %v626_v1 = vadd.f32 %v1858_v40, %v625_v57 }
 0x128   :  { %v1486_v59 = vpack.c.bf16 %v838_v53, %v837_v38  ;;  %v1401_v60 = vpack.c.bf16 %v804_v54, %v803_v39  ;;  %v1481_v61 = vpack.c.bf16 %v836_v55, %v835_v41  ;;  %v738_v2 = vmul.f32 %v1865_v45, %v667_v47 }
 0x129   :  { %1510 = vst [vmem:[%s2163_s5 + $0x68] sm:$0xff] %v1406_v58   ;;  %v770_v40 = vmul.f32 %v1865_v45, %v699_v48  ;;  %v736_v3 = vmul.f32 %v1865_v45, %v665_v49  ;;  %v768_v4 = vmul.f32 %v1865_v45, %v697_v50  ;;  %v668_v5 = vmax.f32 %v506_v62, 0.0 }
 0x12a   :  { %1526 = vst [vmem:[%s2163_s5 + $0xe8] sm:$0xff] %v1486_v59   ;;  %1509 = vst [vmem:[%s2163_s5 + $0x60] sm:$0xff] %v1401_v60   ;;  %v700_v6 = vmax.f32 %v634_v63, 0.0  ;;  %v666_v7 = vmax.f32 %v498_v0, 0.0  ;;  %v698_v8 = vmax.f32 %v626_v1, 0.0  ;;  %v809_v13 = vadd.f32 %v1872_v52, %v738_v2 }
 0x12b   :  { %1525 = vst [vmem:[%s2163_s5 + $0xe0] sm:$0xff] %v1481_v61   ;;  %v739_v9 = vmul.f32 %v1865_v45, %v668_v5  ;;  %v841_v14 = vadd.f32 %v1872_v52, %v770_v40  ;;  %v807_v15 = vadd.f32 %v1872_v52, %v736_v3  ;;  %v839_v16 = vadd.f32 %v1872_v52, %v768_v4 }
 0x12c   :  { %v771_v10 = vmul.f32 %v1865_v45, %v700_v6  ;;  %v737_v11 = vmul.f32 %v1865_v45, %v666_v7  ;;  %v769_v12 = vmul.f32 %v1865_v45, %v698_v8 }
 0x12d   :  { %v810_v17 = vadd.f32 %v1872_v52, %v739_v9 }
 0x12e   :  { %v842_v18 = vadd.f32 %v1872_v52, %v771_v10  ;;  %v808_v19 = vadd.f32 %v1872_v52, %v737_v11  ;;  %v840_v20 = vadd.f32 %v1872_v52, %v769_v12 }
 0x12f   :  { %v1416_v21 = vpack.c.bf16 %v810_v17, %v809_v13 }
 0x130   :  { %v1496_v22 = vpack.c.bf16 %v842_v18, %v841_v14  ;;  %v1411_v23 = vpack.c.bf16 %v808_v19, %v807_v15  ;;  %v1491_v45 = vpack.c.bf16 %v840_v20, %v839_v16 }
 0x131   :  { %1512 = vst [vmem:[%s2163_s5 + $0x78] sm:$0xff] %v1416_v21  }
 0x132   :  { %1528 = vst [vmem:[%s2163_s5 + $0xf8] sm:$0xff] %v1496_v22   ;;  %1511 = vst [vmem:[%s2163_s5 + $0x70] sm:$0xff] %v1411_v23  }
 0x133   :  { %1527 = vst [vmem:[%s2163_s5 + $0xf0] sm:$0xff] %v1491_v45  }

// kernel: crnn_forward.9
= control target key start
LH: loop header
LB: loop body
LE: loop exit
PB: predicated region body
PF: predicated region fallthrough
CT: control target
= control target key end

     0   :  { %s3757_s18 = smov 0   ;;  %s3759_s19 = smov 0   ;;  %s4445_s0 = inlined_call_operand.vmem [shape: bf16[2048,128], index: 0, kind: input, shape index: {}]   ;;  %s4446_s1 = inlined_call_operand.vmem [shape: bf16[128,128], index: 1, kind: input, shape index: {}]   ;;  %s4447_s2 = inlined_call_operand.vmem [shape: f32[1,128], index: 2, kind: input, shape index: {}]   ;;  %s4448_s3 = inlined_call_operand.vmem [shape: f32[1,128], index: 3, kind: input, shape index: {}]   ;;  %s4449_s4 = inlined_call_operand.vmem [shape: f32[1,128], index: 4, kind: input, shape index: {}]   ;;  %s4450_s5 = inlined_call_operand.vmem [shape: bf16[2048,128], index: 5, kind: output, shape index: {}]  }
   0x1   :  { %s3761_s20 = smov 0  }
   0x2 LB: > { %s34_s21 = sadd.s32 1, %s3721_s19  ;;  %p2651_p0 = scmp.ge.s32.totalorder %s3725_s20, 1  ;;  %s3725_s20 = sphi %s3761_s20, %s15_s20   ;;  %s3721_s19 = sphi %s3759_s19, %s4452_s19   ;;  %s3717_s18 = sphi %s3757_s18, %s4451_s18  }
   0x3   : > { %p36_p1 = scmp.ge.s32.totalorder %s34_s21, 2  ;;  %p254_p2 = scmp.lt.s32.totalorder %s3725_s20, 3 }
   0x5   : > { %s4454_s21 = smov (%p36_p1, %s34_s21), 0  ;;  %p255_p3 = pnand %p2651_p0, %p254_p2 }
   0x6   : > { %s2652_s24 = sshll.u32 (!%p255_p3), %s3717_s18, 7 }
   0x7   : > { %258 = sbr.rel (%p255_p3) target bundleno = 391 (0x187), region = 40  ;;  %p306_p4 = scmp.lt.s32.totalorder (!%p255_p3), %s2652_s24, 255 }
   0xc   : > { %v3628_v0 = vld [vmem:[%s4446_s1 + $0x38] sm:$0xff]   ;;  %v3629_v1 = vld [vmem:[%s4446_s1 + $0x30] sm:$0xff]   ;;  %s4456_s24 = smov (!%p306_p4, %s2652_s24), 255  ;;  %v3630_v2 = vld [vmem:[%s4446_s1 + $0x28] sm:$0xff]  }
   0xd   : > { %3444 = vmatprep.subr.bf16.mxu0 %v3628_v0  ;;  %3588 = vmatprep.subr.bf16.mxu1 %v3628_v0  ;;  %s2653_s29 = sshll.u32 %s4456_s24, 2  ;;  %v3631_v3 = vld [vmem:[%s4446_s1 + $0x20] sm:$0xff]   ;;  %v3632_v6 = vld [vmem:[%s4446_s1 + $0x18] sm:$0xff]   ;;  %v3633_v7 = vld [vmem:[%s4446_s1 + $0x10] sm:$0xff]  }
   0xe   : > { %3445 = vmatpush3.bf16.msra.mxu0 %v3628_v0  ;;  %3596 = vmatpush3.bf16.msra.mxu1 %v3628_v0  ;;  %s3792_s7 = scalar_lea.vmem %s4445_s0, %s2653_s29  ;;  %v3634_v8 = vld [vmem:[%s4446_s1 + $0x8] sm:$0xff]   ;;  %v3635_v9 = vld [vmem:[%s4446_s1] sm:$0xff]   ;;  %s3919_s6 = scalar_lea.vmem %s4450_s5, %s2653_s29 }
   0xf   : > { %3446 = vmatprep.subr.bf16.mxu0 %v3629_v1  ;;  %3589 = vmatprep.subr.bf16.mxu1 %v3629_v1  ;;  %v3636_v4 = vld [vmem:[%s3792_s7] sm:$0xff]   ;;  %v3638_v10 = vld [vmem:[%s3792_s7 + $0x8] sm:$0xff]   ;;  %v3640_v12 = vld [vmem:[%s3792_s7 + $0x10] sm:$0xff]  }
  0x10   : > { %v3637_v5 = vld [vmem:[%s3792_s7 + $0x100] sm:$0xff]   ;;  %3460 = vmatprep.mubr.bf16.mxu0 %v3636_v4  ;;  %v3639_v11 = vld [vmem:[%s3792_s7 + $0x108] sm:$0xff]   ;;  %v3641_v13 = vld [vmem:[%s3792_s7 + $0x110] sm:$0xff]  }
  0x11   : > { %3524 = vmatprep.mubr.bf16.mxu1 %v3637_v5  ;;  %v3642_v14 = vld [vmem:[%s3792_s7 + $0x18] sm:$0xff]   ;;  %v3644_v16 = vld [vmem:[%s3792_s7 + $0x20] sm:$0xff]   ;;  %v3646_v18 = vld [vmem:[%s3792_s7 + $0x28] sm:$0xff]  }
  0x12   : > { %3447 = vmatpush3.bf16.msra.mxu0 %v3629_v1  ;;  %3597 = vmatpush3.bf16.msra.mxu1 %v3629_v1  ;;  %v3643_v15 = vld [vmem:[%s3792_s7 + $0x118] sm:$0xff]   ;;  %v3645_v17 = vld [vmem:[%s3792_s7 + $0x120] sm:$0xff]   ;;  %v3647_v19 = vld [vmem:[%s3792_s7 + $0x128] sm:$0xff]  }
  0x13   : > { %3448 = vmatprep.subr.bf16.mxu0 %v3630_v2  ;;  %3590 = vmatprep.subr.bf16.mxu1 %v3630_v2  ;;  %v3648_v20 = vld [vmem:[%s3792_s7 + $0x30] sm:$0xff]   ;;  %v3650_v22 = vld [vmem:[%s3792_s7 + $0x38] sm:$0xff]   ;;  %v3652_v24 = vld [vmem:[%s3792_s7 + $0x40] sm:$0xff]  }
  0x14   : > { %v3649_v21 = vld [vmem:[%s3792_s7 + $0x130] sm:$0xff]   ;;  %v3651_v23 = vld [vmem:[%s3792_s7 + $0x138] sm:$0xff]   ;;  %v3653_v25 = vld [vmem:[%s3792_s7 + $0x140] sm:$0xff]  }
  0x15   : > { %v3654_v26 = vld [vmem:[%s3792_s7 + $0x48] sm:$0xff]   ;;  %v3656_v28 = vld [vmem:[%s3792_s7 + $0x50] sm:$0xff]   ;;  %v3658_v30 = vld [vmem:[%s3792_s7 + $0x58] sm:$0xff]  }
  0x16   : > { %3449 = vmatpush3.bf16.msra.mxu0 %v3630_v2  ;;  %3598 = vmatpush3.bf16.msra.mxu1 %v3630_v2  ;;  %v3655_v27 = vld [vmem:[%s3792_s7 + $0x148] sm:$0xff]   ;;  %v3657_v29 = vld [vmem:[%s3792_s7 + $0x150] sm:$0xff]   ;;  %v3659_v31 = vld [vmem:[%s3792_s7 + $0x158] sm:$0xff]  }
  0x17   : > { %3450 = vmatprep.subr.bf16.mxu0 %v3631_v3  ;;  %3591 = vmatprep.subr.bf16.mxu1 %v3631_v3  ;;  %v3660_v32 = vld [vmem:[%s3792_s7 + $0x60] sm:$0xff]   ;;  %v3662_v34 = vld [vmem:[%s3792_s7 + $0x68] sm:$0xff]   ;;  %v3664_v36 = vld [vmem:[%s3792_s7 + $0x70] sm:$0xff]  }
  0x18   : > { %v3661_v33 = vld [vmem:[%s3792_s7 + $0x160] sm:$0xff]   ;;  %v3663_v35 = vld [vmem:[%s3792_s7 + $0x168] sm:$0xff]   ;;  %v3665_v37 = vld [vmem:[%s3792_s7 + $0x170] sm:$0xff]  }
  0x19   : > { %v3666_v38 = vld [vmem:[%s3792_s7 + $0x78] sm:$0xff]   ;;  %v3668_v40 = vld [vmem:[%s3792_s7 + $0x80] sm:$0xff]   ;;  %v3670_v42 = vld [vmem:[%s3792_s7 + $0x88] sm:$0xff]  }
  0x1a   : > { %3451 = vmatpush3.bf16.msra.mxu0 %v3631_v3  ;;  %3599 = vmatpush3.bf16.msra.mxu1 %v3631_v3  ;;  %v3667_v39 = vld [vmem:[%s3792_s7 + $0x178] sm:$0xff]   ;;  %v3669_v41 = vld [vmem:[%s3792_s7 + $0x180] sm:$0xff]   ;;  %v3671_v43 = vld [vmem:[%s3792_s7 + $0x188] sm:$0xff]  }
  0x1b   : > { %3452 = vmatprep.subr.bf16.mxu0 %v3632_v6  ;;  %3592 = vmatprep.subr.bf16.mxu1 %v3632_v6  ;;  %v3672_v44 = vld [vmem:[%s3792_s7 + $0x90] sm:$0xff]   ;;  %v3674_v46 = vld [vmem:[%s3792_s7 + $0x98] sm:$0xff]   ;;  %v3676_v48 = vld [vmem:[%s3792_s7 + $0xa0] sm:$0xff]  }
  0x1c   : > { %v3673_v45 = vld [vmem:[%s3792_s7 + $0x190] sm:$0xff]   ;;  %v3675_v47 = vld [vmem:[%s3792_s7 + $0x198] sm:$0xff]   ;;  %v3677_v49 = vld [vmem:[%s3792_s7 + $0x1a0] sm:$0xff]  }
  0x1d   : > { %v3678_v50 = vld [vmem:[%s3792_s7 + $0xa8] sm:$0xff]   ;;  %v3680_v52 = vld [vmem:[%s3792_s7 + $0xb0] sm:$0xff]   ;;  %v3682_v54 = vld [vmem:[%s3792_s7 + $0xb8] sm:$0xff]  }
  0x1e   : > { %3453 = vmatpush3.bf16.msra.mxu0 %v3632_v6  ;;  %3600 = vmatpush3.bf16.msra.mxu1 %v3632_v6  ;;  %v3679_v51 = vld [vmem:[%s3792_s7 + $0x1a8] sm:$0xff]   ;;  %v3681_v53 = vld [vmem:[%s3792_s7 + $0x1b0] sm:$0xff]   ;;  %v3683_v55 = vld [vmem:[%s3792_s7 + $0x1b8] sm:$0xff]  }
  0x1f   : > { %3454 = vmatprep.subr.bf16.mxu0 %v3633_v7  ;;  %3593 = vmatprep.subr.bf16.mxu1 %v3633_v7  ;;  %v3684_v56 = vld [vmem:[%s3792_s7 + $0xc0] sm:$0xff]   ;;  %v3686_v58 = vld [vmem:[%s3792_s7 + $0xc8] sm:$0xff]   ;;  %v3688_v60 = vld [vmem:[%s3792_s7 + $0xd0] sm:$0xff]  }
  0x20   : > { %v3685_v57 = vld [vmem:[%s3792_s7 + $0x1c0] sm:$0xff]   ;;  %v3687_v59 = vld [vmem:[%s3792_s7 + $0x1c8] sm:$0xff]   ;;  %v3689_v61 = vld [vmem:[%s3792_s7 + $0x1d0] sm:$0xff]  }
  0x21   : > { %v3690_v62 = vld [vmem:[%s3792_s7 + $0xd8] sm:$0xff]   ;;  %v3692_v0 = vld [vmem:[%s3792_s7 + $0xe0] sm:$0xff]   ;;  %v3694_v2 = vld [vmem:[%s3792_s7 + $0xe8] sm:$0xff]  }
  0x22   : > { %3455 = vmatpush3.bf16.msra.mxu0 %v3633_v7  ;;  %3601 = vmatpush3.bf16.msra.mxu1 %v3633_v7  ;;  %v3691_v63 = vld [vmem:[%s3792_s7 + $0x1d8] sm:$0xff]   ;;  %v3693_v1 = vld [vmem:[%s3792_s7 + $0x1e0] sm:$0xff]   ;;  %v3695_v3 = vld [vmem:[%s3792_s7 + $0x1e8] sm:$0xff]  }
  0x23   : > { %3456 = vmatprep.subr.bf16.mxu0 %v3634_v8  ;;  %3594 = vmatprep.subr.bf16.mxu1 %v3634_v8  ;;  %v3696_v4 = vld [vmem:[%s3792_s7 + $0xf0] sm:$0xff]   ;;  %v3698_v6 = vld [vmem:[%s3792_s7 + $0xf8] sm:$0xff]  }
  0x24   : > { %v3697_v5 = vld [vmem:[%s3792_s7 + $0x1f0] sm:$0xff]   ;;  %v3699_v7 = vld [vmem:[%s3792_s7 + $0x1f8] sm:$0xff]  }
  0x26   : > { %3457 = vmatpush3.bf16.msra.mxu0 %v3634_v8  ;;  %3602 = vmatpush3.bf16.msra.mxu1 %v3634_v8  ;;  %v3876_v8 = vld [vmem:[%s4447_s2] ss:$0 sm:$0xff] }
  0x27   : > { %3458 = vmatprep.subr.bf16.mxu0 %v3635_v9  ;;  %3595 = vmatprep.subr.bf16.mxu1 %v3635_v9 }
  0x2a   : > { %3459 = vmatpush3.bf16.msra.mxu0 %v3635_v9  ;;  %3603 = vmatpush3.bf16.msra.mxu1 %v3635_v9 }
  0x2d   : > { %3461 = vmatmul.mubr.bf16.vlgmr.msra.gmra.mxu0 %v3638_v10  ;;  %3525 = vmatmul.mubr.bf16.vlgmr.msra.gmra.mxu1 %v3639_v11 }
  0x2e   : > { %3464 = vmatprep.mubr.bf16.mxu0 %v3640_v12  ;;  %3528 = vmatprep.mubr.bf16.mxu1 %v3641_v13  ;;  %v3883_v13 = vld [vmem:[%s4448_s3] ss:$0 sm:$0xff] }
  0x35   : > { %3465 = vmatmul.mubr.bf16.gmra.mxu0 %v3642_v14  ;;  %3529 = vmatmul.mubr.bf16.gmra.mxu1 %v3643_v15 }
  0x36   : > { %3468 = vmatprep.mubr.bf16.mxu0 %v3644_v16  ;;  %3532 = vmatprep.mubr.bf16.mxu1 %v3645_v17 }
  0x3d   : > { %3469 = vmatmul.mubr.bf16.gmra.mxu0 %v3646_v18  ;;  %3533 = vmatmul.mubr.bf16.gmra.mxu1 %v3647_v19 }
  0x3e   : > { %3472 = vmatprep.mubr.bf16.mxu0 %v3648_v20  ;;  %3536 = vmatprep.mubr.bf16.mxu1 %v3649_v21  ;;  %v3890_v20 = vld [vmem:[%s4449_s4] ss:$0 sm:$0xff] }
  0x45   : > { %3473 = vmatmul.mubr.bf16.gmra.mxu0 %v3650_v22  ;;  %3537 = vmatmul.mubr.bf16.gmra.mxu1 %v3651_v23 }
  0x46   : > { %3476 = vmatprep.mubr.bf16.mxu0 %v3652_v24  ;;  %3540 = vmatprep.mubr.bf16.mxu1 %v3653_v25 }
  0x4d   : > { %3477 = vmatmul.mubr.bf16.gmra.mxu0 %v3654_v26  ;;  %3541 = vmatmul.mubr.bf16.gmra.mxu1 %v3655_v27 }
  0x4e   : > { %3480 = vmatprep.mubr.bf16.mxu0 %v3656_v28  ;;  %3544 = vmatprep.mubr.bf16.mxu1 %v3657_v29 }
  0x55   : > { %3481 = vmatmul.mubr.bf16.gmra.mxu0 %v3658_v30  ;;  %3545 = vmatmul.mubr.bf16.gmra.mxu1 %v3659_v31 }
  0x56   : > { %3484 = vmatprep.mubr.bf16.mxu0 %v3660_v32  ;;  %3548 = vmatprep.mubr.bf16.mxu1 %v3661_v33 }
  0x5d   : > { %3485 = vmatmul.mubr.bf16.gmra.mxu0 %v3662_v34  ;;  %3549 = vmatmul.mubr.bf16.gmra.mxu1 %v3663_v35 }
  0x5e   : > { %3488 = vmatprep.mubr.bf16.mxu0 %v3664_v36  ;;  %3552 = vmatprep.mubr.bf16.mxu1 %v3665_v37 }
  0x65   : > { %3489 = vmatmul.mubr.bf16.gmra.mxu0 %v3666_v38  ;;  %3553 = vmatmul.mubr.bf16.gmra.mxu1 %v3667_v39 }
  0x66   : > { %3492 = vmatprep.mubr.bf16.mxu0 %v3668_v40  ;;  %3556 = vmatprep.mubr.bf16.mxu1 %v3669_v41 }
  0x6d   : > { %3493 = vmatmul.mubr.bf16.gmra.mxu0 %v3670_v42  ;;  %3557 = vmatmul.mubr.bf16.gmra.mxu1 %v3671_v43 }
  0x6e   : > { %3496 = vmatprep.mubr.bf16.mxu0 %v3672_v44  ;;  %3560 = vmatprep.mubr.bf16.mxu1 %v3673_v45 }
  0x75   : > { %3497 = vmatmul.mubr.bf16.gmra.mxu0 %v3674_v46  ;;  %3561 = vmatmul.mubr.bf16.gmra.mxu1 %v3675_v47 }
  0x76   : > { %3500 = vmatprep.mubr.bf16.mxu0 %v3676_v48  ;;  %3564 = vmatprep.mubr.bf16.mxu1 %v3677_v49 }
  0x7d   : > { %3501 = vmatmul.mubr.bf16.gmra.mxu0 %v3678_v50  ;;  %3565 = vmatmul.mubr.bf16.gmra.mxu1 %v3679_v51 }
  0x7e   : > { %3504 = vmatprep.mubr.bf16.mxu0 %v3680_v52  ;;  %3568 = vmatprep.mubr.bf16.mxu1 %v3681_v53 }
  0x85   : > { %3505 = vmatmul.mubr.bf16.gmra.mxu0 %v3682_v54  ;;  %3569 = vmatmul.mubr.bf16.gmra.mxu1 %v3683_v55 }
  0x86   : > { %3508 = vmatprep.mubr.bf16.mxu0 %v3684_v56  ;;  %3572 = vmatprep.mubr.bf16.mxu1 %v3685_v57 }
  0x8d   : > { %3509 = vmatmul.mubr.bf16.gmra.mxu0 %v3686_v58  ;;  %3573 = vmatmul.mubr.bf16.gmra.mxu1 %v3687_v59 }
  0x8e   : > { %3512 = vmatprep.mubr.bf16.mxu0 %v3688_v60  ;;  %3576 = vmatprep.mubr.bf16.mxu1 %v3689_v61 }
  0x95   : > { %3513 = vmatmul.mubr.bf16.gmra.mxu0 %v3690_v62  ;;  %3577 = vmatmul.mubr.bf16.gmra.mxu1 %v3691_v63 }
  0x96   : > { %3516 = vmatprep.mubr.bf16.mxu0 %v3692_v0  ;;  %3580 = vmatprep.mubr.bf16.mxu1 %v3693_v1 }
  0x9d   : > { %3517 = vmatmul.mubr.bf16.gmra.mxu0 %v3694_v2  ;;  %3581 = vmatmul.mubr.bf16.gmra.mxu1 %v3695_v3 }
  0x9e   : > { %3520 = vmatprep.mubr.bf16.mxu0 %v3696_v4  ;;  %3584 = vmatprep.mubr.bf16.mxu1 %v3697_v5 }
  0xa5   : > { %3521 = vmatmul.mubr.bf16.gmra.mxu0 %v3698_v6  ;;  %3585 = vmatmul.mubr.bf16.gmra.mxu1 %v3699_v7 }
  0xed   : > { %v3462_v9 = vpop.f32.mrf.mxu0  ;;  %v3526_v10 = vpop.f32.mrf.mxu1 }
  0xee   : > { %v968_v11 = vadd.f32 %v3462_v9, %v3876_v8  ;;  %v1224_v12 = vadd.f32 %v3526_v10, %v3876_v8 }
  0xef   : > { %v959_v14 = vpop.f32.mrf.mxu0  ;;  %v1215_v15 = vpop.f32.mrf.mxu1 }
  0xf0   : > { %v1472_v16 = vmax.f32 %v968_v11, 0.0  ;;  %v1536_v17 = vmax.f32 %v1224_v12, 0.0  ;;  %v960_v18 = vadd.f32 %v3876_v8, %v959_v14  ;;  %v1216_v19 = vadd.f32 %v3876_v8, %v1215_v15 }
  0xf1   : > { %v3463_v21 = vpop.f32.mrf.mxu0  ;;  %v3527_v22 = vpop.f32.mrf.mxu1 }
  0xf2   : > { %v1607_v23 = vmul.f32 %v3883_v13, %v1472_v16  ;;  %v1671_v24 = vmul.f32 %v3883_v13, %v1536_v17  ;;  %v1470_v25 = vmax.f32 %v960_v18, 0.0  ;;  %v1534_v26 = vmax.f32 %v1216_v19, 0.0 }
  0xf3   : > { %v971_v27 = vadd.f32 %v3463_v21, %v3876_v8  ;;  %v1227_v28 = vadd.f32 %v3527_v22, %v3876_v8  ;;  %v962_v29 = vpop.f32.mrf.mxu0  ;;  %v1218_v30 = vpop.f32.mrf.mxu1 }
  0xf4   : > { %v1742_v31 = vadd.f32 %v3890_v20, %v1607_v23  ;;  %v1806_v32 = vadd.f32 %v3890_v20, %v1671_v24  ;;  %v963_v35 = vadd.f32 %v3876_v8, %v962_v29  ;;  %v1219_v36 = vadd.f32 %v3876_v8, %v1218_v30 }
  0xf5   : > { %v1473_v33 = vmax.f32 %v971_v27, 0.0  ;;  %v1537_v34 = vmax.f32 %v1227_v28, 0.0  ;;  %v3466_v37 = vpop.f32.mrf.mxu0  ;;  %v3530_v38 = vpop.f32.mrf.mxu1  ;;  %v1605_v39 = vmul.f32 %v3883_v13, %v1470_v25  ;;  %v1669_v40 = vmul.f32 %v3883_v13, %v1534_v26 }
  0xf6   : > { %v984_v41 = vadd.f32 %v3466_v37, %v3876_v8  ;;  %v1240_v42 = vadd.f32 %v3530_v38, %v3876_v8  ;;  %v1471_v45 = vmax.f32 %v963_v35, 0.0  ;;  %v1535_v46 = vmax.f32 %v1219_v36, 0.0 }
  0xf7   : > { %v1608_v43 = vmul.f32 %v3883_v13, %v1473_v33  ;;  %v1672_v44 = vmul.f32 %v3883_v13, %v1537_v34  ;;  %v975_v47 = vpop.f32.mrf.mxu0  ;;  %v1231_v48 = vpop.f32.mrf.mxu1  ;;  %v1740_v59 = vadd.f32 %v3890_v20, %v1605_v39  ;;  %v1804_v60 = vadd.f32 %v3890_v20, %v1669_v40 }
  0xf8   : > { %v1476_v49 = vmax.f32 %v984_v41, 0.0  ;;  %v1540_v50 = vmax.f32 %v1240_v42, 0.0  ;;  %v976_v51 = vadd.f32 %v3876_v8, %v975_v47  ;;  %v1232_v52 = vadd.f32 %v3876_v8, %v1231_v48 }
  0xf9   : > { %v1743_v53 = vadd.f32 %v3890_v20, %v1608_v43  ;;  %v1807_v54 = vadd.f32 %v3890_v20, %v1672_v44  ;;  %v1606_v55 = vmul.f32 %v3883_v13, %v1471_v45  ;;  %v1670_v56 = vmul.f32 %v3883_v13, %v1535_v46  ;;  %v3467_v57 = vpop.f32.mrf.mxu0  ;;  %v3531_v58 = vpop.f32.mrf.mxu1 }
  0xfa   : > { %v1474_v61 = vmax.f32 %v976_v51, 0.0  ;;  %v1538_v62 = vmax.f32 %v1232_v52, 0.0  ;;  %v1611_v5 = vmul.f32 %v3883_v13, %v1476_v49  ;;  %v1675_v6 = vmul.f32 %v3883_v13, %v1540_v50 }
  0xfb   : > { %v2997_v63 = vpack.c.bf16 %v1743_v53, %v1742_v31  ;;  %v3157_v0 = vpack.c.bf16 %v1807_v54, %v1806_v32  ;;  %v1741_v1 = vadd.f32 %v3890_v20, %v1606_v55  ;;  %v1805_v2 = vadd.f32 %v3890_v20, %v1670_v56  ;;  %v978_v3 = vpop.f32.mrf.mxu0  ;;  %v1234_v4 = vpop.f32.mrf.mxu1 }
  0xfc   : > { %v987_v10 = vadd.f32 %v3467_v57, %v3876_v8  ;;  %v1243_v11 = vadd.f32 %v3531_v58, %v3876_v8  ;;  %v1609_v15 = vmul.f32 %v3883_v13, %v1474_v61  ;;  %v1673_v16 = vmul.f32 %v3883_v13, %v1538_v62 }
  0xfd   : > { %3309 = vst [vmem:[%s3919_s6 + $0x8] sm:$0xff] %v2997_v63   ;;  %3341 = vst [vmem:[%s3919_s6 + $0x108] sm:$0xff] %v3157_v0   ;;  %v2992_v7 = vpack.c.bf16 %v1741_v1, %v1740_v59  ;;  %v3152_v9 = vpack.c.bf16 %v1805_v2, %v1804_v60  ;;  %v3470_v12 = vpop.f32.mrf.mxu0  ;;  %v3534_v14 = vpop.f32.mrf.mxu1  ;;  %v979_v17 = vadd.f32 %v3876_v8, %v978_v3 }
  0xfe   : > { %v1235_v18 = vadd.f32 %v3876_v8, %v1234_v4  ;;  %v1477_v19 = vmax.f32 %v987_v10, 0.0  ;;  %v1541_v21 = vmax.f32 %v1243_v11, 0.0  ;;  %v1000_v22 = vadd.f32 %v3470_v12, %v3876_v8 }
  0xff   : > { %2993 = vst [vmem:[%s3919_s6] sm:$0xff] %v2992_v7   ;;  %3340 = vst [vmem:[%s3919_s6 + $0x100] sm:$0xff] %v3152_v9   ;;  %v1256_v23 = vadd.f32 %v3534_v14, %v3876_v8  ;;  %v991_v24 = vpop.f32.mrf.mxu0  ;;  %v1247_v25 = vpop.f32.mrf.mxu1  ;;  %v1475_v26 = vmax.f32 %v979_v17, 0.0  ;;  %v1746_v40 = vadd.f32 %v3890_v20, %v1611_v5  ;;  %v1810_v41 = vadd.f32 %v3890_v20, %v1675_v6 }
 0x100   : > { %v1539_v27 = vmax.f32 %v1235_v18, 0.0  ;;  %v992_v28 = vadd.f32 %v3876_v8, %v991_v24  ;;  %v1248_v29 = vadd.f32 %v3876_v8, %v1247_v25  ;;  %v1612_v30 = vmul.f32 %v3883_v13, %v1477_v19 }
 0x101   : > { %v1676_v31 = vmul.f32 %v3883_v13, %v1541_v21  ;;  %v1480_v32 = vmax.f32 %v1000_v22, 0.0  ;;  %v1544_v33 = vmax.f32 %v1256_v23, 0.0  ;;  %v3471_v34 = vpop.f32.mrf.mxu0  ;;  %v3535_v35 = vpop.f32.mrf.mxu1  ;;  %v1610_v36 = vmul.f32 %v3883_v13, %v1475_v26 }
 0x102   : > { %v1674_v37 = vmul.f32 %v3883_v13, %v1539_v27  ;;  %v1478_v38 = vmax.f32 %v992_v28, 0.0  ;;  %v1542_v39 = vmax.f32 %v1248_v29, 0.0  ;;  %v1747_v42 = vadd.f32 %v3890_v20, %v1612_v30 }
 0x103   : > { %v1811_v43 = vadd.f32 %v3890_v20, %v1676_v31  ;;  %v994_v44 = vpop.f32.mrf.mxu0  ;;  %v1250_v45 = vpop.f32.mrf.mxu1  ;;  %v1744_v46 = vadd.f32 %v3890_v20, %v1609_v15  ;;  %v1808_v47 = vadd.f32 %v3890_v20, %v1673_v16  ;;  %v1745_v48 = vadd.f32 %v3890_v20, %v1610_v36 }
 0x104   : > { %v1809_v49 = vadd.f32 %v3890_v20, %v1674_v37  ;;  %v3007_v50 = vpack.c.bf16 %v1747_v42, %v1746_v40  ;;  %v1615_v52 = vmul.f32 %v3883_v13, %v1480_v32  ;;  %v1679_v53 = vmul.f32 %v3883_v13, %v1544_v33 }
 0x105   : > { %v3167_v51 = vpack.c.bf16 %v1811_v43, %v1810_v41  ;;  %v3474_v54 = vpop.f32.mrf.mxu0  ;;  %v3538_v55 = vpop.f32.mrf.mxu1  ;;  %v3002_v56 = vpack.c.bf16 %v1745_v48, %v1744_v46  ;;  %v1613_v58 = vmul.f32 %v3883_v13, %v1478_v38  ;;  %v1677_v59 = vmul.f32 %v3883_v13, %v1542_v39 }
 0x106   : > { %v3162_v57 = vpack.c.bf16 %v1809_v49, %v1808_v47  ;;  %3311 = vst [vmem:[%s3919_s6 + $0x18] sm:$0xff] %v3007_v50   ;;  %v1003_v60 = vadd.f32 %v3471_v34, %v3876_v8  ;;  %v1259_v61 = vadd.f32 %v3535_v35, %v3876_v8  ;;  %v995_v62 = vadd.f32 %v3876_v8, %v994_v44 }
 0x107   : > { %3343 = vst [vmem:[%s3919_s6 + $0x118] sm:$0xff] %v3167_v51   ;;  %v1251_v63 = vadd.f32 %v3876_v8, %v1250_v45  ;;  %v1007_v0 = vpop.f32.mrf.mxu0  ;;  %v1263_v1 = vpop.f32.mrf.mxu1  ;;  %3310 = vst [vmem:[%s3919_s6 + $0x10] sm:$0xff] %v3002_v56   ;;  %v1016_v2 = vadd.f32 %v3474_v54, %v3876_v8  ;;  %v1272_v3 = vadd.f32 %v3538_v55, %v3876_v8 }
 0x108   : > { %3342 = vst [vmem:[%s3919_s6 + $0x110] sm:$0xff] %v3162_v57   ;;  %v1008_v4 = vadd.f32 %v3876_v8, %v1007_v0  ;;  %v1264_v5 = vadd.f32 %v3876_v8, %v1263_v1  ;;  %v1481_v6 = vmax.f32 %v1003_v60, 0.0  ;;  %v1545_v7 = vmax.f32 %v1259_v61, 0.0 }
 0x109   : > { %v1479_v9 = vmax.f32 %v995_v62, 0.0  ;;  %v1543_v10 = vmax.f32 %v1251_v63, 0.0  ;;  %v3475_v11 = vpop.f32.mrf.mxu0  ;;  %v3539_v12 = vpop.f32.mrf.mxu1  ;;  %v1484_v14 = vmax.f32 %v1016_v2, 0.0  ;;  %v1548_v15 = vmax.f32 %v1272_v3, 0.0 }
 0x10a   : > { %v1482_v16 = vmax.f32 %v1008_v4, 0.0  ;;  %v1546_v17 = vmax.f32 %v1264_v5, 0.0  ;;  %v1616_v18 = vmul.f32 %v3883_v13, %v1481_v6  ;;  %v1680_v19 = vmul.f32 %v3883_v13, %v1545_v7 }
 0x10b   : > { %v1614_v21 = vmul.f32 %v3883_v13, %v1479_v9  ;;  %v1678_v22 = vmul.f32 %v3883_v13, %v1543_v10  ;;  %v1010_v23 = vpop.f32.mrf.mxu0  ;;  %v1266_v24 = vpop.f32.mrf.mxu1  ;;  %v1750_v25 = vadd.f32 %v3890_v20, %v1615_v52  ;;  %v1814_v26 = vadd.f32 %v3890_v20, %v1679_v53 }
 0x10c   : > { %v1748_v27 = vadd.f32 %v3890_v20, %v1613_v58  ;;  %v1812_v28 = vadd.f32 %v3890_v20, %v1677_v59  ;;  %v1751_v29 = vadd.f32 %v3890_v20, %v1616_v18  ;;  %v1815_v30 = vadd.f32 %v3890_v20, %v1680_v19 }
 0x10d   : > { %v1749_v31 = vadd.f32 %v3890_v20, %v1614_v21  ;;  %v1813_v32 = vadd.f32 %v3890_v20, %v1678_v22  ;;  %v3478_v33 = vpop.f32.mrf.mxu0  ;;  %v3542_v34 = vpop.f32.mrf.mxu1  ;;  %v1619_v35 = vmul.f32 %v3883_v13, %v1484_v14  ;;  %v1683_v36 = vmul.f32 %v3883_v13, %v1548_v15 }
 0x10e   : > { %v1617_v37 = vmul.f32 %v3883_v13, %v1482_v16  ;;  %v1681_v38 = vmul.f32 %v3883_v13, %v1546_v17  ;;  %v3017_v39 = vpack.c.bf16 %v1751_v29, %v1750_v25  ;;  %v3177_v40 = vpack.c.bf16 %v1815_v30, %v1814_v26 }
 0x10f   : > { %v3012_v41 = vpack.c.bf16 %v1749_v31, %v1748_v27  ;;  %v3172_v42 = vpack.c.bf16 %v1813_v32, %v1812_v28  ;;  %v1023_v43 = vpop.f32.mrf.mxu0  ;;  %v1279_v44 = vpop.f32.mrf.mxu1  ;;  %v1019_v45 = vadd.f32 %v3475_v11, %v3876_v8  ;;  %v1275_v46 = vadd.f32 %v3539_v12, %v3876_v8 }
 0x110   : > { %v1011_v47 = vadd.f32 %v3876_v8, %v1010_v23  ;;  %v1267_v48 = vadd.f32 %v3876_v8, %v1266_v24  ;;  %3313 = vst [vmem:[%s3919_s6 + $0x28] sm:$0xff] %v3017_v39   ;;  %3345 = vst [vmem:[%s3919_s6 + $0x128] sm:$0xff] %v3177_v40   ;;  %v1032_v49 = vadd.f32 %v3478_v33, %v3876_v8 }
 0x111   : > { %3312 = vst [vmem:[%s3919_s6 + $0x20] sm:$0xff] %v3012_v41   ;;  %3344 = vst [vmem:[%s3919_s6 + $0x120] sm:$0xff] %v3172_v42   ;;  %v1288_v50 = vadd.f32 %v3542_v34, %v3876_v8  ;;  %v1024_v51 = vadd.f32 %v3876_v8, %v1023_v43  ;;  %v1280_v52 = vadd.f32 %v3876_v8, %v1279_v44  ;;  %v3479_v53 = vpop.f32.mrf.mxu0  ;;  %v3543_v54 = vpop.f32.mrf.mxu1  ;;  %v1485_v55 = vmax.f32 %v1019_v45, 0.0 }
 0x112   : > { %v1549_v56 = vmax.f32 %v1275_v46, 0.0  ;;  %v1483_v57 = vmax.f32 %v1011_v47, 0.0  ;;  %v1547_v58 = vmax.f32 %v1267_v48, 0.0  ;;  %v1488_v59 = vmax.f32 %v1032_v49, 0.0 }
 0x113   : > { %v1552_v60 = vmax.f32 %v1288_v50, 0.0  ;;  %v1486_v61 = vmax.f32 %v1024_v51, 0.0  ;;  %v1550_v62 = vmax.f32 %v1280_v52, 0.0  ;;  %v1026_v63 = vpop.f32.mrf.mxu0  ;;  %v1282_v0 = vpop.f32.mrf.mxu1  ;;  %v1620_v1 = vmul.f32 %v3883_v13, %v1485_v55 }
 0x114   : > { %v1684_v2 = vmul.f32 %v3883_v13, %v1549_v56  ;;  %v1618_v3 = vmul.f32 %v3883_v13, %v1483_v57  ;;  %v1682_v4 = vmul.f32 %v3883_v13, %v1547_v58  ;;  %v1754_v5 = vadd.f32 %v3890_v20, %v1619_v35 }
 0x115   : > { %v1818_v6 = vadd.f32 %v3890_v20, %v1683_v36  ;;  %v1752_v7 = vadd.f32 %v3890_v20, %v1617_v37  ;;  %v1816_v9 = vadd.f32 %v3890_v20, %v1681_v38  ;;  %v3482_v10 = vpop.f32.mrf.mxu0  ;;  %v3546_v11 = vpop.f32.mrf.mxu1  ;;  %v1755_v12 = vadd.f32 %v3890_v20, %v1620_v1 }
 0x116   : > { %v1819_v14 = vadd.f32 %v3890_v20, %v1684_v2  ;;  %v1753_v15 = vadd.f32 %v3890_v20, %v1618_v3  ;;  %v1817_v16 = vadd.f32 %v3890_v20, %v1682_v4  ;;  %v1623_v17 = vmul.f32 %v3883_v13, %v1488_v59 }
 0x117   : > { %v1687_v18 = vmul.f32 %v3883_v13, %v1552_v60  ;;  %v1621_v19 = vmul.f32 %v3883_v13, %v1486_v61  ;;  %v1685_v21 = vmul.f32 %v3883_v13, %v1550_v62  ;;  %v1039_v22 = vpop.f32.mrf.mxu0  ;;  %v1295_v23 = vpop.f32.mrf.mxu1  ;;  %v3027_v24 = vpack.c.bf16 %v1755_v12, %v1754_v5 }
 0x118   : > { %v3187_v25 = vpack.c.bf16 %v1819_v14, %v1818_v6  ;;  %v3022_v26 = vpack.c.bf16 %v1753_v15, %v1752_v7  ;;  %v3182_v27 = vpack.c.bf16 %v1817_v16, %v1816_v9  ;;  %v1035_v28 = vadd.f32 %v3479_v53, %v3876_v8 }
 0x119   : > { %v1291_v29 = vadd.f32 %v3543_v54, %v3876_v8  ;;  %v1027_v30 = vadd.f32 %v3876_v8, %v1026_v63  ;;  %v1283_v31 = vadd.f32 %v3876_v8, %v1282_v0  ;;  %v3483_v32 = vpop.f32.mrf.mxu0  ;;  %v3547_v33 = vpop.f32.mrf.mxu1  ;;  %3315 = vst [vmem:[%s3919_s6 + $0x38] sm:$0xff] %v3027_v24   ;;  %v1048_v34 = vadd.f32 %v3482_v10, %v3876_v8 }
 0x11a   : > { %3347 = vst [vmem:[%s3919_s6 + $0x138] sm:$0xff] %v3187_v25   ;;  %3314 = vst [vmem:[%s3919_s6 + $0x30] sm:$0xff] %v3022_v26   ;;  %v1304_v35 = vadd.f32 %v3546_v11, %v3876_v8  ;;  %v1040_v36 = vadd.f32 %v3876_v8, %v1039_v22  ;;  %v1296_v37 = vadd.f32 %v3876_v8, %v1295_v23  ;;  %v1489_v38 = vmax.f32 %v1035_v28, 0.0 }
 0x11b   : > { %3346 = vst [vmem:[%s3919_s6 + $0x130] sm:$0xff] %v3182_v27   ;;  %v1553_v39 = vmax.f32 %v1291_v29, 0.0  ;;  %v1487_v40 = vmax.f32 %v1027_v30, 0.0  ;;  %v1551_v41 = vmax.f32 %v1283_v31, 0.0  ;;  %v1042_v42 = vpop.f32.mrf.mxu0  ;;  %v1298_v43 = vpop.f32.mrf.mxu1  ;;  %v1492_v44 = vmax.f32 %v1048_v34, 0.0 }
 0x11c   : > { %v1556_v45 = vmax.f32 %v1304_v35, 0.0  ;;  %v1490_v46 = vmax.f32 %v1040_v36, 0.0  ;;  %v1554_v47 = vmax.f32 %v1296_v37, 0.0  ;;  %v1624_v48 = vmul.f32 %v3883_v13, %v1489_v38 }
 0x11d   : > { %v1688_v49 = vmul.f32 %v3883_v13, %v1553_v39  ;;  %v1622_v50 = vmul.f32 %v3883_v13, %v1487_v40  ;;  %v1686_v51 = vmul.f32 %v3883_v13, %v1551_v41  ;;  %v3486_v52 = vpop.f32.mrf.mxu0  ;;  %v3550_v53 = vpop.f32.mrf.mxu1  ;;  %v1758_v54 = vadd.f32 %v3890_v20, %v1623_v17 }
 0x11e   : > { %v1822_v55 = vadd.f32 %v3890_v20, %v1687_v18  ;;  %v1756_v56 = vadd.f32 %v3890_v20, %v1621_v19  ;;  %v1820_v57 = vadd.f32 %v3890_v20, %v1685_v21  ;;  %v1759_v58 = vadd.f32 %v3890_v20, %v1624_v48 }
 0x11f   : > { %v1823_v59 = vadd.f32 %v3890_v20, %v1688_v49  ;;  %v1757_v60 = vadd.f32 %v3890_v20, %v1622_v50  ;;  %v1821_v61 = vadd.f32 %v3890_v20, %v1686_v51  ;;  %v1055_v62 = vpop.f32.mrf.mxu0  ;;  %v1311_v63 = vpop.f32.mrf.mxu1  ;;  %v1627_v0 = vmul.f32 %v3883_v13, %v1492_v44 }
 0x120   : > { %v1691_v1 = vmul.f32 %v3883_v13, %v1556_v45  ;;  %v1625_v2 = vmul.f32 %v3883_v13, %v1490_v46  ;;  %v1689_v3 = vmul.f32 %v3883_v13, %v1554_v47  ;;  %v3037_v4 = vpack.c.bf16 %v1759_v58, %v1758_v54 }
 0x121   : > { %v3197_v5 = vpack.c.bf16 %v1823_v59, %v1822_v55  ;;  %v3032_v6 = vpack.c.bf16 %v1757_v60, %v1756_v56  ;;  %v3192_v7 = vpack.c.bf16 %v1821_v61, %v1820_v57  ;;  %v3487_v9 = vpop.f32.mrf.mxu0  ;;  %v3551_v10 = vpop.f32.mrf.mxu1  ;;  %v1051_v11 = vadd.f32 %v3483_v32, %v3876_v8 }
 0x122   : > { %v1307_v12 = vadd.f32 %v3547_v33, %v3876_v8  ;;  %v1043_v14 = vadd.f32 %v3876_v8, %v1042_v42  ;;  %v1299_v15 = vadd.f32 %v3876_v8, %v1298_v43  ;;  %3317 = vst [vmem:[%s3919_s6 + $0x48] sm:$0xff] %v3037_v4   ;;  %v1064_v16 = vadd.f32 %v3486_v52, %v3876_v8 }
 0x123   : > { %3349 = vst [vmem:[%s3919_s6 + $0x148] sm:$0xff] %v3197_v5   ;;  %3316 = vst [vmem:[%s3919_s6 + $0x40] sm:$0xff] %v3032_v6   ;;  %v1320_v17 = vadd.f32 %v3550_v53, %v3876_v8  ;;  %v1056_v18 = vadd.f32 %v3876_v8, %v1055_v62  ;;  %v1312_v19 = vadd.f32 %v3876_v8, %v1311_v63  ;;  %v1058_v21 = vpop.f32.mrf.mxu0  ;;  %v1314_v22 = vpop.f32.mrf.mxu1  ;;  %v1493_v23 = vmax.f32 %v1051_v11, 0.0 }
 0x124   : > { %3348 = vst [vmem:[%s3919_s6 + $0x140] sm:$0xff] %v3192_v7   ;;  %v1557_v24 = vmax.f32 %v1307_v12, 0.0  ;;  %v1491_v25 = vmax.f32 %v1043_v14, 0.0  ;;  %v1555_v26 = vmax.f32 %v1299_v15, 0.0  ;;  %v1496_v27 = vmax.f32 %v1064_v16, 0.0 }
 0x125   : > { %v1560_v28 = vmax.f32 %v1320_v17, 0.0  ;;  %v1494_v29 = vmax.f32 %v1056_v18, 0.0  ;;  %v1558_v30 = vmax.f32 %v1312_v19, 0.0  ;;  %v3490_v31 = vpop.f32.mrf.mxu0  ;;  %v3554_v32 = vpop.f32.mrf.mxu1  ;;  %v1628_v33 = vmul.f32 %v3883_v13, %v1493_v23 }
 0x126   : > { %v1692_v34 = vmul.f32 %v3883_v13, %v1557_v24  ;;  %v1626_v35 = vmul.f32 %v3883_v13, %v1491_v25  ;;  %v1690_v36 = vmul.f32 %v3883_v13, %v1555_v26  ;;  %v1762_v37 = vadd.f32 %v3890_v20, %v1627_v0 }
 0x127   : > { %v1826_v38 = vadd.f32 %v3890_v20, %v1691_v1  ;;  %v1760_v39 = vadd.f32 %v3890_v20, %v1625_v2  ;;  %v1824_v40 = vadd.f32 %v3890_v20, %v1689_v3  ;;  %v1071_v41 = vpop.f32.mrf.mxu0  ;;  %v1327_v42 = vpop.f32.mrf.mxu1  ;;  %v1763_v43 = vadd.f32 %v3890_v20, %v1628_v33 }
 0x128   : > { %v1827_v44 = vadd.f32 %v3890_v20, %v1692_v34  ;;  %v1761_v45 = vadd.f32 %v3890_v20, %v1626_v35  ;;  %v1825_v46 = vadd.f32 %v3890_v20, %v1690_v36  ;;  %v1631_v47 = vmul.f32 %v3883_v13, %v1496_v27 }
 0x129   : > { %v1695_v48 = vmul.f32 %v3883_v13, %v1560_v28  ;;  %v1629_v49 = vmul.f32 %v3883_v13, %v1494_v29  ;;  %v1693_v50 = vmul.f32 %v3883_v13, %v1558_v30  ;;  %v3491_v51 = vpop.f32.mrf.mxu0  ;;  %v3555_v52 = vpop.f32.mrf.mxu1  ;;  %v3047_v53 = vpack.c.bf16 %v1763_v43, %v1762_v37 }
 0x12a   : > { %v3207_v54 = vpack.c.bf16 %v1827_v44, %v1826_v38  ;;  %v3042_v55 = vpack.c.bf16 %v1761_v45, %v1760_v39  ;;  %v3202_v56 = vpack.c.bf16 %v1825_v46, %v1824_v40  ;;  %v1067_v57 = vadd.f32 %v3487_v9, %v3876_v8 }
 0x12b   : > { %v1323_v58 = vadd.f32 %v3551_v10, %v3876_v8  ;;  %v1059_v59 = vadd.f32 %v3876_v8, %v1058_v21  ;;  %v1315_v60 = vadd.f32 %v3876_v8, %v1314_v22  ;;  %v1074_v61 = vpop.f32.mrf.mxu0  ;;  %v1330_v62 = vpop.f32.mrf.mxu1  ;;  %3319 = vst [vmem:[%s3919_s6 + $0x58] sm:$0xff] %v3047_v53   ;;  %v1080_v63 = vadd.f32 %v3490_v31, %v3876_v8 }
 0x12c   : > { %3351 = vst [vmem:[%s3919_s6 + $0x158] sm:$0xff] %v3207_v54   ;;  %3318 = vst [vmem:[%s3919_s6 + $0x50] sm:$0xff] %v3042_v55   ;;  %v1336_v0 = vadd.f32 %v3554_v32, %v3876_v8  ;;  %v1072_v1 = vadd.f32 %v3876_v8, %v1071_v41  ;;  %v1328_v2 = vadd.f32 %v3876_v8, %v1327_v42  ;;  %v1497_v3 = vmax.f32 %v1067_v57, 0.0 }
 0x12d   : > { %3350 = vst [vmem:[%s3919_s6 + $0x150] sm:$0xff] %v3202_v56   ;;  %v1561_v4 = vmax.f32 %v1323_v58, 0.0  ;;  %v1495_v5 = vmax.f32 %v1059_v59, 0.0  ;;  %v1559_v6 = vmax.f32 %v1315_v60, 0.0  ;;  %v3494_v7 = vpop.f32.mrf.mxu0  ;;  %v3558_v9 = vpop.f32.mrf.mxu1  ;;  %v1500_v10 = vmax.f32 %v1080_v63, 0.0 }
 0x12e   : > { %v1564_v11 = vmax.f32 %v1336_v0, 0.0  ;;  %v1498_v12 = vmax.f32 %v1072_v1, 0.0  ;;  %v1562_v14 = vmax.f32 %v1328_v2, 0.0  ;;  %v1632_v15 = vmul.f32 %v3883_v13, %v1497_v3 }
 0x12f   : > { %v1696_v16 = vmul.f32 %v3883_v13, %v1561_v4  ;;  %v1630_v17 = vmul.f32 %v3883_v13, %v1495_v5  ;;  %v1694_v18 = vmul.f32 %v3883_v13, %v1559_v6  ;;  %v1087_v19 = vpop.f32.mrf.mxu0  ;;  %v1343_v21 = vpop.f32.mrf.mxu1  ;;  %v1766_v22 = vadd.f32 %v3890_v20, %v1631_v47 }
 0x130   : > { %v1830_v23 = vadd.f32 %v3890_v20, %v1695_v48  ;;  %v1764_v24 = vadd.f32 %v3890_v20, %v1629_v49  ;;  %v1828_v25 = vadd.f32 %v3890_v20, %v1693_v50  ;;  %v1767_v26 = vadd.f32 %v3890_v20, %v1632_v15 }
 0x131   : > { %v1831_v27 = vadd.f32 %v3890_v20, %v1696_v16  ;;  %v1765_v28 = vadd.f32 %v3890_v20, %v1630_v17  ;;  %v1829_v29 = vadd.f32 %v3890_v20, %v1694_v18  ;;  %v3495_v30 = vpop.f32.mrf.mxu0  ;;  %v3559_v31 = vpop.f32.mrf.mxu1  ;;  %v1635_v32 = vmul.f32 %v3883_v13, %v1500_v10 }
 0x132   : > { %v1699_v33 = vmul.f32 %v3883_v13, %v1564_v11  ;;  %v1633_v34 = vmul.f32 %v3883_v13, %v1498_v12  ;;  %v1697_v35 = vmul.f32 %v3883_v13, %v1562_v14  ;;  %v3057_v36 = vpack.c.bf16 %v1767_v26, %v1766_v22 }
 0x133   : > { %v3217_v37 = vpack.c.bf16 %v1831_v27, %v1830_v23  ;;  %v3052_v38 = vpack.c.bf16 %v1765_v28, %v1764_v24  ;;  %v3212_v39 = vpack.c.bf16 %v1829_v29, %v1828_v25  ;;  %v1090_v40 = vpop.f32.mrf.mxu0  ;;  %v1346_v41 = vpop.f32.mrf.mxu1  ;;  %v1083_v42 = vadd.f32 %v3491_v51, %v3876_v8 }
 0x134   : > { %v1339_v43 = vadd.f32 %v3555_v52, %v3876_v8  ;;  %v1075_v44 = vadd.f32 %v3876_v8, %v1074_v61  ;;  %v1331_v45 = vadd.f32 %v3876_v8, %v1330_v62  ;;  %3321 = vst [vmem:[%s3919_s6 + $0x68] sm:$0xff] %v3057_v36   ;;  %v1096_v46 = vadd.f32 %v3494_v7, %v3876_v8 }
 0x135   : > { %3353 = vst [vmem:[%s3919_s6 + $0x168] sm:$0xff] %v3217_v37   ;;  %3320 = vst [vmem:[%s3919_s6 + $0x60] sm:$0xff] %v3052_v38   ;;  %v1352_v47 = vadd.f32 %v3558_v9, %v3876_v8  ;;  %v1088_v48 = vadd.f32 %v3876_v8, %v1087_v19  ;;  %v1344_v49 = vadd.f32 %v3876_v8, %v1343_v21  ;;  %v3498_v50 = vpop.f32.mrf.mxu0  ;;  %v3562_v51 = vpop.f32.mrf.mxu1  ;;  %v1501_v53 = vmax.f32 %v1083_v42, 0.0 }
 0x136   : > { %3352 = vst [vmem:[%s3919_s6 + $0x160] sm:$0xff] %v3212_v39   ;;  %v1565_v52 = vmax.f32 %v1339_v43, 0.0  ;;  %v1499_v54 = vmax.f32 %v1075_v44, 0.0  ;;  %v1563_v55 = vmax.f32 %v1331_v45, 0.0  ;;  %v1504_v56 = vmax.f32 %v1096_v46, 0.0 }
 0x137   : > { %v1568_v57 = vmax.f32 %v1352_v47, 0.0  ;;  %v1502_v58 = vmax.f32 %v1088_v48, 0.0  ;;  %v1566_v59 = vmax.f32 %v1344_v49, 0.0  ;;  %v1103_v60 = vpop.f32.mrf.mxu0  ;;  %v1359_v61 = vpop.f32.mrf.mxu1  ;;  %v1636_v62 = vmul.f32 %v3883_v13, %v1501_v53 }
 0x138   : > { %v1700_v63 = vmul.f32 %v3883_v13, %v1565_v52  ;;  %v1634_v0 = vmul.f32 %v3883_v13, %v1499_v54  ;;  %v1698_v1 = vmul.f32 %v3883_v13, %v1563_v55  ;;  %v1770_v2 = vadd.f32 %v3890_v20, %v1635_v32 }
 0x139   : > { %v1834_v3 = vadd.f32 %v3890_v20, %v1699_v33  ;;  %v1768_v4 = vadd.f32 %v3890_v20, %v1633_v34  ;;  %v1832_v5 = vadd.f32 %v3890_v20, %v1697_v35  ;;  %v4115_v6 = vpop.f32.mrf.mxu0  ;;  %v4117_v7 = vpop.f32.mrf.mxu1  ;;  %v1771_v9 = vadd.f32 %v3890_v20, %v1636_v62 }
 0x13a   : > { %v1835_v10 = vadd.f32 %v3890_v20, %v1700_v63  ;;  %v1769_v11 = vadd.f32 %v3890_v20, %v1634_v0  ;;  %v1833_v12 = vadd.f32 %v3890_v20, %v1698_v1  ;;  %v1639_v14 = vmul.f32 %v3883_v13, %v1504_v56 }
 0x13b   : > { %v1703_v15 = vmul.f32 %v3883_v13, %v1568_v57  ;;  %v1637_v16 = vmul.f32 %v3883_v13, %v1502_v58  ;;  %v1701_v17 = vmul.f32 %v3883_v13, %v1566_v59  ;;  %v1106_v18 = vpop.f32.mrf.mxu0  ;;  %v1362_v19 = vpop.f32.mrf.mxu1  ;;  %v3067_v21 = vpack.c.bf16 %v1771_v9, %v1770_v2 }
 0x13c   : > { %v3227_v22 = vpack.c.bf16 %v1835_v10, %v1834_v3  ;;  %v3062_v23 = vpack.c.bf16 %v1769_v11, %v1768_v4  ;;  %v3222_v24 = vpack.c.bf16 %v1833_v12, %v1832_v5  ;;  %v1099_v25 = vadd.f32 %v3495_v30, %v3876_v8 }
 0x13d   : > { %v1355_v26 = vadd.f32 %v3559_v31, %v3876_v8  ;;  %v1091_v27 = vadd.f32 %v3876_v8, %v1090_v40  ;;  %v1347_v28 = vadd.f32 %v3876_v8, %v1346_v41  ;;  %v3502_v29 = vpop.f32.mrf.mxu0  ;;  %v3566_v32 = vpop.f32.mrf.mxu1  ;;  %3323 = vst [vmem:[%s3919_s6 + $0x78] sm:$0xff] %v3067_v21   ;;  %v1112_v33 = vadd.f32 %v3498_v50, %v3876_v8 }
 0x13e   : > { %3355 = vst [vmem:[%s3919_s6 + $0x178] sm:$0xff] %v3227_v22   ;;  %3322 = vst [vmem:[%s3919_s6 + $0x70] sm:$0xff] %v3062_v23   ;;  %v1368_v34 = vadd.f32 %v3562_v51, %v3876_v8  ;;  %v1104_v35 = vadd.f32 %v3876_v8, %v1103_v60  ;;  %v1360_v30 = vadd.f32 %v3876_v8, %v1359_v61  ;;  %v1505_v36 = vmax.f32 %v1099_v25, 0.0 }
 0x13f   : > { %3354 = vst [vmem:[%s3919_s6 + $0x170] sm:$0xff] %v3222_v24   ;;  %v1569_v31 = vmax.f32 %v1355_v26, 0.0  ;;  %v1503_v37 = vmax.f32 %v1091_v27, 0.0  ;;  %v1567_v38 = vmax.f32 %v1347_v28, 0.0  ;;  %v1119_v39 = vpop.f32.mrf.mxu0  ;;  %v1375_v40 = vpop.f32.mrf.mxu1  ;;  %v1508_v41 = vmax.f32 %v1112_v33, 0.0 }
 0x140   : > { %v1572_v42 = vmax.f32 %v1368_v34, 0.0  ;;  %v1506_v43 = vmax.f32 %v1104_v35, 0.0  ;;  %v1570_v44 = vmax.f32 %v1360_v30, 0.0  ;;  %v1640_v45 = vmul.f32 %v3883_v13, %v1505_v36 }
 0x141   : > { %v1704_v46 = vmul.f32 %v3883_v13, %v1569_v31  ;;  %v1638_v47 = vmul.f32 %v3883_v13, %v1503_v37  ;;  %v1702_v48 = vmul.f32 %v3883_v13, %v1567_v38  ;;  %v4143_v49 = vpop.f32.mrf.mxu0  ;;  %v4145_v50 = vpop.f32.mrf.mxu1  ;;  %v1774_v51 = vadd.f32 %v3890_v20, %v1639_v14 }
 0x142   : > { %v1838_v53 = vadd.f32 %v3890_v20, %v1703_v15  ;;  %v1772_v52 = vadd.f32 %v3890_v20, %v1637_v16  ;;  %v1836_v54 = vadd.f32 %v3890_v20, %v1701_v17  ;;  %v1775_v55 = vadd.f32 %v3890_v20, %v1640_v45 }
 0x143   : > { %v1839_v56 = vadd.f32 %v3890_v20, %v1704_v46  ;;  %v1773_v57 = vadd.f32 %v3890_v20, %v1638_v47  ;;  %v1837_v58 = vadd.f32 %v3890_v20, %v1702_v48  ;;  %v4155_v59 = vpop.f32.mrf.mxu0  ;;  %v4157_v60 = vpop.f32.mrf.mxu1  ;;  %v1643_v61 = vmul.f32 %v3883_v13, %v1508_v41 }
 0x144   : > { %v1707_v62 = vmul.f32 %v3883_v13, %v1572_v42  ;;  %v1641_v63 = vmul.f32 %v3883_v13, %v1506_v43  ;;  %v1705_v0 = vmul.f32 %v3883_v13, %v1570_v44  ;;  %v3077_v1 = vpack.c.bf16 %v1775_v55, %v1774_v51 }
 0x145   : > { %v3237_v2 = vpack.c.bf16 %v1839_v56, %v1838_v53  ;;  %v3072_v3 = vpack.c.bf16 %v1773_v57, %v1772_v52  ;;  %v3232_v4 = vpack.c.bf16 %v1837_v58, %v1836_v54  ;;  %v3506_v5 = vpop.f32.mrf.mxu0  ;;  %v3570_v9 = vpop.f32.mrf.mxu1  ;;  %v1115_v10 = vadd.f32 %v4115_v6, %v3876_v8 }
 0x146   : > { %v1371_v11 = vadd.f32 %v4117_v7, %v3876_v8  ;;  %v1107_v12 = vadd.f32 %v3876_v8, %v1106_v18  ;;  %v1363_v14 = vadd.f32 %v3876_v8, %v1362_v19  ;;  %3325 = vst [vmem:[%s3919_s6 + $0x88] sm:$0xff] %v3077_v1   ;;  %v1128_v15 = vadd.f32 %v3502_v29, %v3876_v8 }
 0x147   : > { %3357 = vst [vmem:[%s3919_s6 + $0x188] sm:$0xff] %v3237_v2   ;;  %3324 = vst [vmem:[%s3919_s6 + $0x80] sm:$0xff] %v3072_v3   ;;  %v1384_v16 = vadd.f32 %v3566_v32, %v3876_v8  ;;  %v1120_v17 = vadd.f32 %v3876_v8, %v1119_v39  ;;  %v1376_v21 = vadd.f32 %v3876_v8, %v1375_v40  ;;  %v1135_v6 = vpop.f32.mrf.mxu0  ;;  %v1391_v22 = vpop.f32.mrf.mxu1  ;;  %v1509_v23 = vmax.f32 %v1115_v10, 0.0 }
 0x148   : > { %3356 = vst [vmem:[%s3919_s6 + $0x180] sm:$0xff] %v3232_v4   ;;  %v1573_v7 = vmax.f32 %v1371_v11, 0.0  ;;  %v1507_v24 = vmax.f32 %v1107_v12, 0.0  ;;  %v1571_v18 = vmax.f32 %v1363_v14, 0.0  ;;  %v1512_v25 = vmax.f32 %v1128_v15, 0.0 }
 0x149   : > { %v1576_v19 = vmax.f32 %v1384_v16, 0.0  ;;  %v1510_v26 = vmax.f32 %v1120_v17, 0.0  ;;  %v1574_v27 = vmax.f32 %v1376_v21, 0.0  ;;  %v4177_v28 = vpop.f32.mrf.mxu0  ;;  %v4179_v33 = vpop.f32.mrf.mxu1  ;;  %v1644_v29 = vmul.f32 %v3883_v13, %v1509_v23 }
 0x14a   : > { %v1708_v32 = vmul.f32 %v3883_v13, %v1573_v7  ;;  %v1642_v34 = vmul.f32 %v3883_v13, %v1507_v24  ;;  %v1706_v35 = vmul.f32 %v3883_v13, %v1571_v18  ;;  %v1778_v30 = vadd.f32 %v3890_v20, %v1643_v61 }
 0x14b   : > { %v1842_v36 = vadd.f32 %v3890_v20, %v1707_v62  ;;  %v1776_v31 = vadd.f32 %v3890_v20, %v1641_v63  ;;  %v1840_v37 = vadd.f32 %v3890_v20, %v1705_v0  ;;  %v4189_v38 = vpop.f32.mrf.mxu0  ;;  %v4191_v39 = vpop.f32.mrf.mxu1  ;;  %v1779_v40 = vadd.f32 %v3890_v20, %v1644_v29 }
 0x14c   : > { %v1843_v41 = vadd.f32 %v3890_v20, %v1708_v32  ;;  %v1777_v42 = vadd.f32 %v3890_v20, %v1642_v34  ;;  %v1841_v43 = vadd.f32 %v3890_v20, %v1706_v35  ;;  %v1647_v44 = vmul.f32 %v3883_v13, %v1512_v25 }
 0x14d   : > { %v1711_v45 = vmul.f32 %v3883_v13, %v1576_v19  ;;  %v1645_v46 = vmul.f32 %v3883_v13, %v1510_v26  ;;  %v1709_v47 = vmul.f32 %v3883_v13, %v1574_v27  ;;  %v4201_v48 = vpop.f32.mrf.mxu0  ;;  %v4203_v51 = vpop.f32.mrf.mxu1  ;;  %v3087_v53 = vpack.c.bf16 %v1779_v40, %v1778_v30  ;;  %v4212_v13 = vld [vmem:[%s4447_s2] ss:$0 sm:$0xff] }
 0x14e   : > { %v3247_v52 = vpack.c.bf16 %v1843_v41, %v1842_v36  ;;  %v3082_v54 = vpack.c.bf16 %v1777_v42, %v1776_v31  ;;  %v3242_v20 = vpack.c.bf16 %v1841_v43, %v1840_v37  ;;  %v1131_v55 = vadd.f32 %v4143_v49, %v3876_v8 }
 0x14f   : > { %v1387_v56 = vadd.f32 %v4145_v50, %v3876_v8  ;;  %v1123_v57 = vadd.f32 %v4212_v13, %v4155_v59  ;;  %v1379_v58 = vadd.f32 %v4212_v13, %v4157_v60  ;;  %v1151_v61 = vpop.f32.mrf.mxu0  ;;  %v1407_v62 = vpop.f32.mrf.mxu1  ;;  %3327 = vst [vmem:[%s3919_s6 + $0x98] sm:$0xff] %v3087_v53   ;;  %v1144_v49 = vadd.f32 %v4212_v13, %v3506_v5  ;;  %v4233_v5 = vld [vmem:[%s4448_s3] ss:$0 sm:$0xff] }
 0x150   : > { %3359 = vst [vmem:[%s3919_s6 + $0x198] sm:$0xff] %v3247_v52   ;;  %3326 = vst [vmem:[%s3919_s6 + $0x90] sm:$0xff] %v3082_v54   ;;  %v1400_v8 = vadd.f32 %v4212_v13, %v3570_v9  ;;  %v1136_v50 = vadd.f32 %v4212_v13, %v1135_v6  ;;  %v1392_v63 = vadd.f32 %v4212_v13, %v1391_v22  ;;  %v1513_v0 = vmax.f32 %v1131_v55, 0.0  ;;  %v4246_v6 = vld [vmem:[%s4449_s4] ss:$0 sm:$0xff] }
 0x151   : > { %3358 = vst [vmem:[%s3919_s6 + $0x190] sm:$0xff] %v3242_v20   ;;  %v1577_v1 = vmax.f32 %v1387_v56, 0.0  ;;  %v1511_v59 = vmax.f32 %v1123_v57, 0.0  ;;  %v1575_v2 = vmax.f32 %v1379_v58, 0.0  ;;  %v4226_v3 = vpop.f32.mrf.mxu0  ;;  %v4228_v60 = vpop.f32.mrf.mxu1  ;;  %v1516_v4 = vmax.f32 %v1144_v49, 0.0 }
 0x152   : > { %v1580_v10 = vmax.f32 %v1400_v8, 0.0  ;;  %v1514_v11 = vmax.f32 %v1136_v50, 0.0  ;;  %v1578_v12 = vmax.f32 %v1392_v63, 0.0  ;;  %v1648_v9 = vmul.f32 %v4233_v5, %v1513_v0 }
 0x153   : > { %v1712_v14 = vmul.f32 %v4233_v5, %v1577_v1  ;;  %v1646_v15 = vmul.f32 %v4233_v5, %v1511_v59  ;;  %v1710_v16 = vmul.f32 %v4233_v5, %v1575_v2  ;;  %v4239_v17 = vpop.f32.mrf.mxu0  ;;  %v4241_v21 = vpop.f32.mrf.mxu1  ;;  %v1782_v22 = vadd.f32 %v4246_v6, %v1647_v44 }
 0x154   : > { %v1846_v23 = vadd.f32 %v4246_v6, %v1711_v45  ;;  %v1780_v7 = vadd.f32 %v4246_v6, %v1645_v46  ;;  %v1844_v24 = vadd.f32 %v4246_v6, %v1709_v47  ;;  %v1783_v18 = vadd.f32 %v4246_v6, %v1648_v9 }
 0x155   : > { %v1847_v25 = vadd.f32 %v4246_v6, %v1712_v14  ;;  %v1781_v19 = vadd.f32 %v4246_v6, %v1646_v15  ;;  %v1845_v26 = vadd.f32 %v4246_v6, %v1710_v16  ;;  %v4256_v27 = vpop.f32.mrf.mxu0  ;;  %v4258_v29 = vpop.f32.mrf.mxu1  ;;  %v1651_v32 = vmul.f32 %v4233_v5, %v1516_v4 }
 0x156   : > { %v1715_v34 = vmul.f32 %v4233_v5, %v1580_v10  ;;  %v1649_v35 = vmul.f32 %v4233_v5, %v1514_v11  ;;  %v1713_v30 = vmul.f32 %v4233_v5, %v1578_v12  ;;  %v3097_v36 = vpack.c.bf16 %v1783_v18, %v1782_v22 }
 0x157   : > { %v3257_v31 = vpack.c.bf16 %v1847_v25, %v1846_v23  ;;  %v3092_v37 = vpack.c.bf16 %v1781_v19, %v1780_v7  ;;  %v3252_v40 = vpack.c.bf16 %v1845_v26, %v1844_v24  ;;  %v1167_v41 = vpop.f32.mrf.mxu0  ;;  %v1423_v42 = vpop.f32.mrf.mxu1  ;;  %v1147_v43 = vadd.f32 %v4212_v13, %v4177_v28 }
 0x158   : > { %v1403_v44 = vadd.f32 %v4212_v13, %v4179_v33  ;;  %v1139_v45 = vadd.f32 %v4212_v13, %v4189_v38  ;;  %v1395_v46 = vadd.f32 %v4212_v13, %v4191_v39  ;;  %3329 = vst [vmem:[%s3919_s6 + $0xa8] sm:$0xff] %v3097_v36   ;;  %v1160_v47 = vadd.f32 %v4212_v13, %v4201_v48 }
 0x159   : > { %3361 = vst [vmem:[%s3919_s6 + $0x1a8] sm:$0xff] %v3257_v31   ;;  %3328 = vst [vmem:[%s3919_s6 + $0xa0] sm:$0xff] %v3092_v37   ;;  %v1416_v53 = vadd.f32 %v4212_v13, %v4203_v51  ;;  %v1152_v28 = vadd.f32 %v4212_v13, %v1151_v61  ;;  %v1408_v33 = vadd.f32 %v4212_v13, %v1407_v62  ;;  %v4282_v52 = vpop.f32.mrf.mxu0  ;;  %v4284_v38 = vpop.f32.mrf.mxu1  ;;  %v1517_v54 = vmax.f32 %v1147_v43, 0.0 }
 0x15a   : > { %3360 = vst [vmem:[%s3919_s6 + $0x1a0] sm:$0xff] %v3252_v40   ;;  %v1581_v39 = vmax.f32 %v1403_v44, 0.0  ;;  %v1515_v20 = vmax.f32 %v1139_v45, 0.0  ;;  %v1579_v55 = vmax.f32 %v1395_v46, 0.0  ;;  %v1520_v56 = vmax.f32 %v1160_v47, 0.0 }
 0x15b   : > { %v1584_v57 = vmax.f32 %v1416_v53, 0.0  ;;  %v1518_v58 = vmax.f32 %v1152_v28, 0.0  ;;  %v1582_v49 = vmax.f32 %v1408_v33, 0.0  ;;  %v4286_v48 = vpop.f32.mrf.mxu0  ;;  %v4288_v8 = vpop.f32.mrf.mxu1  ;;  %v1652_v51 = vmul.f32 %v4233_v5, %v1517_v54 }
 0x15c   : > { %v1716_v61 = vmul.f32 %v4233_v5, %v1581_v39  ;;  %v1650_v62 = vmul.f32 %v4233_v5, %v1515_v20  ;;  %v1714_v50 = vmul.f32 %v4233_v5, %v1579_v55  ;;  %v1786_v63 = vadd.f32 %v4246_v6, %v1651_v32 }
 0x15d   : > { %v1850_v0 = vadd.f32 %v4246_v6, %v1715_v34  ;;  %v1784_v1 = vadd.f32 %v4246_v6, %v1649_v35  ;;  %v1848_v59 = vadd.f32 %v4246_v6, %v1713_v30  ;;  %v4298_v2 = vpop.f32.mrf.mxu0  ;;  %v4300_v4 = vpop.f32.mrf.mxu1  ;;  %v1787_v10 = vadd.f32 %v4246_v6, %v1652_v51 }
 0x15e   : > { %v1851_v11 = vadd.f32 %v4246_v6, %v1716_v61  ;;  %v1785_v12 = vadd.f32 %v4246_v6, %v1650_v62  ;;  %v1849_v9 = vadd.f32 %v4246_v6, %v1714_v50  ;;  %v1655_v14 = vmul.f32 %v4233_v5, %v1520_v56 }
 0x15f   : > { %v1719_v15 = vmul.f32 %v4233_v5, %v1584_v57  ;;  %v1653_v16 = vmul.f32 %v4233_v5, %v1518_v58  ;;  %v1717_v22 = vmul.f32 %v4233_v5, %v1582_v49  ;;  %v3107_v23 = vpack.c.bf16 %v1787_v10, %v1786_v63  ;;  %v1183_v34 = vpop.f32.mrf.mxu0  ;;  %v1439_v35 = vpop.f32.mrf.mxu1 }
 0x160   : > { %v3267_v7 = vpack.c.bf16 %v1851_v11, %v1850_v0  ;;  %v3102_v24 = vpack.c.bf16 %v1785_v12, %v1784_v1  ;;  %v3262_v18 = vpack.c.bf16 %v1849_v9, %v1848_v59  ;;  %v1163_v25 = vadd.f32 %v4212_v13, %v4226_v3 }
 0x161   : > { %v1419_v19 = vadd.f32 %v4212_v13, %v4228_v60  ;;  %v1155_v26 = vadd.f32 %v4212_v13, %v4239_v17  ;;  %v1411_v32 = vadd.f32 %v4212_v13, %v4241_v21  ;;  %3331 = vst [vmem:[%s3919_s6 + $0xb8] sm:$0xff] %v3107_v23   ;;  %v1176_v30 = vadd.f32 %v4212_v13, %v4256_v27  ;;  %v4332_v53 = vpop.f32.mrf.mxu0 }
 0x162   : > { %3363 = vst [vmem:[%s3919_s6 + $0x1b8] sm:$0xff] %v3267_v7   ;;  %3330 = vst [vmem:[%s3919_s6 + $0xb0] sm:$0xff] %v3102_v24   ;;  %v1432_v3 = vadd.f32 %v4212_v13, %v4258_v29  ;;  %v1168_v60 = vadd.f32 %v4212_v13, %v1167_v41  ;;  %v1424_v36 = vadd.f32 %v4212_v13, %v1423_v42  ;;  %v1521_v17 = vmax.f32 %v1163_v25, 0.0  ;;  %v4334_v41 = vpop.f32.mrf.mxu1 }
 0x163   : > { %3362 = vst [vmem:[%s3919_s6 + $0x1b0] sm:$0xff] %v3262_v18   ;;  %v1585_v31 = vmax.f32 %v1419_v19, 0.0  ;;  %v1519_v37 = vmax.f32 %v1155_v26, 0.0  ;;  %v1583_v21 = vmax.f32 %v1411_v32, 0.0  ;;  %v1524_v40 = vmax.f32 %v1176_v30, 0.0  ;;  %v1186_v0 = vpop.f32.mrf.mxu0 }
 0x164   : > { %v1588_v43 = vmax.f32 %v1432_v3, 0.0  ;;  %v1522_v44 = vmax.f32 %v1168_v60, 0.0  ;;  %v1586_v45 = vmax.f32 %v1424_v36, 0.0  ;;  %v1656_v46 = vmul.f32 %v4233_v5, %v1521_v17  ;;  %v1442_v1 = vpop.f32.mrf.mxu1 }
 0x165   : > { %v1720_v47 = vmul.f32 %v4233_v5, %v1585_v31  ;;  %v1654_v27 = vmul.f32 %v4233_v5, %v1519_v37  ;;  %v1718_v29 = vmul.f32 %v4233_v5, %v1583_v21  ;;  %v1790_v42 = vadd.f32 %v4246_v6, %v1655_v14  ;;  %v3522_v18 = vpop.f32.mrf.mxu0 }
 0x166   : > { %v1854_v28 = vadd.f32 %v4246_v6, %v1719_v15  ;;  %v1788_v33 = vadd.f32 %v4246_v6, %v1653_v16  ;;  %v1852_v54 = vadd.f32 %v4246_v6, %v1717_v22  ;;  %v1791_v39 = vadd.f32 %v4246_v6, %v1656_v46  ;;  %v3586_v25 = vpop.f32.mrf.mxu1 }
 0x167   : > { %v1855_v20 = vadd.f32 %v4246_v6, %v1720_v47  ;;  %v1789_v55 = vadd.f32 %v4246_v6, %v1654_v27  ;;  %v1853_v56 = vadd.f32 %v4246_v6, %v1718_v29  ;;  %v1659_v57 = vmul.f32 %v4233_v5, %v1524_v40 }
 0x168   : > { %v1723_v58 = vmul.f32 %v4233_v5, %v1588_v43  ;;  %v1657_v49 = vmul.f32 %v4233_v5, %v1522_v44  ;;  %v1721_v51 = vmul.f32 %v4233_v5, %v1586_v45  ;;  %v3117_v61 = vpack.c.bf16 %v1791_v39, %v1790_v42  ;;  %v1199_v43 = vpop.f32.mrf.mxu0  ;;  %v1455_v44 = vpop.f32.mrf.mxu1 }
 0x169   : > { %v3277_v62 = vpack.c.bf16 %v1855_v20, %v1854_v28  ;;  %v3112_v50 = vpack.c.bf16 %v1789_v55, %v1788_v33  ;;  %v3272_v63 = vpack.c.bf16 %v1853_v56, %v1852_v54  ;;  %v1179_v59 = vadd.f32 %v4212_v13, %v4282_v52 }
 0x16a   : > { %v1435_v10 = vadd.f32 %v4212_v13, %v4284_v38  ;;  %v1171_v11 = vadd.f32 %v4212_v13, %v4286_v48  ;;  %v1427_v12 = vadd.f32 %v4212_v13, %v4288_v8  ;;  %3333 = vst [vmem:[%s3919_s6 + $0xc8] sm:$0xff] %v3117_v61   ;;  %v1192_v9 = vadd.f32 %v4212_v13, %v4298_v2 }
 0x16b   : > { %3365 = vst [vmem:[%s3919_s6 + $0x1c8] sm:$0xff] %v3277_v62   ;;  %3332 = vst [vmem:[%s3919_s6 + $0xc0] sm:$0xff] %v3112_v50   ;;  %v1448_v14 = vadd.f32 %v4212_v13, %v4300_v4  ;;  %v1184_v52 = vadd.f32 %v4212_v13, %v1183_v34  ;;  %v1440_v38 = vadd.f32 %v4212_v13, %v1439_v35  ;;  %v1525_v15 = vmax.f32 %v1179_v59, 0.0 }
 0x16c   : > { %3364 = vst [vmem:[%s3919_s6 + $0x1c0] sm:$0xff] %v3272_v63   ;;  %v1589_v16 = vmax.f32 %v1435_v10, 0.0  ;;  %v1523_v48 = vmax.f32 %v1171_v11, 0.0  ;;  %v1587_v22 = vmax.f32 %v1427_v12, 0.0  ;;  %v1528_v23 = vmax.f32 %v1192_v9, 0.0 }
 0x16d   : > { %v1592_v8 = vmax.f32 %v1448_v14, 0.0  ;;  %v1526_v7 = vmax.f32 %v1184_v52, 0.0  ;;  %v1590_v24 = vmax.f32 %v1440_v38, 0.0  ;;  %v1660_v19 = vmul.f32 %v4233_v5, %v1525_v15 }
 0x16e   : > { %v1724_v2 = vmul.f32 %v4233_v5, %v1589_v16  ;;  %v1658_v4 = vmul.f32 %v4233_v5, %v1523_v48  ;;  %v1722_v26 = vmul.f32 %v4233_v5, %v1587_v22  ;;  %v1794_v32 = vadd.f32 %v4246_v6, %v1659_v57 }
 0x16f   : > { %v1858_v34 = vadd.f32 %v4246_v6, %v1723_v58  ;;  %v1792_v35 = vadd.f32 %v4246_v6, %v1657_v49  ;;  %v1856_v30 = vadd.f32 %v4246_v6, %v1721_v51  ;;  %v1795_v3 = vadd.f32 %v4246_v6, %v1660_v19  ;;  %v3523_v58 = vpop.f32.mrf.mxu0  ;;  %v3587_v49 = vpop.f32.mrf.mxu1 }
 0x170   : > { %v1859_v60 = vadd.f32 %v4246_v6, %v1724_v2  ;;  %v1793_v36 = vadd.f32 %v4246_v6, %v1658_v4  ;;  %v1857_v17 = vadd.f32 %v4246_v6, %v1722_v26  ;;  %v1663_v31 = vmul.f32 %v4233_v5, %v1528_v23 }
 0x171   : > { %v1727_v37 = vmul.f32 %v4233_v5, %v1592_v8  ;;  %v1661_v21 = vmul.f32 %v4233_v5, %v1526_v7  ;;  %v1725_v40 = vmul.f32 %v4233_v5, %v1590_v24  ;;  %v3127_v45 = vpack.c.bf16 %v1795_v3, %v1794_v32  ;;  %v1202_v16 = vpop.f32.mrf.mxu0  ;;  %v1458_v48 = vpop.f32.mrf.mxu1 }
 0x172   : > { %v3287_v46 = vpack.c.bf16 %v1859_v60, %v1858_v34  ;;  %v3122_v47 = vpack.c.bf16 %v1793_v36, %v1792_v35  ;;  %v3282_v27 = vpack.c.bf16 %v1857_v17, %v1856_v30  ;;  %v1195_v29 = vadd.f32 %v4212_v13, %v4332_v53 }
 0x173   : > { %v1451_v42 = vadd.f32 %v4212_v13, %v4334_v41  ;;  %v1187_v28 = vadd.f32 %v4212_v13, %v1186_v0  ;;  %v1443_v33 = vadd.f32 %v4212_v13, %v1442_v1  ;;  %3335 = vst [vmem:[%s3919_s6 + $0xd8] sm:$0xff] %v3127_v45   ;;  %v1208_v54 = vadd.f32 %v4212_v13, %v3522_v18 }
 0x174   : > { %3367 = vst [vmem:[%s3919_s6 + $0x1d8] sm:$0xff] %v3287_v46   ;;  %3334 = vst [vmem:[%s3919_s6 + $0xd0] sm:$0xff] %v3122_v47   ;;  %v1464_v39 = vadd.f32 %v4212_v13, %v3586_v25  ;;  %v1200_v20 = vadd.f32 %v4212_v13, %v1199_v43  ;;  %v1456_v55 = vadd.f32 %v4212_v13, %v1455_v44  ;;  %v1529_v53 = vmax.f32 %v1195_v29, 0.0 }
 0x175   : > { %3366 = vst [vmem:[%s3919_s6 + $0x1d0] sm:$0xff] %v3282_v27   ;;  %v1593_v56 = vmax.f32 %v1451_v42, 0.0  ;;  %v1527_v57 = vmax.f32 %v1187_v28, 0.0  ;;  %v1591_v41 = vmax.f32 %v1443_v33, 0.0  ;;  %v1798_v51 = vadd.f32 %v4246_v6, %v1663_v31 }
 0x176   : > { %v1862_v61 = vadd.f32 %v4246_v6, %v1727_v37  ;;  %v1796_v62 = vadd.f32 %v4246_v6, %v1661_v21  ;;  %v1860_v50 = vadd.f32 %v4246_v6, %v1725_v40  ;;  %v1664_v63 = vmul.f32 %v4233_v5, %v1529_v53 }
 0x177   : > { %v1728_v0 = vmul.f32 %v4233_v5, %v1593_v56  ;;  %v1662_v1 = vmul.f32 %v4233_v5, %v1527_v57  ;;  %v1726_v59 = vmul.f32 %v4233_v5, %v1591_v41  ;;  %v1532_v10 = vmax.f32 %v1208_v54, 0.0 }
 0x178   : > { %v1596_v11 = vmax.f32 %v1464_v39, 0.0  ;;  %v1530_v12 = vmax.f32 %v1200_v20, 0.0  ;;  %v1594_v9 = vmax.f32 %v1456_v55, 0.0  ;;  %v1799_v14 = vadd.f32 %v4246_v6, %v1664_v63 }
 0x179   : > { %v1863_v52 = vadd.f32 %v4246_v6, %v1728_v0  ;;  %v1797_v38 = vadd.f32 %v4246_v6, %v1662_v1  ;;  %v1861_v15 = vadd.f32 %v4246_v6, %v1726_v59  ;;  %v1211_v24 = vadd.f32 %v4212_v13, %v3523_v58 }
 0x17a   : > { %v3137_v22 = vpack.c.bf16 %v1799_v14, %v1798_v51  ;;  %v1467_v18 = vadd.f32 %v4212_v13, %v3587_v49  ;;  %v1203_v25 = vadd.f32 %v4212_v13, %v1202_v16  ;;  %v1459_v19 = vadd.f32 %v4212_v13, %v1458_v48 }
 0x17b   : > { %v3297_v23 = vpack.c.bf16 %v1863_v52, %v1862_v61  ;;  %v3132_v8 = vpack.c.bf16 %v1797_v38, %v1796_v62  ;;  %v3292_v7 = vpack.c.bf16 %v1861_v15, %v1860_v50  ;;  %v1667_v2 = vmul.f32 %v4233_v5, %v1532_v10 }
 0x17c   : > { %3337 = vst [vmem:[%s3919_s6 + $0xe8] sm:$0xff] %v3137_v22   ;;  %v1731_v4 = vmul.f32 %v4233_v5, %v1596_v11  ;;  %v1665_v26 = vmul.f32 %v4233_v5, %v1530_v12  ;;  %v1729_v32 = vmul.f32 %v4233_v5, %v1594_v9  ;;  %v1533_v34 = vmax.f32 %v1211_v24, 0.0 }
 0x17d   : > { %3369 = vst [vmem:[%s3919_s6 + $0x1e8] sm:$0xff] %v3297_v23   ;;  %3336 = vst [vmem:[%s3919_s6 + $0xe0] sm:$0xff] %v3132_v8   ;;  %v1597_v35 = vmax.f32 %v1467_v18, 0.0  ;;  %v1531_v30 = vmax.f32 %v1203_v25, 0.0  ;;  %v1595_v3 = vmax.f32 %v1459_v19, 0.0  ;;  %v1802_v31 = vadd.f32 %v4246_v6, %v1667_v2 }
 0x17e   : > { %3368 = vst [vmem:[%s3919_s6 + $0x1e0] sm:$0xff] %v3292_v7   ;;  %v1668_v60 = vmul.f32 %v4233_v5, %v1533_v34  ;;  %v1866_v37 = vadd.f32 %v4246_v6, %v1731_v4  ;;  %v1800_v21 = vadd.f32 %v4246_v6, %v1665_v26  ;;  %v1864_v40 = vadd.f32 %v4246_v6, %v1729_v32 }
 0x17f   : > { %v1732_v13 = vmul.f32 %v4233_v5, %v1597_v35  ;;  %v1666_v36 = vmul.f32 %v4233_v5, %v1531_v30  ;;  %v1730_v17 = vmul.f32 %v4233_v5, %v1595_v3 }
 0x180   : > { %v1803_v43 = vadd.f32 %v4246_v6, %v1668_v60 }
 0x181   : > { %v1867_v44 = vadd.f32 %v4246_v6, %v1732_v13  ;;  %v1801_v45 = vadd.f32 %v4246_v6, %v1666_v36  ;;  %v1865_v46 = vadd.f32 %v4246_v6, %v1730_v17 }
 0x182   : > { %v3147_v47 = vpack.c.bf16 %v1803_v43, %v1802_v31 }
 0x183   : > { %v3307_v27 = vpack.c.bf16 %v1867_v44, %v1866_v37  ;;  %v3142_v5 = vpack.c.bf16 %v1801_v45, %v1800_v21  ;;  %v3302_v29 = vpack.c.bf16 %v1865_v46, %v1864_v40 }
 0x184   : > { %3339 = vst [vmem:[%s3919_s6 + $0xf8] sm:$0xff] %v3147_v47  }
 0x185   : > { %3371 = vst [vmem:[%s3919_s6 + $0x1f8] sm:$0xff] %v3307_v27   ;;  %3338 = vst [vmem:[%s3919_s6 + $0xf0] sm:$0xff] %v3142_v5  }
 0x186   : > { %3370 = vst [vmem:[%s3919_s6 + $0x1f0] sm:$0xff] %v3302_v29  }
 0x187 PF: > { %s15_s20 = sadd.s32 1, %s3725_s20   ;;  %s4451_s18 = smov %s3721_s19 }
 0x188   : > { %p12_p5 = scmp.ge.s32.totalorder %s15_s20, 4   ;;  %s4452_s19 = smov %s4454_s21 }
 0x18a   :  { %14 = sbr.rel (!%p12_p5) target bundleno = 2 (0x2), region = 82 }

// kernel: crnn_forward.11
= control target key start
LH: loop header
LB: loop body
LE: loop exit
PB: predicated region body
PF: predicated region fallthrough
CT: control target
= control target key end

     0   :  { %s942_s1 = inlined_call_operand.vmem [shape: bf16[256,128], index: 1, kind: input, shape index: {}]   ;;  %s943_s0 = inlined_call_operand.vmem [shape: bf16[128,256], index: 0, kind: input, shape index: {}]   ;;  %s944_s2 = inlined_call_operand.vmem [shape: f32[1,128], index: 2, kind: input, shape index: {}]   ;;  %s945_s3 = inlined_call_operand.vmem [shape: f32[1,128], index: 3, kind: input, shape index: {}]   ;;  %s946_s4 = inlined_call_operand.vmem [shape: f32[1,128], index: 4, kind: input, shape index: {}]   ;;  %s947_s5 = inlined_call_operand.vmem [shape: bf16[128,128], index: 5, kind: output, shape index: {}]  }
   0x1   :  { %v689_v0 = vld [vmem:[%s942_s1 + $0x78] sm:$0xff]   ;;  %v691_v2 = vld [vmem:[%s942_s1 + $0x70] sm:$0xff]   ;;  %v693_v4 = vld [vmem:[%s942_s1 + $0x68] sm:$0xff]  }
   0x2   :  { %v690_v1 = vld [vmem:[%s942_s1 + $0x38] sm:$0xff]   ;;  %609 = vmatprep.subr.bf16.mxu0 %v689_v0  ;;  %673 = vmatprep.subr.bf16.mxu1 %v689_v0  ;;  %v692_v3 = vld [vmem:[%s942_s1 + $0x30] sm:$0xff]   ;;  %v694_v5 = vld [vmem:[%s942_s1 + $0x28] sm:$0xff]  }
   0x3   :  { %610 = vmatpush3.bf16.msra.mxu0 %v690_v1  ;;  %681 = vmatpush3.bf16.msra.mxu1 %v690_v1  ;;  %v695_v6 = vld [vmem:[%s942_s1 + $0x60] sm:$0xff]   ;;  %v697_v8 = vld [vmem:[%s942_s1 + $0x58] sm:$0xff]   ;;  %v699_v10 = vld [vmem:[%s942_s1 + $0x50] sm:$0xff]  }
   0x4   :  { %611 = vmatprep.subr.bf16.mxu0 %v691_v2  ;;  %674 = vmatprep.subr.bf16.mxu1 %v691_v2  ;;  %v696_v7 = vld [vmem:[%s942_s1 + $0x20] sm:$0xff]   ;;  %v698_v9 = vld [vmem:[%s942_s1 + $0x18] sm:$0xff]   ;;  %v700_v13 = vld [vmem:[%s942_s1 + $0x10] sm:$0xff]  }
   0x5   :  { %v707_v11 = vld [vmem:[%s943_s0 + $0x4] ss:$8 sps:$4 sm:$0xff]   ;;  %v705_v18 = vld [vmem:[%s943_s0] ss:$8 sps:$4 sm:$0xff]   ;;  %v711_v20 = vld [vmem:[%s943_s0 + $0x14] ss:$8 sps:$4 sm:$0xff]  }
   0x6   :  { %v710_v12 = vld [vmem:[%s943_s0 + $0x44] ss:$8 sps:$4 sm:$0xff]   ;;  %284 = vmatprep.mubr.bf16.mxu0 %v707_v11  ;;  %v708_v19 = vld [vmem:[%s943_s0 + $0x40] ss:$8 sps:$4 sm:$0xff]   ;;  %v713_v21 = vld [vmem:[%s943_s0 + $0x54] ss:$8 sps:$4 sm:$0xff]  }
   0x7   :  { %612 = vmatpush3.bf16.msra.mxu0 %v692_v3  ;;  %682 = vmatpush3.bf16.msra.mxu1 %v692_v3  ;;  %v701_v14 = vld [vmem:[%s942_s1 + $0x48] sm:$0xff]   ;;  %v703_v16 = vld [vmem:[%s942_s1 + $0x40] sm:$0xff]   ;;  %v715_v22 = vld [vmem:[%s943_s0 + $0x10] ss:$8 sps:$4 sm:$0xff]  }
   0x8   :  { %613 = vmatprep.subr.bf16.mxu0 %v693_v4  ;;  %675 = vmatprep.subr.bf16.mxu1 %v693_v4  ;;  %v702_v15 = vld [vmem:[%s942_s1 + $0x8] sm:$0xff]   ;;  %v704_v17 = vld [vmem:[%s942_s1] sm:$0xff]   ;;  %v716_v23 = vld [vmem:[%s943_s0 + $0x50] ss:$8 sps:$4 sm:$0xff]  }
   0x9   :  { %316 = vmatprep.mubr.bf16.mxu1 %v710_v12  ;;  %v717_v24 = vld [vmem:[%s943_s0 + $0x24] ss:$8 sps:$4 sm:$0xff]   ;;  %v721_v26 = vld [vmem:[%s943_s0 + $0x20] ss:$8 sps:$4 sm:$0xff]   ;;  %v723_v28 = vld [vmem:[%s943_s0 + $0x34] ss:$8 sps:$4 sm:$0xff]  }
   0xa   :  { %v719_v25 = vld [vmem:[%s943_s0 + $0x64] ss:$8 sps:$4 sm:$0xff]   ;;  %v722_v27 = vld [vmem:[%s943_s0 + $0x60] ss:$8 sps:$4 sm:$0xff]   ;;  %v725_v29 = vld [vmem:[%s943_s0 + $0x74] ss:$8 sps:$4 sm:$0xff]  }
   0xb   :  { %614 = vmatpush3.bf16.msra.mxu0 %v694_v5  ;;  %683 = vmatpush3.bf16.msra.mxu1 %v694_v5  ;;  %v727_v30 = vld [vmem:[%s943_s0 + $0x30] ss:$8 sps:$4 sm:$0xff]   ;;  %v858_v34 = vld [vmem:[%s944_s2] ss:$0 sm:$0xff] }
   0xc   :  { %615 = vmatprep.subr.bf16.mxu0 %v695_v6  ;;  %676 = vmatprep.subr.bf16.mxu1 %v695_v6  ;;  %v728_v31 = vld [vmem:[%s943_s0 + $0x70] ss:$8 sps:$4 sm:$0xff]   ;;  %v865_v46 = vld [vmem:[%s945_s3] ss:$0 sm:$0xff] }
   0xd   :  { %v874_v58 = vld [vmem:[%s946_s4] ss:$0 sm:$0xff] }
   0xf   :  { %616 = vmatpush3.bf16.msra.mxu0 %v696_v7  ;;  %684 = vmatpush3.bf16.msra.mxu1 %v696_v7 }
  0x10   :  { %617 = vmatprep.subr.bf16.mxu0 %v697_v8  ;;  %677 = vmatprep.subr.bf16.mxu1 %v697_v8 }
  0x13   :  { %618 = vmatpush3.bf16.msra.mxu0 %v698_v9  ;;  %685 = vmatpush3.bf16.msra.mxu1 %v698_v9 }
  0x14   :  { %619 = vmatprep.subr.bf16.mxu0 %v699_v10  ;;  %678 = vmatprep.subr.bf16.mxu1 %v699_v10 }
  0x17   :  { %620 = vmatpush3.bf16.msra.mxu0 %v700_v13  ;;  %686 = vmatpush3.bf16.msra.mxu1 %v700_v13 }
  0x18   :  { %621 = vmatprep.subr.bf16.mxu0 %v701_v14  ;;  %679 = vmatprep.subr.bf16.mxu1 %v701_v14 }
  0x1b   :  { %622 = vmatpush3.bf16.msra.mxu0 %v702_v15  ;;  %687 = vmatpush3.bf16.msra.mxu1 %v702_v15 }
  0x1c   :  { %623 = vmatprep.subr.bf16.mxu0 %v703_v16  ;;  %680 = vmatprep.subr.bf16.mxu1 %v703_v16 }
  0x1f   :  { %624 = vmatpush3.bf16.msra.mxu0 %v704_v17  ;;  %688 = vmatpush3.bf16.msra.mxu1 %v704_v17 }
  0x22   :  { %285 = vmatmul.mubr.bf16.vlgmr.msra.gmra.mxu0 %v705_v18  ;;  %317 = vmatmul.mubr.bf16.vlgmr.msra.gmra.mxu1 %v708_v19 }
  0x23   :  { %292 = vmatprep.mubr.bf16.mxu0 %v711_v20  ;;  %324 = vmatprep.mubr.bf16.mxu1 %v713_v21 }
  0x2a   :  { %293 = vmatmul.mubr.bf16.gmra.mxu0 %v715_v22  ;;  %325 = vmatmul.mubr.bf16.gmra.mxu1 %v716_v23 }
  0x2b   :  { %300 = vmatprep.mubr.bf16.mxu0 %v717_v24  ;;  %332 = vmatprep.mubr.bf16.mxu1 %v719_v25 }
  0x32   :  { %301 = vmatmul.mubr.bf16.gmra.mxu0 %v721_v26  ;;  %333 = vmatmul.mubr.bf16.gmra.mxu1 %v722_v27 }
  0x33   :  { %308 = vmatprep.mubr.bf16.mxu0 %v723_v28  ;;  %340 = vmatprep.mubr.bf16.mxu1 %v725_v29 }
  0x3a   :  { %309 = vmatmul.mubr.bf16.gmra.mxu0 %v727_v30  ;;  %341 = vmatmul.mubr.bf16.gmra.mxu1 %v728_v31 }
  0xe2   :  { %v625_v32 = vpop.f32.mrf.mxu0  ;;  %v649_v33 = vpop.f32.mrf.mxu1 }
  0xe4   :  { %v626_v35 = vpop.f32.mrf.mxu0  ;;  %v650_v36 = vpop.f32.mrf.mxu1 }
  0xe5   :  { %v627_v37 = vadd.f32 %v626_v35, %v625_v32  ;;  %v651_v38 = vadd.f32 %v650_v36, %v649_v33 }
  0xe6   :  { %v628_v39 = vpop.f32.mrf.mxu0  ;;  %v652_v40 = vpop.f32.mrf.mxu1 }
  0xe7   :  { %v287_v41 = vadd.f32 %v627_v37, %v858_v34  ;;  %v319_v42 = vadd.f32 %v651_v38, %v858_v34 }
  0xe8   :  { %v629_v43 = vpop.f32.mrf.mxu0  ;;  %v653_v44 = vpop.f32.mrf.mxu1 }
  0xe9   :  { %v349_v45 = vmax.f32 %v287_v41, 0.0  ;;  %v357_v47 = vmax.f32 %v319_v42, 0.0  ;;  %v630_v48 = vadd.f32 %v629_v43, %v628_v39  ;;  %v654_v49 = vadd.f32 %v653_v44, %v652_v40 }
  0xea   :  { %v631_v50 = vpop.f32.mrf.mxu0  ;;  %v655_v51 = vpop.f32.mrf.mxu1 }
  0xeb   :  { %v290_v52 = vadd.f32 %v630_v48, %v858_v34  ;;  %v322_v53 = vadd.f32 %v654_v49, %v858_v34  ;;  %v372_v54 = vmul.f32 %v865_v46, %v349_v45  ;;  %v380_v55 = vmul.f32 %v865_v46, %v357_v47 }
  0xec   :  { %v632_v56 = vpop.f32.mrf.mxu0  ;;  %v656_v57 = vpop.f32.mrf.mxu1 }
  0xed   :  { %v350_v59 = vmax.f32 %v290_v52, 0.0  ;;  %v358_v60 = vmax.f32 %v322_v53, 0.0  ;;  %v633_v61 = vadd.f32 %v632_v56, %v631_v50  ;;  %v657_v62 = vadd.f32 %v656_v57, %v655_v51 }
  0xee   :  { %v634_v63 = vpop.f32.mrf.mxu0  ;;  %v658_v0 = vpop.f32.mrf.mxu1  ;;  %v395_v3 = vadd.f32 %v874_v58, %v372_v54  ;;  %v403_v4 = vadd.f32 %v874_v58, %v380_v55 }
  0xef   :  { %v373_v1 = vmul.f32 %v865_v46, %v350_v59  ;;  %v381_v2 = vmul.f32 %v865_v46, %v358_v60  ;;  %v295_v5 = vadd.f32 %v633_v61, %v858_v34  ;;  %v327_v6 = vadd.f32 %v657_v62, %v858_v34 }
  0xf0   :  { %v635_v7 = vpop.f32.mrf.mxu0  ;;  %v659_v8 = vpop.f32.mrf.mxu1 }
  0xf1   :  { %v396_v9 = vadd.f32 %v874_v58, %v373_v1  ;;  %v404_v10 = vadd.f32 %v874_v58, %v381_v2  ;;  %v636_v11 = vadd.f32 %v635_v7, %v634_v63  ;;  %v660_v12 = vadd.f32 %v659_v8, %v658_v0 }
  0xf2   :  { %v351_v13 = vmax.f32 %v295_v5, 0.0  ;;  %v359_v14 = vmax.f32 %v327_v6, 0.0  ;;  %v637_v15 = vpop.f32.mrf.mxu0  ;;  %v661_v16 = vpop.f32.mrf.mxu1 }
  0xf3   :  { %v565_v17 = vpack.c.bf16 %v396_v9, %v395_v3  ;;  %v585_v18 = vpack.c.bf16 %v404_v10, %v403_v4  ;;  %v298_v19 = vadd.f32 %v636_v11, %v858_v34  ;;  %v330_v20 = vadd.f32 %v660_v12, %v858_v34 }
  0xf4   :  { %v374_v21 = vmul.f32 %v865_v46, %v351_v13  ;;  %v382_v22 = vmul.f32 %v865_v46, %v359_v14  ;;  %v638_v23 = vpop.f32.mrf.mxu0  ;;  %v662_v24 = vpop.f32.mrf.mxu1 }
  0xf5   :  { %566 = vst [vmem:[%s947_s5] sm:$0xff] %v565_v17   ;;  %605 = vst [vmem:[%s947_s5 + $0x20] sm:$0xff] %v585_v18   ;;  %v352_v25 = vmax.f32 %v298_v19, 0.0  ;;  %v360_v26 = vmax.f32 %v330_v20, 0.0  ;;  %v639_v27 = vadd.f32 %v638_v23, %v637_v15  ;;  %v663_v28 = vadd.f32 %v662_v24, %v661_v16 }
  0xf6   :  { %v640_v29 = vpop.f32.mrf.mxu0  ;;  %v664_v30 = vpop.f32.mrf.mxu1  ;;  %v397_v38 = vadd.f32 %v874_v58, %v374_v21  ;;  %v405_v39 = vadd.f32 %v874_v58, %v382_v22 }
  0xf7   :  { %v375_v31 = vmul.f32 %v865_v46, %v352_v25  ;;  %v383_v32 = vmul.f32 %v865_v46, %v360_v26  ;;  %v303_v33 = vadd.f32 %v639_v27, %v858_v34  ;;  %v335_v35 = vadd.f32 %v663_v28, %v858_v34 }
  0xf8   :  { %v641_v36 = vpop.f32.mrf.mxu0  ;;  %v665_v37 = vpop.f32.mrf.mxu1 }
  0xf9   :  { %v398_v40 = vadd.f32 %v874_v58, %v375_v31  ;;  %v406_v41 = vadd.f32 %v874_v58, %v383_v32  ;;  %v353_v42 = vmax.f32 %v303_v33, 0.0  ;;  %v361_v43 = vmax.f32 %v335_v35, 0.0 }
  0xfa   :  { %v642_v44 = vadd.f32 %v641_v36, %v640_v29  ;;  %v666_v45 = vadd.f32 %v665_v37, %v664_v30  ;;  %v643_v47 = vpop.f32.mrf.mxu0  ;;  %v667_v48 = vpop.f32.mrf.mxu1 }
  0xfb   :  { %v570_v49 = vpack.c.bf16 %v398_v40, %v397_v38  ;;  %v590_v50 = vpack.c.bf16 %v406_v41, %v405_v39  ;;  %v376_v57 = vmul.f32 %v865_v46, %v353_v42  ;;  %v384_v59 = vmul.f32 %v865_v46, %v361_v43 }
  0xfc   :  { %v306_v51 = vadd.f32 %v642_v44, %v858_v34  ;;  %v338_v52 = vadd.f32 %v666_v45, %v858_v34  ;;  %v644_v53 = vpop.f32.mrf.mxu0  ;;  %v668_v54 = vpop.f32.mrf.mxu1 }
  0xfd   :  { %602 = vst [vmem:[%s947_s5 + $0x8] sm:$0xff] %v570_v49   ;;  %606 = vst [vmem:[%s947_s5 + $0x28] sm:$0xff] %v590_v50   ;;  %v645_v55 = vadd.f32 %v644_v53, %v643_v47  ;;  %v669_v56 = vadd.f32 %v668_v54, %v667_v48  ;;  %v399_v10 = vadd.f32 %v874_v58, %v376_v57 }
  0xfe   :  { %v354_v60 = vmax.f32 %v306_v51, 0.0  ;;  %v362_v61 = vmax.f32 %v338_v52, 0.0  ;;  %v646_v62 = vpop.f32.mrf.mxu0  ;;  %v670_v63 = vpop.f32.mrf.mxu1  ;;  %v407_v11 = vadd.f32 %v874_v58, %v384_v59 }
  0xff   :  { %v311_v0 = vadd.f32 %v645_v55, %v858_v34  ;;  %v343_v1 = vadd.f32 %v669_v56, %v858_v34 }
 0x100   :  { %v377_v2 = vmul.f32 %v865_v46, %v354_v60  ;;  %v385_v3 = vmul.f32 %v865_v46, %v362_v61  ;;  %v647_v4 = vpop.f32.mrf.mxu0  ;;  %v671_v5 = vpop.f32.mrf.mxu1 }
 0x101   :  { %v355_v6 = vmax.f32 %v311_v0, 0.0  ;;  %v363_v7 = vmax.f32 %v343_v1, 0.0  ;;  %v648_v8 = vadd.f32 %v647_v4, %v646_v62  ;;  %v672_v9 = vadd.f32 %v671_v5, %v670_v63 }
 0x102   :  { %v400_v12 = vadd.f32 %v874_v58, %v377_v2  ;;  %v408_v13 = vadd.f32 %v874_v58, %v385_v3 }
 0x103   :  { %v314_v14 = vadd.f32 %v648_v8, %v858_v34  ;;  %v346_v15 = vadd.f32 %v672_v9, %v858_v34  ;;  %v378_v18 = vmul.f32 %v865_v46, %v355_v6  ;;  %v386_v19 = vmul.f32 %v865_v46, %v363_v7 }
 0x104   :  { %v575_v16 = vpack.c.bf16 %v400_v12, %v399_v10  ;;  %v595_v17 = vpack.c.bf16 %v408_v13, %v407_v11 }
 0x105   :  { %v356_v20 = vmax.f32 %v314_v14, 0.0  ;;  %v364_v21 = vmax.f32 %v346_v15, 0.0  ;;  %v401_v23 = vadd.f32 %v874_v58, %v378_v18  ;;  %v409_v24 = vadd.f32 %v874_v58, %v386_v19 }
 0x106   :  { %603 = vst [vmem:[%s947_s5 + $0x10] sm:$0xff] %v575_v16   ;;  %607 = vst [vmem:[%s947_s5 + $0x30] sm:$0xff] %v595_v17  }
 0x107   :  { %v379_v22 = vmul.f32 %v865_v46, %v356_v20  ;;  %v387_v34 = vmul.f32 %v865_v46, %v364_v21 }
 0x109   :  { %v402_v25 = vadd.f32 %v874_v58, %v379_v22  ;;  %v410_v26 = vadd.f32 %v874_v58, %v387_v34 }
 0x10b   :  { %v580_v27 = vpack.c.bf16 %v402_v25, %v401_v23  ;;  %v600_v28 = vpack.c.bf16 %v410_v26, %v409_v24 }
 0x10d   :  { %604 = vst [vmem:[%s947_s5 + $0x18] sm:$0xff] %v580_v27   ;;  %608 = vst [vmem:[%s947_s5 + $0x38] sm:$0xff] %v600_v28  }

// kernel: crnn_forward.12
= control target key start
LH: loop header
LB: loop body
LE: loop exit
PB: predicated region body
PF: predicated region fallthrough
CT: control target
= control target key end

     0   :  { %s846_s1 = inlined_call_operand.vmem [shape: bf16[384,128], index: 1, kind: input, shape index: {}]   ;;  %s847_s0 = inlined_call_operand.vmem [shape: bf16[56,384], index: 0, kind: input, shape index: {}]   ;;  %s848_s2 = inlined_call_operand.vmem [shape: f32[1,128], index: 2, kind: input, shape index: {}]   ;;  %s849_s3 = inlined_call_operand.vmem [shape: f32[1,128], index: 3, kind: input, shape index: {}]   ;;  %s850_s4 = inlined_call_operand.vmem [shape: f32[1,128], index: 4, kind: input, shape index: {}]   ;;  %s851_s5 = inlined_call_operand.vmem [shape: bf16[56,128], index: 5, kind: output, shape index: {}]  }
   0x1   :  { %v642_v0 = vld [vmem:[%s846_s1 + $0x78] sm:$0xff]   ;;  %v644_v2 = vld [vmem:[%s846_s1 + $0x70] sm:$0xff]   ;;  %v647_v5 = vld [vmem:[%s846_s1 + $0x68] sm:$0xff]  }
   0x2   :  { %v643_v1 = vld [vmem:[%s846_s1 + $0x38] sm:$0xff]   ;;  %566 = vmatprep.subr.bf16.mxu0 %v642_v0  ;;  %v646_v4 = vld [vmem:[%s846_s1 + $0x30] sm:$0xff]   ;;  %v649_v7 = vld [vmem:[%s846_s1 + $0x28] sm:$0xff]  }
   0x3   :  { %567 = vmatpush3.bf16.msra.mxu0 %v643_v1  ;;  %v645_v3 = vld [vmem:[%s846_s1 + $0xb8] sm:$0xff]   ;;  %v648_v6 = vld [vmem:[%s846_s1 + $0xb0] sm:$0xff]   ;;  %v650_v8 = vld [vmem:[%s846_s1 + $0x60] sm:$0xff]  }
   0x4   :  { %568 = vmatprep.subr.bf16.mxu0 %v644_v2  ;;  %618 = vmatprep.subr.bf16.mxu1 %v645_v3  ;;  %v651_v9 = vld [vmem:[%s846_s1 + $0xa8] sm:$0xff]   ;;  %v652_v10 = vld [vmem:[%s846_s1 + $0x20] sm:$0xff]   ;;  %v653_v11 = vld [vmem:[%s846_s1 + $0x58] sm:$0xff]  }
   0x5   :  { %619 = vmatpush3.bf16.msra.mxu1 %v645_v3  ;;  %v654_v12 = vld [vmem:[%s846_s1 + $0xa0] sm:$0xff]   ;;  %v655_v13 = vld [vmem:[%s846_s1 + $0x18] sm:$0xff]   ;;  %v656_v15 = vld [vmem:[%s846_s1 + $0x50] sm:$0xff]  }
   0x6   :  { %620 = vmatprep.subr.bf16.mxu1 %v648_v6  ;;  %v657_v14 = vld [vmem:[%s846_s1 + $0x98] sm:$0xff]   ;;  %v658_v16 = vld [vmem:[%s846_s1 + $0x10] sm:$0xff]   ;;  %v659_v18 = vld [vmem:[%s846_s1 + $0x48] sm:$0xff]  }
   0x7   :  { %569 = vmatpush3.bf16.msra.mxu0 %v646_v4  ;;  %v660_v17 = vld [vmem:[%s846_s1 + $0x90] sm:$0xff]   ;;  %v661_v19 = vld [vmem:[%s846_s1 + $0x8] sm:$0xff]   ;;  %v662_v20 = vld [vmem:[%s846_s1 + $0x40] sm:$0xff]  }
   0x8   :  { %570 = vmatprep.subr.bf16.mxu0 %v647_v5  ;;  %v663_v21 = vld [vmem:[%s846_s1 + $0x88] sm:$0xff]   ;;  %v667_v22 = vld [vmem:[%s847_s0 + $0x4] ss:$12 sps:$4 sm:$0xff]   ;;  %v674_v31 = vld [vmem:[%s847_s0 + $0x34] ss:$12 sps:$4 sm:$0xff]  }
   0x9   :  { %621 = vmatpush3.bf16.msra.mxu1 %v648_v6  ;;  %v664_v23 = vld [vmem:[%s846_s1] sm:$0xff]   ;;  %325 = vmatprep.mubr.bf16.mxu0 %v667_v22  ;;  %v669_v24 = vld [vmem:[%s847_s0 + $0x8] ss:$12 sps:$4 sm:$0xff]   ;;  %v678_v32 = vld [vmem:[%s847_s0 + $0x50] ss:$0 sps:$4 sm:$0xff]  }
   0xa   :  { %622 = vmatprep.subr.bf16.mxu1 %v651_v9  ;;  %v668_v25 = vld [vmem:[%s846_s1 + $0x80] sm:$0xff]   ;;  %634 = vmatprep.mubr.bf16.mxu1 %v669_v24  ;;  %v671_v27 = vld [vmem:[%s847_s0 + $0x1c] ss:$12 sps:$4 sm:$0xff]  }
   0xb   :  { %571 = vmatpush3.bf16.msra.mxu0 %v649_v7  ;;  %v665_v26 = vld [vmem:[%s847_s0] ss:$12 sps:$4 sm:$0xff]   ;;  %v677_v29 = vld [vmem:[%s847_s0 + $0x38] ss:$12 sps:$4 sm:$0xff]   ;;  %v676_v34 = vld [vmem:[%s847_s0 + $0x30] ss:$12 sps:$4 sm:$0xff]  }
   0xc   :  { %572 = vmatprep.subr.bf16.mxu0 %v650_v8  ;;  %v670_v28 = vld [vmem:[%s847_s0 + $0x20] ss:$12 sps:$4 sm:$0xff]   ;;  %v673_v30 = vld [vmem:[%s847_s0 + $0x18] ss:$12 sps:$4 sm:$0xff]  }
   0xd   :  { %623 = vmatpush3.bf16.msra.mxu1 %v651_v9  ;;  %v33_v33 = vld [vmem:[%s847_s0 + $0x48] sm:$0xff]  ;;  %v819_v39 = vld [vmem:[%s848_s2] ss:$0 sm:$0xff] }
   0xe   :  { %624 = vmatprep.subr.bf16.mxu1 %v654_v12  ;;  %v507_v35 = vcombine.high %v33_v33, %v33_v33  ;;  %v506_v36 = vcombine.low %v33_v33, %v33_v33  ;;  %v533_v53 = vld [vmem:[%s849_s3] ss:$0 sm:$0xff] }
   0xf   :  { %573 = vmatpush3.bf16.msra.mxu0 %v652_v10  ;;  %v534_v63 = vld [vmem:[%s850_s4] ss:$0 sm:$0xff] }
  0x10   :  { %574 = vmatprep.subr.bf16.mxu0 %v653_v11 }
  0x11   :  { %625 = vmatpush3.bf16.msra.mxu1 %v654_v12 }
  0x12   :  { %626 = vmatprep.subr.bf16.mxu1 %v657_v14 }
  0x13   :  { %575 = vmatpush3.bf16.msra.mxu0 %v655_v13 }
  0x14   :  { %576 = vmatprep.subr.bf16.mxu0 %v656_v15 }
  0x15   :  { %627 = vmatpush3.bf16.msra.mxu1 %v657_v14 }
  0x16   :  { %628 = vmatprep.subr.bf16.mxu1 %v660_v17 }
  0x17   :  { %577 = vmatpush3.bf16.msra.mxu0 %v658_v16 }
  0x18   :  { %578 = vmatprep.subr.bf16.mxu0 %v659_v18 }
  0x19   :  { %629 = vmatpush3.bf16.msra.mxu1 %v660_v17 }
  0x1a   :  { %630 = vmatprep.subr.bf16.mxu1 %v663_v21 }
  0x1b   :  { %579 = vmatpush3.bf16.msra.mxu0 %v661_v19 }
  0x1c   :  { %580 = vmatprep.subr.bf16.mxu0 %v662_v20 }
  0x1d   :  { %631 = vmatpush3.bf16.msra.mxu1 %v663_v21 }
  0x1e   :  { %632 = vmatprep.subr.bf16.mxu1 %v668_v25 }
  0x1f   :  { %581 = vmatpush3.bf16.msra.mxu0 %v664_v23 }
  0x21   :  { %633 = vmatpush3.bf16.msra.mxu1 %v668_v25 }
  0x22   :  { %326 = vmatmul.mubr.bf16.vlgmr.msra.gmra.mxu0 %v665_v26 }
  0x23   :  { %333 = vmatprep.mubr.bf16.mxu0 %v671_v27 }
  0x24   :  { %635 = vmatmul.mubr.bf16.vlgmr.msra.gmra.mxu1 %v670_v28 }
  0x25   :  { %638 = vmatprep.mubr.bf16.mxu1 %v677_v29 }
  0x2a   :  { %334 = vmatmul.mubr.bf16.gmra.mxu0 %v673_v30 }
  0x2b   :  { %341 = vmatprep.mubr.bf16.mxu0 %v674_v31 }
  0x2c   :  { %639 = vmatmul.mubr.bf16.gmra.mxu1 %v678_v32 }
  0x32   :  { %342 = vmatmul.mubr.bf16.gmra.mxu0 %v676_v34 }
  0x33   :  { %349 = vmatprep.mubr.bf16.mxu0 %v507_v35 }
  0x3a   :  { %350 = vmatmul.mubr.bf16.gmra.mxu0 %v506_v36 }
  0xe2   :  { %v582_v37 = vpop.f32.mrf.mxu0 }
  0xe4   :  { %v583_v38 = vpop.f32.mrf.mxu0  ;;  %v636_v41 = vpop.f32.mrf.mxu1 }
  0xe5   :  { %v584_v40 = vadd.f32 %v583_v38, %v582_v37 }
  0xe6   :  { %v585_v42 = vpop.f32.mrf.mxu0  ;;  %v391_v44 = vpop.f32.mrf.mxu1 }
  0xe7   :  { %v328_v43 = vadd.f32 %v584_v40, %v819_v39 }
  0xe8   :  { %v586_v45 = vpop.f32.mrf.mxu0  ;;  %v637_v48 = vpop.f32.mrf.mxu1 }
  0xe9   :  { %v587_v46 = vadd.f32 %v586_v45, %v585_v42  ;;  %v392_v47 = vadd.f32 %v391_v44, %v328_v43 }
  0xea   :  { %v588_v49 = vpop.f32.mrf.mxu0  ;;  %v394_v52 = vpop.f32.mrf.mxu1 }
  0xeb   :  { %v421_v50 = vmax.f32 %v392_v47, 0.0  ;;  %v331_v51 = vadd.f32 %v587_v46, %v819_v39 }
  0xec   :  { %v589_v54 = vpop.f32.mrf.mxu0  ;;  %v640_v57 = vpop.f32.mrf.mxu1 }
  0xed   :  { %v590_v55 = vadd.f32 %v589_v54, %v588_v49  ;;  %v395_v56 = vadd.f32 %v394_v52, %v331_v51  ;;  %v435_v59 = vmul.f32 %v533_v53, %v421_v50 }
  0xee   :  { %v591_v58 = vpop.f32.mrf.mxu0  ;;  %v407_v62 = vpop.f32.mrf.mxu1 }
  0xef   :  { %v336_v60 = vadd.f32 %v590_v55, %v819_v39  ;;  %v422_v61 = vmax.f32 %v395_v56, 0.0  ;;  %v449_v6 = vadd.f32 %v534_v63, %v435_v59 }
  0xf0   :  { %v592_v0 = vpop.f32.mrf.mxu0  ;;  %v641_v4 = vpop.f32.mrf.mxu1 }
  0xf1   :  { %v400_v1 = vadd.f32 %v636_v41, %v336_v60  ;;  %v436_v2 = vmul.f32 %v533_v53, %v422_v61  ;;  %v593_v3 = vadd.f32 %v592_v0, %v591_v58 }
  0xf2   :  { %v594_v5 = vpop.f32.mrf.mxu0  ;;  %v410_v27 = vpop.f32.mrf.mxu1 }
  0xf3   :  { %v423_v7 = vmax.f32 %v400_v1, 0.0  ;;  %v450_v8 = vadd.f32 %v534_v63, %v436_v2  ;;  %v339_v9 = vadd.f32 %v593_v3, %v819_v39 }
  0xf4   :  { %v595_v10 = vpop.f32.mrf.mxu0 }
  0xf5   :  { %v552_v11 = vpack.c.bf16 %v450_v8, %v449_v6  ;;  %v403_v12 = vadd.f32 %v637_v48, %v339_v9  ;;  %v596_v13 = vadd.f32 %v595_v10, %v594_v5  ;;  %v437_v15 = vmul.f32 %v533_v53, %v423_v7 }
  0xf6   :  { %v597_v14 = vpop.f32.mrf.mxu0 }
  0xf7   :  { %553 = vst [vmem:[%s851_s5] sm:$0xff] %v552_v11   ;;  %v424_v16 = vmax.f32 %v403_v12, 0.0  ;;  %v344_v17 = vadd.f32 %v596_v13, %v819_v39  ;;  %v451_v23 = vadd.f32 %v534_v63, %v437_v15 }
  0xf8   :  { %v598_v18 = vpop.f32.mrf.mxu0 }
  0xf9   :  { %v438_v19 = vmul.f32 %v533_v53, %v424_v16  ;;  %v408_v20 = vadd.f32 %v407_v62, %v344_v17  ;;  %v599_v21 = vadd.f32 %v598_v18, %v597_v14 }
  0xfa   :  { %v600_v22 = vpop.f32.mrf.mxu0 }
  0xfb   :  { %v452_v24 = vadd.f32 %v534_v63, %v438_v19  ;;  %v425_v25 = vmax.f32 %v408_v20, 0.0  ;;  %v347_v26 = vadd.f32 %v599_v21, %v819_v39 }
  0xfc   :  { %v601_v28 = vpop.f32.mrf.mxu0 }
  0xfd   :  { %v557_v29 = vpack.c.bf16 %v452_v24, %v451_v23  ;;  %v411_v30 = vadd.f32 %v410_v27, %v347_v26  ;;  %v602_v31 = vadd.f32 %v601_v28, %v600_v22  ;;  %v439_v33 = vmul.f32 %v533_v53, %v425_v25 }
  0xfe   :  { %v603_v32 = vpop.f32.mrf.mxu0 }
  0xff   :  { %564 = vst [vmem:[%s851_s5 + $0x8] sm:$0xff] %v557_v29   ;;  %v426_v34 = vmax.f32 %v411_v30, 0.0  ;;  %v352_v35 = vadd.f32 %v602_v31, %v819_v39  ;;  %v453_v40 = vadd.f32 %v534_v63, %v439_v33 }
 0x100   :  { %v604_v36 = vpop.f32.mrf.mxu0 }
 0x101   :  { %v440_v37 = vmul.f32 %v533_v53, %v426_v34  ;;  %v416_v38 = vadd.f32 %v640_v57, %v352_v35 }
 0x103   :  { %v454_v41 = vadd.f32 %v534_v63, %v440_v37  ;;  %v427_v42 = vmax.f32 %v416_v38, 0.0 }
 0x105   :  { %v562_v43 = vpack.c.bf16 %v454_v41, %v453_v40  ;;  %v441_v44 = vmul.f32 %v533_v53, %v427_v42 }
 0x107   :  { %565 = vst [vmem:[%s851_s5 + $0x10] sm:$0xff] %v562_v43   ;;  %v455_v45 = vadd.f32 %v534_v63, %v441_v44 }
 0x109   :  { %v548_v46 = vpack.c.bf16 %v455_v45, %v455_v45 }
 0x10b   :  { %491 = vst [vmem:[%s851_s5 + $0x18] sm:$0xf] %v548_v46 }

// kernel: crnn_forward.13
= control target key start
LH: loop header
LB: loop body
LE: loop exit
PB: predicated region body
PF: predicated region fallthrough
CT: control target
= control target key end

     0   :  { %s979_s1 = inlined_call_operand.vmem [shape: bf16[640,128], index: 1, kind: input, shape index: {}]   ;;  %s980_s0 = inlined_call_operand.vmem [shape: bf16[24,640], index: 0, kind: input, shape index: {}]   ;;  %s981_s2 = inlined_call_operand.vmem [shape: f32[1,128], index: 2, kind: input, shape index: {}]   ;;  %s982_s3 = inlined_call_operand.vmem [shape: f32[1,128], index: 3, kind: input, shape index: {}]   ;;  %s983_s4 = inlined_call_operand.vmem [shape: f32[1,128], index: 4, kind: input, shape index: {}]   ;;  %s984_s5 = inlined_call_operand.vmem [shape: bf16[24,128], index: 5, kind: output, shape index: {}]  }
   0x1   :  { %v738_v0 = vld [vmem:[%s979_s1 + $0x78] sm:$0xff]   ;;  %v742_v4 = vld [vmem:[%s979_s1 + $0x70] sm:$0xff]   ;;  %v746_v8 = vld [vmem:[%s979_s1 + $0x68] sm:$0xff]  }
   0x2   :  { %v739_v1 = vld [vmem:[%s979_s1 + $0x38] sm:$0xff]   ;;  %652 = vmatprep.subr.bf16.mxu0 %v738_v0  ;;  %v743_v5 = vld [vmem:[%s979_s1 + $0x30] sm:$0xff]   ;;  %v747_v9 = vld [vmem:[%s979_s1 + $0x28] sm:$0xff]  }
   0x3   :  { %v740_v2 = vld [vmem:[%s979_s1 + $0xf8] sm:$0xff]   ;;  %653 = vmatpush3.bf16.msra.mxu0 %v739_v1  ;;  %v744_v6 = vld [vmem:[%s979_s1 + $0xf0] sm:$0xff]   ;;  %v748_v10 = vld [vmem:[%s979_s1 + $0xe8] sm:$0xff]  }
   0x4   :  { %v741_v3 = vld [vmem:[%s979_s1 + $0xb8] sm:$0xff]   ;;  %680 = vmatprep.subr.bf16.mxu1 %v740_v2  ;;  %654 = vmatprep.subr.bf16.mxu0 %v742_v4  ;;  %v745_v7 = vld [vmem:[%s979_s1 + $0xb0] sm:$0xff]   ;;  %v749_v11 = vld [vmem:[%s979_s1 + $0xa8] sm:$0xff]  }
   0x5   :  { %681 = vmatpush3.bf16.msra.mxu1 %v741_v3  ;;  %v750_v12 = vld [vmem:[%s979_s1 + $0x60] sm:$0xff]   ;;  %v754_v16 = vld [vmem:[%s979_s1 + $0x58] sm:$0xff]   ;;  %v758_v20 = vld [vmem:[%s979_s1 + $0x50] sm:$0xff]  }
   0x6   :  { %682 = vmatprep.subr.bf16.mxu1 %v744_v6  ;;  %v751_v13 = vld [vmem:[%s979_s1 + $0x20] sm:$0xff]   ;;  %v755_v17 = vld [vmem:[%s979_s1 + $0x18] sm:$0xff]   ;;  %v759_v21 = vld [vmem:[%s979_s1 + $0x10] sm:$0xff]  }
   0x7   :  { %655 = vmatpush3.bf16.msra.mxu0 %v743_v5  ;;  %v752_v14 = vld [vmem:[%s979_s1 + $0xe0] sm:$0xff]   ;;  %v756_v18 = vld [vmem:[%s979_s1 + $0xd8] sm:$0xff]   ;;  %v760_v22 = vld [vmem:[%s979_s1 + $0xd0] sm:$0xff]  }
   0x8   :  { %656 = vmatprep.subr.bf16.mxu0 %v746_v8  ;;  %v753_v15 = vld [vmem:[%s979_s1 + $0xa0] sm:$0xff]   ;;  %v757_v19 = vld [vmem:[%s979_s1 + $0x98] sm:$0xff]   ;;  %v761_v23 = vld [vmem:[%s979_s1 + $0x90] sm:$0xff]  }
   0x9   :  { %683 = vmatpush3.bf16.msra.mxu1 %v745_v7  ;;  %v762_v24 = vld [vmem:[%s979_s1 + $0x48] sm:$0xff]   ;;  %v766_v28 = vld [vmem:[%s979_s1 + $0x40] sm:$0xff]   ;;  %v773_v34 = vld [vmem:[%s979_s1 + $0x138] sm:$0xff]  }
   0xa   :  { %684 = vmatprep.subr.bf16.mxu1 %v748_v10  ;;  %v763_v25 = vld [vmem:[%s979_s1 + $0x8] sm:$0xff]   ;;  %v767_v29 = vld [vmem:[%s979_s1] sm:$0xff]   ;;  %v777_v37 = vld [vmem:[%s979_s1 + $0x130] sm:$0xff]  }
   0xb   :  { %657 = vmatpush3.bf16.msra.mxu0 %v747_v9  ;;  %v764_v26 = vld [vmem:[%s979_s1 + $0xc8] sm:$0xff]   ;;  %v768_v30 = vld [vmem:[%s979_s1 + $0xc0] sm:$0xff]   ;;  %v28_v42 = vld [vmem:[%s980_s0 + $0x30] sm:$0xff] }
   0xc   :  { %658 = vmatprep.subr.bf16.mxu0 %v750_v12  ;;  %v765_v27 = vld [vmem:[%s979_s1 + $0x88] sm:$0xff]   ;;  %v769_v31 = vld [vmem:[%s980_s0] ss:$20 sps:$4 sm:$0xff]   ;;  %v771_v32 = vld [vmem:[%s980_s0 + $0x4] ss:$20 sps:$4 sm:$0xff]   ;;  %v597_v44 = vcombine.high %v28_v42, %v28_v42  ;;  %v596_v45 = vcombine.low %v28_v42, %v28_v42 }
   0xd   :  { %685 = vmatpush3.bf16.msra.mxu1 %v749_v11  ;;  %v772_v33 = vld [vmem:[%s979_s1 + $0x80] sm:$0xff]   ;;  %433 = vmatprep.mubr.bf16.mxu0 %v771_v32  ;;  %v774_v35 = vld [vmem:[%s980_s0 + $0x8] ss:$20 sps:$4 sm:$0xff]   ;;  %v783_v48 = vld [vmem:[%s979_s1 + $0x110] sm:$0xff]  }
   0xe   :  { %686 = vmatprep.subr.bf16.mxu1 %v752_v14  ;;  %v776_v36 = vld [vmem:[%s980_s0 + $0xc] ss:$20 sps:$4 sm:$0xff]   ;;  %v788_v46 = vld [vmem:[%s980_s0 + $0x10] ss:$20 sps:$4 sm:$0xff]   ;;  %v780_v47 = vld [vmem:[%s979_s1 + $0x118] sm:$0xff]  }
   0xf   :  { %659 = vmatpush3.bf16.msra.mxu0 %v751_v13  ;;  %481 = vmatprep.mubr.bf16.mxu1 %v776_v36  ;;  %v778_v38 = vld [vmem:[%s979_s1 + $0x128] sm:$0xff]   ;;  %v779_v43 = vld [vmem:[%s979_s1 + $0x120] sm:$0xff]   ;;  %v789_v51 = vld [vmem:[%s980_s0 + $0x38] ss:$0 sps:$4 sm:$0xff]  }
  0x10   :  { %660 = vmatprep.subr.bf16.mxu0 %v754_v16  ;;  %v27_v39 = vld [vmem:[%s980_s0 + $0x28] sm:$0xff]  ;;  %v787_v50 = vld [vmem:[%s979_s1 + $0x100] sm:$0xff]  }
  0x11   :  { %687 = vmatpush3.bf16.msra.mxu1 %v753_v15  ;;  %v595_v40 = vcombine.high %v27_v39, %v27_v39  ;;  %v594_v41 = vcombine.low %v27_v39, %v27_v39  ;;  %v786_v49 = vld [vmem:[%s979_s1 + $0x108] sm:$0xff]   ;;  %v588_v6 = vld [vmem:[%s981_s2] ss:$0 sm:$0xff] }
  0x12   :  { %688 = vmatprep.subr.bf16.mxu1 %v756_v18  ;;  %v639_v18 = vld [vmem:[%s982_s3] ss:$0 sm:$0xff] }
  0x13   :  { %661 = vmatpush3.bf16.msra.mxu0 %v755_v17 }
  0x14   :  { %662 = vmatprep.subr.bf16.mxu0 %v758_v20 }
  0x15   :  { %689 = vmatpush3.bf16.msra.mxu1 %v757_v19 }
  0x16   :  { %690 = vmatprep.subr.bf16.mxu1 %v760_v22  ;;  %v640_v22 = vld [vmem:[%s983_s4] ss:$0 sm:$0xff] }
  0x17   :  { %663 = vmatpush3.bf16.msra.mxu0 %v759_v21 }
  0x18   :  { %664 = vmatprep.subr.bf16.mxu0 %v762_v24 }
  0x19   :  { %691 = vmatpush3.bf16.msra.mxu1 %v761_v23 }
  0x1a   :  { %692 = vmatprep.subr.bf16.mxu1 %v764_v26 }
  0x1b   :  { %665 = vmatpush3.bf16.msra.mxu0 %v763_v25 }
  0x1c   :  { %666 = vmatprep.subr.bf16.mxu0 %v766_v28 }
  0x1d   :  { %693 = vmatpush3.bf16.msra.mxu1 %v765_v27 }
  0x1e   :  { %694 = vmatprep.subr.bf16.mxu1 %v768_v30 }
  0x1f   :  { %667 = vmatpush3.bf16.msra.mxu0 %v767_v29 }
  0x20   :  { %718 = vmatprep.subr.bf16.mxu0 %v773_v34 }
  0x21   :  { %695 = vmatpush3.bf16.msra.mxu1 %v772_v33 }
  0x22   :  { %434 = vmatmul.mubr.bf16.vlgmr.msra.gmra.mxu0 %v769_v31 }
  0x23   :  { %719 = vmatpush3.bf16.msra.mxu0 %v773_v34  ;;  %441 = vmatprep.mubr.bf16.mxu0 %v595_v40 }
  0x24   :  { %482 = vmatmul.mubr.bf16.vlgmr.msra.gmra.mxu1 %v774_v35  ;;  %720 = vmatprep.subr.bf16.mxu0 %v777_v37 }
  0x25   :  { %489 = vmatprep.mubr.bf16.mxu1 %v597_v44 }
  0x27   :  { %721 = vmatpush3.bf16.msra.mxu0 %v777_v37 }
  0x28   :  { %722 = vmatprep.subr.bf16.mxu0 %v778_v38 }
  0x2a   :  { %442 = vmatmul.mubr.bf16.gmra.mxu0 %v594_v41 }
  0x2b   :  { %723 = vmatpush3.bf16.msra.mxu0 %v778_v38  ;;  %734 = vmatprep.mubr.bf16.mxu0 %v788_v46 }
  0x2c   :  { %724 = vmatprep.subr.bf16.mxu0 %v779_v43  ;;  %490 = vmatmul.mubr.bf16.gmra.mxu1 %v596_v45 }
  0x2f   :  { %725 = vmatpush3.bf16.msra.mxu0 %v779_v43 }
  0x30   :  { %726 = vmatprep.subr.bf16.mxu0 %v780_v47 }
  0x33   :  { %727 = vmatpush3.bf16.msra.mxu0 %v780_v47 }
  0x34   :  { %728 = vmatprep.subr.bf16.mxu0 %v783_v48 }
  0x37   :  { %729 = vmatpush3.bf16.msra.mxu0 %v783_v48 }
  0x38   :  { %730 = vmatprep.subr.bf16.mxu0 %v786_v49 }
  0x3b   :  { %731 = vmatpush3.bf16.msra.mxu0 %v786_v49 }
  0x3c   :  { %732 = vmatprep.subr.bf16.mxu0 %v787_v50 }
  0x3f   :  { %733 = vmatpush3.bf16.msra.mxu0 %v787_v50 }
  0x42   :  { %735 = vmatmul.mubr.bf16.vlgmr.msra.gmra.mxu0 %v789_v51 }
  0xe2   :  { %v668_v52 = vpop.f32.mrf.mxu0 }
  0xe4   :  { %v669_v53 = vpop.f32.mrf.mxu0  ;;  %v696_v54 = vpop.f32.mrf.mxu1 }
  0xe5   :  { %v670_v5 = vadd.f32 %v669_v53, %v668_v52 }
  0xe6   :  { %v671_v55 = vpop.f32.mrf.mxu0  ;;  %v697_v56 = vpop.f32.mrf.mxu1 }
  0xe7   :  { %v436_v9 = vadd.f32 %v670_v5, %v588_v6  ;;  %v698_v10 = vadd.f32 %v697_v56, %v696_v54 }
  0xe8   :  { %v672_v57 = vpop.f32.mrf.mxu0  ;;  %v699_v58 = vpop.f32.mrf.mxu1 }
  0xe9   :  { %v673_v11 = vadd.f32 %v672_v57, %v671_v55  ;;  %v484_v17 = vadd.f32 %v698_v10, %v436_v9 }
  0xea   :  { %v674_v59 = vpop.f32.mrf.mxu0  ;;  %v700_v60 = vpop.f32.mrf.mxu1 }
  0xeb   :  { %v439_v14 = vadd.f32 %v673_v11, %v588_v6  ;;  %v701_v15 = vadd.f32 %v700_v60, %v699_v58 }
  0xec   :  { %v675_v61 = vpop.f32.mrf.mxu0  ;;  %v702_v62 = vpop.f32.mrf.mxu1 }
  0xed   :  { %v676_v4 = vadd.f32 %v675_v61, %v674_v59  ;;  %v487_v26 = vadd.f32 %v701_v15, %v439_v14 }
  0xee   :  { %v677_v63 = vpop.f32.mrf.mxu0  ;;  %v703_v0 = vpop.f32.mrf.mxu1 }
  0xef   :  { %v444_v7 = vadd.f32 %v676_v4, %v588_v6  ;;  %v704_v8 = vadd.f32 %v703_v0, %v702_v62 }
  0xf0   :  { %v678_v1 = vpop.f32.mrf.mxu0  ;;  %v705_v2 = vpop.f32.mrf.mxu1 }
  0xf1   :  { %v492_v12 = vadd.f32 %v704_v8, %v444_v7 }
  0xf2   :  { %v706_v3 = vpop.f32.mrf.mxu1 }
 0x102   :  { %v736_v13 = vpop.f32.mrf.mxu0 }
 0x103   :  { %v540_v16 = vadd.f32 %v736_v13, %v492_v12 }
 0x104   :  { %v531_v19 = vpop.f32.mrf.mxu0 }
 0x105   :  { %v547_v20 = vmax.f32 %v540_v16, 0.0  ;;  %v532_v21 = vadd.f32 %v531_v19, %v484_v17 }
 0x106   :  { %v737_v23 = vpop.f32.mrf.mxu0 }
 0x107   :  { %v557_v24 = vmul.f32 %v639_v18, %v547_v20  ;;  %v545_v25 = vmax.f32 %v532_v21, 0.0 }
 0x108   :  { %v534_v27 = vpop.f32.mrf.mxu0 }
 0x109   :  { %v567_v28 = vadd.f32 %v640_v22, %v557_v24  ;;  %v535_v29 = vadd.f32 %v534_v27, %v487_v26  ;;  %v555_v31 = vmul.f32 %v639_v18, %v545_v25 }
 0x10b   :  { %v646_v30 = vpack.c.bf16 %v567_v28, %v567_v28  ;;  %v546_v32 = vmax.f32 %v535_v29, 0.0  ;;  %v565_v34 = vadd.f32 %v640_v22, %v555_v31 }
 0x10d   :  { %583 = vst [vmem:[%s984_s5 + $0x8] sm:$0xf] %v646_v30  ;;  %v556_v33 = vmul.f32 %v639_v18, %v546_v32 }
 0x10f   :  { %v566_v35 = vadd.f32 %v640_v22, %v556_v33 }
 0x111   :  { %v650_v36 = vpack.c.bf16 %v566_v35, %v565_v34 }
 0x113   :  { %651 = vst [vmem:[%s984_s5] sm:$0xff] %v650_v36  }

// kernel: crnn_forward.14
= control target key start
LH: loop header
LB: loop body
LE: loop exit
PB: predicated region body
PF: predicated region fallthrough
CT: control target
= control target key end

     0   :  { %v234_v0 = vmov 0.0   ;;  %vm235_vm0 = vmmov 0   ;;  %s305_s1 = inlined_call_operand.vmem [shape: bf16[128,128], index: 1, kind: input, shape index: {}]   ;;  %s306_s0 = inlined_call_operand.vmem [shape: bf16[16,128], index: 0, kind: input, shape index: {}]   ;;  %s307_s2 = inlined_call_operand.vmem [shape: f32[1,128], index: 2, kind: input, shape index: {}]   ;;  %s308_s3 = inlined_call_operand.vmem [shape: f32[1,128], index: 3, kind: input, shape index: {}]   ;;  %s309_s4 = inlined_call_operand.vmem [shape: f32[1,128], index: 4, kind: input, shape index: {}]   ;;  %s310_s5 = inlined_call_operand.vmem [shape: bf16[16,128], index: 5, kind: output, shape index: {}]  }
   0x1   :  { %203 = vmatprep.subr.bf16.mxu0 %v234_v0  ;;  %v225_v1 = vld [vmem:[%s305_s1 + $0x38] sm:$0xff]   ;;  %219 = vmatprep.mubr.msk.bf16.mxu0 %vm235_vm0, %v234_v0  ;;  %v226_v2 = vld [vmem:[%s305_s1 + $0x30] sm:$0xff]   ;;  %v227_v3 = vld [vmem:[%s305_s1 + $0x28] sm:$0xff]  }
   0x2   :  { %204 = vmatpush3.bf16.msra.mxu0 %v225_v1  ;;  %v228_v4 = vld [vmem:[%s305_s1 + $0x20] sm:$0xff]   ;;  %v229_v5 = vld [vmem:[%s305_s1 + $0x18] sm:$0xff]   ;;  %v230_v6 = vld [vmem:[%s305_s1 + $0x10] sm:$0xff]  }
   0x3   :  { %205 = vmatprep.subr.bf16.mxu0 %v234_v0  ;;  %v231_v7 = vld [vmem:[%s305_s1 + $0x8] sm:$0xff]   ;;  %v232_v8 = vld [vmem:[%s305_s1] sm:$0xff]  }
   0x4   :  { %v233_v9 = vld [vmem:[%s306_s0] sm:$0xff]  }
   0x5   :  { %v173_v10 = vld [vmem:[%s307_s2] ss:$0 sm:$0xff] }
   0x6   :  { %206 = vmatpush3.bf16.msra.mxu0 %v226_v2  ;;  %v183_v13 = vld [vmem:[%s308_s3] ss:$0 sm:$0xff] }
   0x7   :  { %207 = vmatprep.subr.bf16.mxu0 %v234_v0  ;;  %v184_v18 = vld [vmem:[%s309_s4] ss:$0 sm:$0xff] }
   0xa   :  { %208 = vmatpush3.bf16.msra.mxu0 %v227_v3 }
   0xb   :  { %209 = vmatprep.subr.bf16.mxu0 %v234_v0 }
   0xe   :  { %210 = vmatpush3.bf16.msra.mxu0 %v228_v4 }
   0xf   :  { %211 = vmatprep.subr.bf16.mxu0 %v234_v0 }
  0x12   :  { %212 = vmatpush3.bf16.msra.mxu0 %v229_v5 }
  0x13   :  { %213 = vmatprep.subr.bf16.mxu0 %v234_v0 }
  0x16   :  { %214 = vmatpush3.bf16.msra.mxu0 %v230_v6 }
  0x17   :  { %215 = vmatprep.subr.bf16.mxu0 %v234_v0 }
  0x1a   :  { %216 = vmatpush3.bf16.msra.mxu0 %v231_v7 }
  0x1b   :  { %217 = vmatprep.subr.bf16.mxu0 %v234_v0 }
  0x1e   :  { %218 = vmatpush3.bf16.msra.mxu0 %v232_v8 }
  0x21   :  { %220 = vmatmul.mubr.bf16.vlgmr.msra.gmra.mxu0 %v233_v9 }
  0xe1   :  { %v134_v11 = vpop.f32.mrf.mxu0 }
  0xe2   :  { %v135_v12 = vadd.f32 %v173_v10, %v134_v11 }
  0xe3   :  { %v221_v14 = vpop.f32.mrf.mxu0 }
  0xe4   :  { %v148_v16 = vmul.f32 %v183_v13, %v135_v12 }
  0xe5   :  { %v137_v15 = vpop.f32.mrf.mxu0 }
  0xe6   :  { %v138_v17 = vadd.f32 %v173_v10, %v137_v15  ;;  %v157_v21 = vadd.f32 %v184_v18, %v148_v16 }
  0xe7   :  { %v222_v19 = vpop.f32.mrf.mxu0 }
  0xe8   :  { %v149_v20 = vmul.f32 %v183_v13, %v138_v17 }
  0xea   :  { %v158_v22 = vadd.f32 %v184_v18, %v149_v20 }
  0xec   :  { %v192_v23 = vpack.c.bf16 %v158_v22, %v157_v21 }
  0xee   :  { %193 = vst [vmem:[%s310_s5] sm:$0xff] %v192_v23  }

// kernel: crnn_forward.15
= control target key start
LH: loop header
LB: loop body
LE: loop exit
PB: predicated region body
PF: predicated region fallthrough
CT: control target
= control target key end

     0   :  { %s1014_s12 = smov 0   ;;  %s1016_s13 = smov 0   ;;  %s1199_s0 = inlined_call_operand.vmem [shape: bf16[16,128], index: 0, kind: input, shape index: {}]   ;;  %s1200_s1 = inlined_call_operand.vmem [shape: bf16[128,1024], index: 1, kind: input, shape index: {}]   ;;  %s1201_s2 = inlined_call_operand.vmem [shape: f32[1,1024], index: 2, kind: input, shape index: {}]   ;;  %s1202_s3 = inlined_call_operand.vmem [shape: bf16[16,1024], index: 3, kind: output, shape index: {}]  }
   0x1   :  { %s1018_s14 = smov 0   ;;  %s1020_s15 = smov 0  }
   0x2   :  { %s1022_s16 = smov 0  }
   0x3 LB: > { %s28_s17 = sadd.s32 1, %s987_s15  ;;  %s803_s18 = sadd.s32 4294967295, %s991_s16   ;;  %s991_s16 = sphi %s1022_s16, %s13_s16   ;;  %s987_s15 = sphi %s1020_s15, %s1207_s15   ;;  %s983_s14 = sphi %s1018_s14, %s1206_s14   ;;  %s979_s13 = sphi %s1016_s13, %s1205_s13   ;;  %s975_s12 = sphi %s1014_s12, %s1204_s12  }
   0x4   : > { %p30_p0 = scmp.ge.s32.totalorder %s28_s17, 2  ;;  %p76_p1 = scmp.ne.s32.totalorder %s979_s13, %s975_s12 }
   0x5   : > { %p77_p2 = scmp.eq.s32.totalorder %s991_s16, 0  ;;  %p134_p4 = scmp.eq.s32.totalorder %s803_s18, 1 }
   0x6   : > { %s1209_s17 = smov (%p30_p0, %s28_s17), 0  ;;  %s69_s20 = sadd.s32 1, %s979_s13 }
   0x7   : > { %p78_p3 = por %p77_p2, %p76_p1  ;;  %s65_s19 = ssub.s32 %s987_s15, %s1209_s17 }
   0x8   : > { %p67_p5 = scmp.eq.s32.totalorder %s65_s19, 0  ;;  %p1049_p6 = por %p134_p4, %p76_p1 }
   0x9   : > { %p807_p7 = scmp.ge.s32.totalorder %s991_s16, 2 }
   0xa   : > { %s1054_s22 = scalar_select %p67_p5, %s979_s13, %s69_s20  }
   0xb   : > { %168 = sbr.rel (%p807_p7) target bundleno = 36 (0x24), region = 20 }
  0x10   : > { %171 = sbr.rel (!%p78_p3) target bundleno = 36 (0x24), region = 24  ;;  %s173_s23 = sand.u32 (%p78_p3), 1, %s979_s13  }
  0x11   : > { %s857_s24 = sshll.u32 (%p78_p3), %s987_s15, 4  ;;  %s808_s25 = sshll.u32 (%p78_p3), %s173_s23, 8 }
  0x12   : > { %s1062_s28 = scalar_lea.vmem (%p78_p3), %s1200_s1, %s857_s24  ;;  %s1067_s29 = scalar_lea.vmem (%p78_p3), [#allocation2], %s808_s25 }
  0x13   : > { %v194_v0 = vld [vmem:[%s1062_s28] sm:$0xff] (%p78_p3)  ;;  %v196_v1 = vld [vmem:[%s1062_s28 + $0x8] sm:$0xff] (%p78_p3) }
  0x14   : > { %v198_v2 = vld [vmem:[%s1062_s28 + $0x20] sm:$0xff] (%p78_p3)  ;;  %195 = vst [vmem:[%s1067_s29] sm:$0xff] (%p78_p3), %v194_v0  ;;  %197 = vst [vmem:[%s1067_s29 + $0x8] sm:$0xff] (%p78_p3), %v196_v1  ;;  %v200_v3 = vld [vmem:[%s1062_s28 + $0x28] sm:$0xff] (%p78_p3) }
  0x15   : > { %199 = vst [vmem:[%s1067_s29 + $0x10] sm:$0xff] %v198_v2  ;;  %v202_v4 = vld [vmem:[%s1062_s28 + $0x40] sm:$0xff]  ;;  %v204_v5 = vld [vmem:[%s1062_s28 + $0x48] sm:$0xff]  ;;  %201 = vst [vmem:[%s1067_s29 + $0x18] sm:$0xff] %v200_v3 }
  0x16   : > { %203 = vst [vmem:[%s1067_s29 + $0x20] sm:$0xff] %v202_v4  ;;  %205 = vst [vmem:[%s1067_s29 + $0x28] sm:$0xff] %v204_v5  ;;  %v206_v6 = vld [vmem:[%s1062_s28 + $0x60] sm:$0xff]  ;;  %v208_v7 = vld [vmem:[%s1062_s28 + $0x68] sm:$0xff] }
  0x17   : > { %v210_v8 = vld [vmem:[%s1062_s28 + $0x80] sm:$0xff]  ;;  %207 = vst [vmem:[%s1067_s29 + $0x30] sm:$0xff] %v206_v6  ;;  %209 = vst [vmem:[%s1067_s29 + $0x38] sm:$0xff] %v208_v7  ;;  %v212_v9 = vld [vmem:[%s1062_s28 + $0x88] sm:$0xff] }
  0x18   : > { %211 = vst [vmem:[%s1067_s29 + $0x40] sm:$0xff] %v210_v8  ;;  %v214_v10 = vld [vmem:[%s1062_s28 + $0xa0] sm:$0xff]  ;;  %v216_v11 = vld [vmem:[%s1062_s28 + $0xa8] sm:$0xff]  ;;  %213 = vst [vmem:[%s1067_s29 + $0x48] sm:$0xff] %v212_v9 }
  0x19   : > { %215 = vst [vmem:[%s1067_s29 + $0x50] sm:$0xff] %v214_v10  ;;  %217 = vst [vmem:[%s1067_s29 + $0x58] sm:$0xff] %v216_v11  ;;  %v218_v12 = vld [vmem:[%s1062_s28 + $0xc0] sm:$0xff]  ;;  %v220_v13 = vld [vmem:[%s1062_s28 + $0xc8] sm:$0xff] }
  0x1a   : > { %v222_v14 = vld [vmem:[%s1062_s28 + $0xe0] sm:$0xff]  ;;  %219 = vst [vmem:[%s1067_s29 + $0x60] sm:$0xff] %v218_v12  ;;  %221 = vst [vmem:[%s1067_s29 + $0x68] sm:$0xff] %v220_v13  ;;  %v224_v15 = vld [vmem:[%s1062_s28 + $0xe8] sm:$0xff] }
  0x1b   : > { %223 = vst [vmem:[%s1067_s29 + $0x70] sm:$0xff] %v222_v14  ;;  %v226_v16 = vld [vmem:[%s1062_s28 + $0x100] sm:$0xff]  ;;  %v228_v17 = vld [vmem:[%s1062_s28 + $0x108] sm:$0xff]  ;;  %225 = vst [vmem:[%s1067_s29 + $0x78] sm:$0xff] %v224_v15 }
  0x1c   : > { %227 = vst [vmem:[%s1067_s29 + $0x80] sm:$0xff] %v226_v16  ;;  %229 = vst [vmem:[%s1067_s29 + $0x88] sm:$0xff] %v228_v17  ;;  %v230_v18 = vld [vmem:[%s1062_s28 + $0x120] sm:$0xff]  ;;  %v232_v19 = vld [vmem:[%s1062_s28 + $0x128] sm:$0xff] }
  0x1d   : > { %v234_v20 = vld [vmem:[%s1062_s28 + $0x140] sm:$0xff]  ;;  %231 = vst [vmem:[%s1067_s29 + $0x90] sm:$0xff] %v230_v18  ;;  %233 = vst [vmem:[%s1067_s29 + $0x98] sm:$0xff] %v232_v19  ;;  %v236_v21 = vld [vmem:[%s1062_s28 + $0x148] sm:$0xff] }
  0x1e   : > { %235 = vst [vmem:[%s1067_s29 + $0xa0] sm:$0xff] %v234_v20  ;;  %v238_v22 = vld [vmem:[%s1062_s28 + $0x160] sm:$0xff]  ;;  %v240_v23 = vld [vmem:[%s1062_s28 + $0x168] sm:$0xff]  ;;  %237 = vst [vmem:[%s1067_s29 + $0xa8] sm:$0xff] %v236_v21 }
  0x1f   : > { %239 = vst [vmem:[%s1067_s29 + $0xb0] sm:$0xff] %v238_v22  ;;  %241 = vst [vmem:[%s1067_s29 + $0xb8] sm:$0xff] %v240_v23  ;;  %v242_v24 = vld [vmem:[%s1062_s28 + $0x180] sm:$0xff]  ;;  %v244_v25 = vld [vmem:[%s1062_s28 + $0x188] sm:$0xff] }
  0x20   : > { %v246_v26 = vld [vmem:[%s1062_s28 + $0x1a0] sm:$0xff]  ;;  %243 = vst [vmem:[%s1067_s29 + $0xc0] sm:$0xff] %v242_v24  ;;  %245 = vst [vmem:[%s1067_s29 + $0xc8] sm:$0xff] %v244_v25  ;;  %v248_v27 = vld [vmem:[%s1062_s28 + $0x1a8] sm:$0xff] }
  0x21   : > { %247 = vst [vmem:[%s1067_s29 + $0xd0] sm:$0xff] %v246_v26  ;;  %v250_v28 = vld [vmem:[%s1062_s28 + $0x1c0] sm:$0xff]  ;;  %v252_v29 = vld [vmem:[%s1062_s28 + $0x1c8] sm:$0xff]  ;;  %249 = vst [vmem:[%s1067_s29 + $0xd8] sm:$0xff] %v248_v27 }
  0x22   : > { %251 = vst [vmem:[%s1067_s29 + $0xe0] sm:$0xff] %v250_v28  ;;  %253 = vst [vmem:[%s1067_s29 + $0xe8] sm:$0xff] %v252_v29  ;;  %v254_v30 = vld [vmem:[%s1062_s28 + $0x1e0] sm:$0xff]  ;;  %v256_v31 = vld [vmem:[%s1062_s28 + $0x1e8] sm:$0xff] }
  0x23   : > { %255 = vst [vmem:[%s1067_s29 + $0xf0] sm:$0xff] %v254_v30  ;;  %257 = vst [vmem:[%s1067_s29 + $0xf8] sm:$0xff] %v256_v31 }
  0x24 PF: > { %p811_p8 = scmp.ge.s32.totalorder %s991_s16, 1  ;;  %p270_p9 = scmp.lt.s32.totalorder %s991_s16, 3 }
  0x26   : > { %p271_p10 = pnand %p811_p8, %p270_p9 }
  0x27   : > { %s277_s30 = sand.u32 (!%p271_p10), 1, %s975_s12   ;;  %s814_s8 = sshll.u32 (!%p271_p10), %s983_s14, 2 }
  0x28   : > { %274 = sbr.rel (%p271_p10) target bundleno = 291 (0x123), region = 51  ;;  %s812_s4 = sshll.u32 (!%p271_p10), %s277_s30, 8 }
  0x29   : > { %s1135_s5 = scalar_lea.vmem (!%p271_p10), [#allocation2], %s812_s4  ;;  %p323_p11 = scmp.lt.s32.totalorder (!%p271_p10), %s814_s8, 7 }
  0x2a   : > { %s813_s18 = sshll.u32 (!%p271_p10), %s277_s30, 5 }
  0x2b   : > { %s310_s19 = scalar_lea.vmem (!%p271_p10), [#allocation3], %s813_s18 }
  0x2d   : > { %v993_v32 = vmov 0   ;;  %v904_v33 = vld [vmem:[%s1135_s5 + $0xe4] ss:$16 sps:$4 sm:$0xff]   ;;  %v906_v34 = vld [vmem:[%s1135_s5 + $0xec] ss:$16 sps:$4 sm:$0xff]   ;;  %v366_v2 = vlaneseq  ;;  %s1211_s8 = smov (!%p323_p11, %s814_s8), 7 }
  0x2e   : > { %584 = vmatprep.mubr.bf16.mxu0 %v993_v32  ;;  %627 = vmatprep.mubr.bf16.mxu1 %v993_v32  ;;  %v908_v35 = vld [vmem:[%s1135_s5 + $0xe0] ss:$16 sps:$4 sm:$0xff]   ;;  %v909_v36 = vld [vmem:[%s1135_s5 + $0xe8] ss:$16 sps:$4 sm:$0xff]   ;;  %v910_v37 = vld [vmem:[%s1135_s5 + $0xc4] ss:$16 sps:$4 sm:$0xff]   ;;  %s325_s11 = scalar_lea.vmem %s1201_s2, %s1211_s8 }
  0x2f   : > { %552 = vmatprep.subr.bf16.mxu0 %v904_v33  ;;  %595 = vmatprep.subr.bf16.mxu1 %v906_v34  ;;  %v912_v38 = vld [vmem:[%s1135_s5 + $0xcc] ss:$16 sps:$4 sm:$0xff]   ;;  %v914_v39 = vld [vmem:[%s1135_s5 + $0xc0] ss:$16 sps:$4 sm:$0xff]   ;;  %v915_v40 = vld [vmem:[%s1135_s5 + $0xc8] ss:$16 sps:$4 sm:$0xff]  }
  0x30   : > { %553 = vmatpush1.bf16.msra.mxu0 %v908_v35  ;;  %596 = vmatpush1.bf16.msra.mxu1 %v909_v36  ;;  %v916_v41 = vld [vmem:[%s1135_s5 + $0xa4] ss:$16 sps:$4 sm:$0xff]   ;;  %v918_v42 = vld [vmem:[%s1135_s5 + $0xac] ss:$16 sps:$4 sm:$0xff]   ;;  %v920_v43 = vld [vmem:[%s1135_s5 + $0xa0] ss:$16 sps:$4 sm:$0xff]  }
  0x31   : > { %554 = vmatprep.subr.bf16.mxu0 %v910_v37  ;;  %597 = vmatprep.subr.bf16.mxu1 %v912_v38  ;;  %v921_v44 = vld [vmem:[%s1135_s5 + $0xa8] ss:$16 sps:$4 sm:$0xff]   ;;  %v922_v45 = vld [vmem:[%s1135_s5 + $0x84] ss:$16 sps:$4 sm:$0xff]   ;;  %v924_v46 = vld [vmem:[%s1135_s5 + $0x8c] ss:$16 sps:$4 sm:$0xff]  }
  0x32   : > { %v926_v47 = vld [vmem:[%s1135_s5 + $0x80] ss:$16 sps:$4 sm:$0xff]   ;;  %v927_v48 = vld [vmem:[%s1135_s5 + $0x88] ss:$16 sps:$4 sm:$0xff]   ;;  %v928_v49 = vld [vmem:[%s1135_s5 + $0x64] ss:$16 sps:$4 sm:$0xff]  }
  0x33   : > { %v930_v50 = vld [vmem:[%s1135_s5 + $0x6c] ss:$16 sps:$4 sm:$0xff]   ;;  %v932_v51 = vld [vmem:[%s1135_s5 + $0x60] ss:$16 sps:$4 sm:$0xff]   ;;  %v933_v52 = vld [vmem:[%s1135_s5 + $0x68] ss:$16 sps:$4 sm:$0xff]  }
  0x34   : > { %555 = vmatpush1.bf16.msra.mxu0 %v914_v39  ;;  %598 = vmatpush1.bf16.msra.mxu1 %v915_v40  ;;  %v934_v53 = vld [vmem:[%s1135_s5 + $0x44] ss:$16 sps:$4 sm:$0xff]   ;;  %v936_v54 = vld [vmem:[%s1135_s5 + $0x4c] ss:$16 sps:$4 sm:$0xff]   ;;  %v938_v55 = vld [vmem:[%s1135_s5 + $0x40] ss:$16 sps:$4 sm:$0xff]  }
  0x35   : > { %556 = vmatprep.subr.bf16.mxu0 %v916_v41  ;;  %599 = vmatprep.subr.bf16.mxu1 %v918_v42  ;;  %v939_v56 = vld [vmem:[%s1135_s5 + $0x48] ss:$16 sps:$4 sm:$0xff]   ;;  %v940_v57 = vld [vmem:[%s1135_s5 + $0x24] ss:$16 sps:$4 sm:$0xff]   ;;  %v942_v58 = vld [vmem:[%s1135_s5 + $0x2c] ss:$16 sps:$4 sm:$0xff]  }
  0x36   : > { %v944_v59 = vld [vmem:[%s1135_s5 + $0x20] ss:$16 sps:$4 sm:$0xff]   ;;  %v945_v60 = vld [vmem:[%s1135_s5 + $0x28] ss:$16 sps:$4 sm:$0xff]   ;;  %v946_v61 = vld [vmem:[%s1135_s5 + $0x4] ss:$16 sps:$4 sm:$0xff]  }
  0x37   : > { %v948_v62 = vld [vmem:[%s1135_s5 + $0xc] ss:$16 sps:$4 sm:$0xff]   ;;  %v950_v63 = vld [vmem:[%s1135_s5] ss:$16 sps:$4 sm:$0xff]   ;;  %v951_v0 = vld [vmem:[%s1135_s5 + $0x8] ss:$16 sps:$4 sm:$0xff]  }
  0x38   : > { %557 = vmatpush1.bf16.msra.mxu0 %v920_v43  ;;  %600 = vmatpush1.bf16.msra.mxu1 %v921_v44  ;;  %v952_v1 = vld [vmem:[%s1199_s0] sm:$0xff]   ;;  %v367_v3 = vshrl.u32 %v366_v2, 7  ;;  %s862_s12 = sshll.u32 (%p1049_p6), %s983_s14, 4 }
  0x39   : > { %558 = vmatprep.subr.bf16.mxu0 %v922_v45  ;;  %601 = vmatprep.subr.bf16.mxu1 %v924_v46  ;;  %v364_v8 = vld [vmem:[%s325_s11] sm:$0xf]  ;;  %s678_s24 = scalar_lea.vmem (%p1049_p6), %s1202_s3, %s862_s12 }
  0x3a   : > { %v368_v4 = vsub.s32 0, %v367_v3  ;;  %v376_v5 = vsub.s32 2, %v367_v3  ;;  %v372_v6 = vsub.s32 1, %v367_v3  ;;  %v380_v7 = vsub.s32 3, %v367_v3 }
  0x3c   : > { %559 = vmatpush1.bf16.msra.mxu0 %v926_v47  ;;  %602 = vmatpush1.bf16.msra.mxu1 %v927_v48  ;;  %v369_v9 = vrot.slane %v364_v8, %v368_v4  ;;  %v377_v10 = vrot.slane %v364_v8, %v376_v5  ;;  %v373_v11 = vrot.slane %v364_v8, %v372_v6 }
  0x3d   : > { %560 = vmatprep.subr.bf16.mxu0 %v928_v49  ;;  %603 = vmatprep.subr.bf16.mxu1 %v930_v50  ;;  %v381_v12 = vrot.slane %v364_v8, %v380_v7 }
  0x40   : > { %561 = vmatpush1.bf16.msra.mxu0 %v932_v51  ;;  %604 = vmatpush1.bf16.msra.mxu1 %v933_v52 }
  0x41   : > { %562 = vmatprep.subr.bf16.mxu0 %v934_v53  ;;  %605 = vmatprep.subr.bf16.mxu1 %v936_v54 }
  0x44   : > { %563 = vmatpush1.bf16.msra.mxu0 %v938_v55  ;;  %606 = vmatpush1.bf16.msra.mxu1 %v939_v56 }
  0x45   : > { %564 = vmatprep.subr.bf16.mxu0 %v940_v57  ;;  %607 = vmatprep.subr.bf16.mxu1 %v942_v58 }
  0x48   : > { %565 = vmatpush1.bf16.msra.mxu0 %v944_v59  ;;  %608 = vmatpush1.bf16.msra.mxu1 %v945_v60 }
  0x49   : > { %566 = vmatprep.subr.bf16.mxu0 %v946_v61  ;;  %609 = vmatprep.subr.bf16.mxu1 %v948_v62 }
  0x4c   : > { %567 = vmatpush1.bf16.msra.mxu0 %v950_v63  ;;  %610 = vmatpush1.bf16.msra.mxu1 %v951_v0 }
  0x4f   : > { %585 = vmatmul.mubr.bf16.vlgmr.msra.gmra.mxu0 %v952_v1  ;;  %628 = vmatmul.mubr.bf16.vlgmr.msra.gmra.mxu1 %v952_v1 }
 0x10f   : > { %v586_v13 = vpop.f32.mrf.mxu0  ;;  %v629_v14 = vpop.f32.mrf.mxu1 }
 0x110   : > { %v587_v17 = vadd.f32 %v586_v13, %v369_v9  ;;  %v630_v18 = vadd.f32 %v629_v14, %v377_v10 }
 0x111   : > { %v588_v15 = vpop.f32.mrf.mxu0  ;;  %v631_v16 = vpop.f32.mrf.mxu1 }
 0x112   : > { %v589_v19 = vadd.f32 %v588_v15, %v373_v11  ;;  %v632_v20 = vadd.f32 %v631_v16, %v381_v12 }
 0x113   : > { %v590_v21 = vpop.f32.mrf.mxu0  ;;  %v633_v22 = vpop.f32.mrf.mxu1 }
 0x114   : > { %v858_v23 = vpack.c.bf16 %v589_v19, %v587_v17  ;;  %v859_v24 = vpack.c.bf16 %v632_v20, %v630_v18  ;;  %v591_v27 = vadd.f32 %v590_v21, %v369_v9  ;;  %v634_v28 = vadd.f32 %v633_v22, %v377_v10 }
 0x115   : > { %v592_v25 = vpop.f32.mrf.mxu0  ;;  %v635_v26 = vpop.f32.mrf.mxu1 }
 0x116   : > { %662 = vst [vmem:[%s310_s19] sm:$0xff] %v858_v23  ;;  %663 = vst [vmem:[%s310_s19 + $0x8] sm:$0xff] %v859_v24  ;;  %v593_v29 = vadd.f32 %v592_v25, %v373_v11  ;;  %v636_v30 = vadd.f32 %v635_v26, %v381_v12  ;;  %672 = sbr.rel (!%p1049_p6) target bundleno = 291 (0x123), region = 59 }
 0x118   : > { %v860_v31 = vpack.c.bf16 %v593_v29, %v591_v27  ;;  %v861_v32 = vpack.c.bf16 %v636_v30, %v634_v28 }
 0x11a   : > { %664 = vst [vmem:[%s310_s19 + $0x10] sm:$0xff] %v860_v31  ;;  %665 = vst [vmem:[%s310_s19 + $0x18] sm:$0xff] %v861_v32 }
 0x11d   : > { %v691_v33 = vld [vmem:[%s310_s19] sm:$0xff]  ;;  %v693_v34 = vld [vmem:[%s310_s19 + $0x8] sm:$0xff] }
 0x11e   : > { %692 = vst [vmem:[%s678_s24] sm:$0xff] %v691_v33  ;;  %694 = vst [vmem:[%s678_s24 + $0x8] sm:$0xff] %v693_v34 }
 0x121   : > { %v695_v35 = vld [vmem:[%s310_s19 + $0x10] sm:$0xff]  ;;  %v697_v36 = vld [vmem:[%s310_s19 + $0x18] sm:$0xff] }
 0x122   : > { %696 = vst [vmem:[%s678_s24 + $0x20] sm:$0xff] %v695_v35  ;;  %698 = vst [vmem:[%s678_s24 + $0x28] sm:$0xff] %v697_v36 }
 0x123 PF: > { %s13_s16 = sadd.s32 1, %s991_s16   ;;  %s1204_s12 = smov %s979_s13 }
 0x124   : > { %p10_p12 = scmp.ge.s32.totalorder %s13_s16, 4   ;;  %s1205_s13 = smov %s1054_s22 }
 0x125   : > { %s1206_s14 = smov %s987_s15  ;;  %s1207_s15 = smov %s1209_s17 }
 0x126   :  { %12 = sbr.rel (!%p10_p12) target bundleno = 3 (0x3), region = 119 }

// kernel: crnn_forward.17
= control target key start
LH: loop header
LB: loop body
LE: loop exit
PB: predicated region body
PF: predicated region fallthrough
CT: control target
= control target key end

     0   :  { %s527_s12 = smov 0   ;;  %s602_s0 = inlined_call_operand.vmem [shape: bf16[16,256], index: 0, kind: input, shape index: {}]   ;;  %s603_s1 = inlined_call_operand.vmem [shape: bf16[256,128], index: 1, kind: input, shape index: {}]   ;;  %s604_s2 = inlined_call_operand.vmem [shape: f32[1,128], index: 2, kind: input, shape index: {}]   ;;  %s605_s3 = inlined_call_operand.vmem [shape: f32[16,128], index: 3, kind: output, shape index: {}]  }
   0x1 LB: > { %s417_s13 = sadd.s32 4294967295, %s505_s12   ;;  %p421_p0 = scmp.ge.s32.totalorder %s505_s12, 1  ;;  %s505_s12 = sphi %s527_s12, %s13_s12  }
   0x2   : > { %p137_p1 = scmp.lt.s32.totalorder %s505_s12, 3 }
   0x4   : > { %p138_p2 = pnand %p421_p0, %p137_p1 }
   0x5   : > { %p160_p3 = scmp.lt.s32.totalorder (!%p138_p2), %s417_s13, 1 }
   0x6   : > { %141 = sbr.rel (%p138_p2) target bundleno = 556 (0x22c), region = 32 }
   0xb   : > { %v477_v0 = vld [vmem:[%s603_s1 + $0x78] sm:$0xff]   ;;  %v479_v2 = vld [vmem:[%s603_s1 + $0x70] sm:$0xff]   ;;  %v481_v4 = vld [vmem:[%s603_s1 + $0x68] sm:$0xff]   ;;  %s607_s13 = smov (!%p160_p3, %s417_s13), 1 }
   0xc   : > { %v478_v1 = vld [vmem:[%s603_s1 + $0x38] sm:$0xff]   ;;  %447 = vmatprep.subr.bf16.mxu0 %v477_v0  ;;  %v480_v3 = vld [vmem:[%s603_s1 + $0x30] sm:$0xff]   ;;  %v482_v5 = vld [vmem:[%s603_s1 + $0x28] sm:$0xff]   ;;  %s446_s28 = sshll.u32 %s607_s13, 3 }
   0xd   : > { %448 = vmatpush3.bf16.msra.mxu0 %v478_v1  ;;  %v483_v6 = vld [vmem:[%s603_s1 + $0x60] sm:$0xff]   ;;  %v485_v8 = vld [vmem:[%s603_s1 + $0x58] sm:$0xff]   ;;  %s164_s8 = scalar_lea.vmem %s602_s0, %s446_s28  ;;  %v487_v10 = vld [vmem:[%s603_s1 + $0x50] sm:$0xff]   ;;  %s168_s30 = scalar_lea.vmem %s605_s3, %s446_s28 }
   0xe   : > { %449 = vmatprep.subr.bf16.mxu0 %v479_v2  ;;  %v484_v7 = vld [vmem:[%s603_s1 + $0x20] sm:$0xff]   ;;  %v486_v9 = vld [vmem:[%s603_s1 + $0x18] sm:$0xff]   ;;  %v488_v13 = vld [vmem:[%s603_s1 + $0x10] sm:$0xff]  }
   0xf   : > { %v170_v11 = vld [vmem:[%s164_s8] sm:$0xff]  ;;  %v489_v14 = vld [vmem:[%s603_s1 + $0x48] sm:$0xff]  }
  0x10   : > { %v427_v12 = vcombine.high %v170_v11, %v170_v11  ;;  %v490_v15 = vld [vmem:[%s603_s1 + $0x8] sm:$0xff]   ;;  %v491_v16 = vld [vmem:[%s603_s1 + $0x40] sm:$0xff]   ;;  %v426_v18 = vcombine.low %v170_v11, %v170_v11 }
  0x11   : > { %450 = vmatpush3.bf16.msra.mxu0 %v480_v3  ;;  %v492_v17 = vld [vmem:[%s603_s1] sm:$0xff]  }
  0x12   : > { %451 = vmatprep.subr.bf16.mxu0 %v481_v4  ;;  %345 = vmatprep.mubr.bf16.mxu0 %v427_v12  ;;  %v425_v21 = vld [vmem:[%s604_s2] ss:$0 sm:$0xff] }
  0x15   : > { %452 = vmatpush3.bf16.msra.mxu0 %v482_v5 }
  0x16   : > { %453 = vmatprep.subr.bf16.mxu0 %v483_v6 }
  0x19   : > { %454 = vmatpush3.bf16.msra.mxu0 %v484_v7 }
  0x1a   : > { %455 = vmatprep.subr.bf16.mxu0 %v485_v8 }
  0x1d   : > { %456 = vmatpush3.bf16.msra.mxu0 %v486_v9 }
  0x1e   : > { %457 = vmatprep.subr.bf16.mxu0 %v487_v10 }
  0x21   : > { %458 = vmatpush3.bf16.msra.mxu0 %v488_v13 }
  0x22   : > { %459 = vmatprep.subr.bf16.mxu0 %v489_v14 }
  0x25   : > { %460 = vmatpush3.bf16.msra.mxu0 %v490_v15 }
  0x26   : > { %461 = vmatprep.subr.bf16.mxu0 %v491_v16 }
  0x29   : > { %462 = vmatpush3.bf16.msra.mxu0 %v492_v17 }
  0x2c   : > { %346 = vmatmul.mubr.bf16.vlgmr.msra.gmra.mxu0 %v426_v18 }
  0xec   : > { %v463_v19 = vpop.f32.mrf.mxu0 }
  0xee   : > { %v464_v20 = vpop.f32.mrf.mxu0 }
  0xef   : > { %v465_v22 = vadd.f32 %v464_v20, %v463_v19 }
  0xf0   : > { %v466_v23 = vpop.f32.mrf.mxu0 }
  0xf1   : > { %v348_v24 = vadd.f32 %v465_v22, %v425_v21 }
  0xf2   : > { %v467_v25 = vpop.f32.mrf.mxu0 }
  0xf3   : > { %353 = vmax.xlane.f32.xlu0 %v348_v24 }
 0x17c   : > { %v354_v26 = vpop.xlane.xlu0 %353 }
 0x17d   : > { %v355_v27 = vsub.f32 %v348_v24, %v354_v26 }
 0x17f   : > { %v356_v28 = vmul.f32 1.442695, %v355_v27 }
 0x181   : > { %495 = vpow2.f32 %v356_v28 }
 0x18e   : > { %v496_v29 = vpop.eup %495 }
 0x18f   : > { %358 = vadd.xlane.f32.xlu0 %v496_v29 }
 0x218   : > { %v359_v30 = vpop.xlane.xlu0 %358 }
 0x219   : > { %497 = vlog2.f32 %v359_v30 }
 0x226   : > { %v498_v31 = vpop.eup %497 }
 0x227   : > { %v361_v32 = vmul.f32 0.6931472, %v498_v31 }
 0x229   : > { %v362_v33 = vsub.f32 %v355_v27, %v361_v32 }
 0x22b   : > { %363 = vst [vmem:[%s168_s30] sm:$0xff] %v362_v33 }
 0x22c PF: > { %s13_s12 = sadd.s32 1, %s505_s12  }
 0x22d   : > { %p10_p4 = scmp.ge.s32.totalorder %s13_s12, 4  }
 0x22f   :  { %12 = sbr.rel (!%p10_p4) target bundleno = 1 (0x1), region = 62 }

// kernel: crnn_forward.16
= control target key start
LH: loop header
LB: loop body
LE: loop exit
PB: predicated region body
PF: predicated region fallthrough
CT: control target
= control target key end

     0   :  { %s1889_s9 = smov 0   ;;  %s1891_s10 = smov 0   ;;  %s2358_s0 = inlined_call_operand.vmem [shape: bf16[6,2,1024], index: 0, kind: input, shape index: {}]   ;;  %s2359_s1 = inlined_call_operand.vmem [shape: bf16[2,128,512], index: 1, kind: input, shape index: {}]   ;;  %s2360_s2 = inlined_call_operand.vmem [shape: f32[6,2,256], index: 2, kind: output, shape index: {}]  }
   0x1   :  { %s1893_s11 = smov 0   ;;  %s1895_s12 = smov 0  }
   0x2   :  { %s1897_s13 = smov 0  }
   0x3 LB: > { %s24_s14 = sadd.s32 1, %s1865_s12  ;;  %s1563_s15 = sadd.s32 4294967295, %s1869_s13   ;;  %s1869_s13 = sphi %s1897_s13, %s12_s13   ;;  %s1865_s12 = sphi %s1895_s12, %s2365_s12   ;;  %s1861_s11 = sphi %s1893_s11, %s2364_s11   ;;  %s1857_s10 = sphi %s1891_s10, %s2363_s10   ;;  %s1853_s9 = sphi %s1889_s9, %s2362_s9  }
   0x4   : > { %p26_p0 = scmp.ge.s32.totalorder %s24_s14, 2  ;;  %p50_p1 = scmp.ne.s32.totalorder %s1857_s10, %s1853_s9 }
   0x5   : > { %p51_p2 = scmp.eq.s32.totalorder %s1869_s13, 0  ;;  %p118_p4 = scmp.eq.s32.totalorder %s1563_s15, 1 }
   0x6   : > { %s2367_s14 = smov (%p26_p0, %s24_s14), 0  ;;  %s43_s17 = sadd.s32 1, %s1857_s10 }
   0x7   : > { %p52_p3 = por %p51_p2, %p50_p1  ;;  %s39_s16 = ssub.s32 %s1865_s12, %s2367_s14 }
   0x8   : > { %p41_p5 = scmp.eq.s32.totalorder %s39_s16, 0  ;;  %p1924_p6 = por %p118_p4, %p50_p1 }
   0x9   : > { %p1566_p7 = scmp.ge.s32.totalorder %s1869_s13, 2 }
   0xa   : > { %s1929_s19 = scalar_select %p41_p5, %s1857_s10, %s43_s17  }
   0xb   : > { %140 = sbr.rel (%p1566_p7) target bundleno = 24 (0x18), region = 16 }
  0x10   : > { %143 = sbr.rel (!%p52_p3) target bundleno = 24 (0x18), region = 20  ;;  %s145_s20 = sand.u32 (%p52_p3), 1, %s1857_s10  }
  0x11   : > { %s1567_s21 = sshll.u32 (%p52_p3), %s1865_s12, 2  ;;  %s1641_s22 = smul.u32 (%p52_p3), 24, %s145_s20 }
  0x12   : > { %s157_s25 = scalar_lea.vmem (%p52_p3), %s2358_s0, %s1567_s21 }
  0x13   : > { %v174_v0 = vld [vmem:[%s157_s25] sm:$0xf] (%p52_p3)  ;;  %v176_v1 = vld [vmem:[%s157_s25 + $0x8] sm:$0xf] (%p52_p3)  ;;  %v178_v2 = vld [vmem:[%s157_s25 + $0x10] sm:$0xf] (%p52_p3) }
  0x14   : > { %v180_v3 = vld [vmem:[%s157_s25 + $0x18] sm:$0xf] (%p52_p3)  ;;  %v182_v4 = vld [vmem:[%s157_s25 + $0x20] sm:$0xf] (%p52_p3)  ;;  %s147_s26 = scalar_lea.vmem (%p52_p3), [#allocation4], %s1641_s22 }
  0x15   : > { %175 = vst [vmem:[%s147_s26] sm:$0xf] %v174_v0  ;;  %177 = vst [vmem:[%s147_s26 + $0x4] sm:$0xf] %v176_v1  ;;  %v184_v5 = vld [vmem:[%s157_s25 + $0x28] sm:$0xf] }
  0x16   : > { %179 = vst [vmem:[%s147_s26 + $0x8] sm:$0xf] %v178_v2  ;;  %181 = vst [vmem:[%s147_s26 + $0xc] sm:$0xf] %v180_v3 }
  0x17   : > { %183 = vst [vmem:[%s147_s26 + $0x10] sm:$0xf] %v182_v4  ;;  %185 = vst [vmem:[%s147_s26 + $0x14] sm:$0xf] %v184_v5 }
  0x18 PF: > { %p1568_p8 = scmp.ge.s32.totalorder %s1869_s13, 1  ;;  %p228_p9 = scmp.lt.s32.totalorder %s1869_s13, 3 }
  0x1a   : > { %p229_p10 = pnand %p1568_p8, %p228_p9 }
  0x1b   : > { %p267_p11 = scmp.lt.s32.totalorder (!%p229_p10), %s1861_s11, 1  ;;  %s235_s4 = sand.u32 (!%p229_p10), 1, %s1853_s9  }
  0x1c   : > { %232 = sbr.rel (%p229_p10) target bundleno = 1634 (0x662), region = 65  ;;  %s2167_s9 = ssub.s32 (!%p229_p10), 1, %s1861_s11 }
  0x1d   : > { %s1642_s5 = smul.u32 (!%p229_p10), 24, %s235_s4  ;;  %s1608_s21 = sshll.u32 (!%p229_p10), %s1861_s11, 2 }
  0x1e   : > { %s1571_s6 = smul.u32 (!%p229_p10), 20, %s1861_s11  ;;  %s2171_s22 = sadd.s32 (!%p229_p10), %s1608_s21, %s2167_s9 }
  0x1f   : > { %s2116_s7 = scalar_lea.vmem (!%p229_p10), [#allocation4], %s1642_s5  ;;  %s1643_s15 = smul.u32 (!%p229_p10), 12, %s235_s4 }
  0x20   : > { %s321_s8 = scalar_lea.vmem (!%p229_p10), %s2116_s7, %s1571_s6 [#allocation4]  ;;  %s1607_s16 = smul.u32 (!%p229_p10), 10, %s1861_s11 }
  0x21   : > { %v1871_v6 = vmov 0   ;;  %v1872_v7 = vmov 0.0   ;;  %s268_s27 = scalar_select %p267_p11, %s1861_s11, 1  ;;  %v1873_v42 = vmov 1983009808   ;;  %v576_v44 = vlaneseq }
  0x22   : > { %517 = vmatprep.mubr.bf16.mxu0 %v1871_v6  ;;  %558 = vmatprep.mubr.bf16.mxu1 %v1871_v6  ;;  %283 = vst [vmem:[#allocation2] sm:$0x3] %v1872_v7  ;;  %284 = vst [vmem:[#allocation3] sm:$0x3] %v1872_v7  ;;  %v574_v43 = vunpack.c.l.s4 %v1873_v42  ;;  %v322_v51 = vld [vmem:[%s321_s8] sm:$0xf] }
  0x23   : > { %s1640_s28 = sshll.u32 %s268_s27, 8  ;;  %v577_v46 = vshrl.u32 %v576_v44, 7  ;;  %v323_v58 = vunpack.c.l.bf16 %v322_v51  ;;  %s2129_s17 = scalar_lea.vmem [#allocation5], %s1643_s15 }
  0x24   : > { %s1946_s3 = scalar_lea.vmem %s2359_s1, %s1640_s28  ;;  %v575_v45 = vunpack.c.0.s8 %v574_v43  ;;  %s622_s20 = scalar_lea.vmem %s2129_s17, %s1607_s16 [#allocation5] }
  0x25   : > { %v1949_v8 = vld [vmem:[%s1946_s3 + $0xe4] ss:$16 sps:$4 sm:$0xff]   ;;  %v1952_v9 = vld [vmem:[%s1946_s3 + $0xec] ss:$16 sps:$4 sm:$0xff]   ;;  %v1956_v10 = vld [vmem:[%s1946_s3 + $0xe0] ss:$16 sps:$4 sm:$0xff]  }
  0x26   : > { %485 = vmatprep.subr.bf16.mxu0 %v1949_v8  ;;  %v1959_v11 = vld [vmem:[%s1946_s3 + $0xe8] ss:$16 sps:$4 sm:$0xff]   ;;  %526 = vmatprep.subr.bf16.mxu1 %v1952_v9  ;;  %v1963_v12 = vld [vmem:[%s1946_s3 + $0xc4] ss:$16 sps:$4 sm:$0xff]   ;;  %v1968_v13 = vld [vmem:[%s1946_s3 + $0xcc] ss:$16 sps:$4 sm:$0xff]   ;;  %v2119_v49 = vsub.s32 %v575_v45, %v577_v46 }
  0x27   : > { %486 = vmatpush1.bf16.msra.mxu0 %v1956_v10  ;;  %527 = vmatpush1.bf16.msra.mxu1 %v1959_v11  ;;  %v1971_v14 = vld [vmem:[%s1946_s3 + $0xc0] ss:$16 sps:$4 sm:$0xff]   ;;  %v1975_v15 = vld [vmem:[%s1946_s3 + $0xc8] ss:$16 sps:$4 sm:$0xff]   ;;  %v1979_v16 = vld [vmem:[%s1946_s3 + $0xa4] ss:$16 sps:$4 sm:$0xff]  }
  0x28   : > { %487 = vmatprep.subr.bf16.mxu0 %v1963_v12  ;;  %528 = vmatprep.subr.bf16.mxu1 %v1968_v13  ;;  %v1982_v17 = vld [vmem:[%s1946_s3 + $0xac] ss:$16 sps:$4 sm:$0xff]   ;;  %v1985_v18 = vld [vmem:[%s1946_s3 + $0xa0] ss:$16 sps:$4 sm:$0xff]   ;;  %v1988_v19 = vld [vmem:[%s1946_s3 + $0xa8] ss:$16 sps:$4 sm:$0xff]  }
  0x29   : > { %v1993_v20 = vld [vmem:[%s1946_s3 + $0x84] ss:$16 sps:$4 sm:$0xff]   ;;  %v1998_v21 = vld [vmem:[%s1946_s3 + $0x8c] ss:$16 sps:$4 sm:$0xff]   ;;  %v2001_v22 = vld [vmem:[%s1946_s3 + $0x80] ss:$16 sps:$4 sm:$0xff]  }
  0x2a   : > { %v2006_v23 = vld [vmem:[%s1946_s3 + $0x88] ss:$16 sps:$4 sm:$0xff]   ;;  %v2009_v24 = vld [vmem:[%s1946_s3 + $0x64] ss:$16 sps:$4 sm:$0xff]   ;;  %v2014_v25 = vld [vmem:[%s1946_s3 + $0x6c] ss:$16 sps:$4 sm:$0xff]  }
  0x2b   : > { %488 = vmatpush1.bf16.msra.mxu0 %v1971_v14  ;;  %529 = vmatpush1.bf16.msra.mxu1 %v1975_v15  ;;  %v2017_v26 = vld [vmem:[%s1946_s3 + $0x60] ss:$16 sps:$4 sm:$0xff]   ;;  %v2020_v27 = vld [vmem:[%s1946_s3 + $0x68] ss:$16 sps:$4 sm:$0xff]   ;;  %v2025_v28 = vld [vmem:[%s1946_s3 + $0x44] ss:$16 sps:$4 sm:$0xff]  }
  0x2c   : > { %489 = vmatprep.subr.bf16.mxu0 %v1979_v16  ;;  %530 = vmatprep.subr.bf16.mxu1 %v1982_v17  ;;  %v2030_v29 = vld [vmem:[%s1946_s3 + $0x4c] ss:$16 sps:$4 sm:$0xff]   ;;  %v2035_v30 = vld [vmem:[%s1946_s3 + $0x40] ss:$16 sps:$4 sm:$0xff]   ;;  %v2038_v31 = vld [vmem:[%s1946_s3 + $0x48] ss:$16 sps:$4 sm:$0xff]  }
  0x2d   : > { %v2043_v32 = vld [vmem:[%s1946_s3 + $0x24] ss:$16 sps:$4 sm:$0xff]   ;;  %v2046_v33 = vld [vmem:[%s1946_s3 + $0x2c] ss:$16 sps:$4 sm:$0xff]   ;;  %v2051_v34 = vld [vmem:[%s1946_s3 + $0x20] ss:$16 sps:$4 sm:$0xff]  }
  0x2e   : > { %v2054_v35 = vld [vmem:[%s1946_s3 + $0x28] ss:$16 sps:$4 sm:$0xff]   ;;  %v2059_v36 = vld [vmem:[%s1946_s3 + $0x4] ss:$16 sps:$4 sm:$0xff]   ;;  %v2062_v37 = vld [vmem:[%s1946_s3 + $0xc] ss:$16 sps:$4 sm:$0xff]  }
  0x2f   : > { %490 = vmatpush1.bf16.msra.mxu0 %v1985_v18  ;;  %531 = vmatpush1.bf16.msra.mxu1 %v1988_v19  ;;  %v2067_v38 = vld [vmem:[%s1946_s3] ss:$16 sps:$4 sm:$0xff]   ;;  %v2070_v39 = vld [vmem:[%s1946_s3 + $0x8] ss:$16 sps:$4 sm:$0xff]   ;;  %s1609_s23 = sshll.u32 %s2171_s22, 2  ;;  %s1613_s25 = sshll.u32 %s2171_s22, 1 }
  0x30   : > { %491 = vmatprep.subr.bf16.mxu0 %v1993_v20  ;;  %532 = vmatprep.subr.bf16.mxu1 %v1998_v21  ;;  %v317_v40 = vld [vmem:[#allocation2] sm:$0x3]  ;;  %v318_v45 = vld [vmem:[#allocation3] sm:$0x3]  ;;  %s628_s24 = scalar_lea.vmem %s2116_s7, %s1609_s23 [#allocation4]  ;;  %s769_s26 = scalar_lea.vmem %s2129_s17, %s1613_s25 [#allocation5] }
  0x31   : > { %v324_v41 = vpack.c.bf16 %v317_v40, %v317_v40  ;;  %s772_s27 = smul.u32 3, %s1861_s11  ;;  %s1614_s28 = sshll.u32 %s2167_s9, 1 }
  0x32   : > { %s918_s6 = smul.u32 3, %s2167_s9  ;;  %s1620_s8 = sshll.u32 %s1861_s11, 1 }
  0x33   : > { %492 = vmatpush1.bf16.msra.mxu0 %v2001_v22  ;;  %533 = vmatpush1.bf16.msra.mxu1 %v2006_v23  ;;  %s2219_s29 = sadd.s32 %s1614_s28, %s772_s27  ;;  %s1626_s23 = sshll.u32 %s2167_s9, 2 }
  0x34   : > { %493 = vmatprep.subr.bf16.mxu0 %v2009_v24  ;;  %534 = vmatprep.subr.bf16.mxu1 %v2014_v25  ;;  %s1615_s30 = sshll.u32 %s2219_s29, 2  ;;  %s1619_s4 = sshll.u32 %s2219_s29, 1 }
  0x35   : > { %s775_s3 = scalar_lea.vmem %s2116_s7, %s1615_s30 [#allocation4]  ;;  %s916_s5 = scalar_lea.vmem %s2129_s17, %s1619_s4 [#allocation5] }
  0x36   : > { %s2269_s15 = sadd.s32 %s1620_s8, %s918_s6  ;;  %s1632_s29 = smul.u32 20, %s2167_s9 }
  0x37   : > { %494 = vmatpush1.bf16.msra.mxu0 %v2017_v26  ;;  %535 = vmatpush1.bf16.msra.mxu1 %v2020_v27  ;;  %s1621_s16 = sshll.u32 %s2269_s15, 2  ;;  %s1625_s21 = sshll.u32 %s2269_s15, 1 }
  0x38   : > { %495 = vmatprep.subr.bf16.mxu0 %v2025_v28  ;;  %536 = vmatprep.subr.bf16.mxu1 %v2030_v29  ;;  %s1063_s22 = scalar_lea.vmem %s2129_s17, %s1625_s21 [#allocation5]  ;;  %s1213_s30 = scalar_lea.vmem %s2116_s7, %s1632_s29 [#allocation4] }
  0x3b   : > { %496 = vmatpush1.bf16.msra.mxu0 %v2035_v30  ;;  %537 = vmatpush1.bf16.msra.mxu1 %v2038_v31 }
  0x3c   : > { %497 = vmatprep.subr.bf16.mxu0 %v2043_v32  ;;  %538 = vmatprep.subr.bf16.mxu1 %v2046_v33 }
  0x3f   : > { %498 = vmatpush1.bf16.msra.mxu0 %v2051_v34  ;;  %539 = vmatpush1.bf16.msra.mxu1 %v2054_v35 }
  0x40   : > { %499 = vmatprep.subr.bf16.mxu0 %v2059_v36  ;;  %540 = vmatprep.subr.bf16.mxu1 %v2062_v37 }
  0x43   : > { %500 = vmatpush1.bf16.msra.mxu0 %v2067_v38  ;;  %541 = vmatpush1.bf16.msra.mxu1 %v2070_v39 }
  0x44   : > { %632 = vmatprep.subr.bf16.mxu0 %v1949_v8  ;;  %673 = vmatprep.subr.bf16.mxu1 %v1952_v9 }
  0x46   : > { %518 = vmatmul.mubr.bf16.vlgmr.msra.gmra.mxu0 %v324_v41  ;;  %559 = vmatmul.mubr.bf16.vlgmr.msra.gmra.mxu1 %v324_v41 }
  0x47   : > { %633 = vmatpush1.bf16.msra.mxu0 %v1956_v10  ;;  %674 = vmatpush1.bf16.msra.mxu1 %v1959_v11 }
  0x48   : > { %634 = vmatprep.subr.bf16.mxu0 %v1963_v12  ;;  %675 = vmatprep.subr.bf16.mxu1 %v1968_v13 }
  0x49   : > { %664 = vmatprep.mubr.bf16.mxu0 %v1871_v6  ;;  %705 = vmatprep.mubr.bf16.mxu1 %v1871_v6 }
  0x4b   : > { %635 = vmatpush1.bf16.msra.mxu0 %v1971_v14  ;;  %676 = vmatpush1.bf16.msra.mxu1 %v1975_v15 }
  0x4c   : > { %636 = vmatprep.subr.bf16.mxu0 %v1979_v16  ;;  %677 = vmatprep.subr.bf16.mxu1 %v1982_v17 }
  0x4f   : > { %637 = vmatpush1.bf16.msra.mxu0 %v1985_v18  ;;  %678 = vmatpush1.bf16.msra.mxu1 %v1988_v19 }
  0x50   : > { %638 = vmatprep.subr.bf16.mxu0 %v1993_v20  ;;  %679 = vmatprep.subr.bf16.mxu1 %v1998_v21 }
  0x53   : > { %639 = vmatpush1.bf16.msra.mxu0 %v2001_v22  ;;  %680 = vmatpush1.bf16.msra.mxu1 %v2006_v23 }
  0x54   : > { %640 = vmatprep.subr.bf16.mxu0 %v2009_v24  ;;  %681 = vmatprep.subr.bf16.mxu1 %v2014_v25 }
  0x57   : > { %641 = vmatpush1.bf16.msra.mxu0 %v2017_v26  ;;  %682 = vmatpush1.bf16.msra.mxu1 %v2020_v27 }
  0x58   : > { %642 = vmatprep.subr.bf16.mxu0 %v2025_v28  ;;  %683 = vmatprep.subr.bf16.mxu1 %v2030_v29 }
  0x5b   : > { %643 = vmatpush1.bf16.msra.mxu0 %v2035_v30  ;;  %684 = vmatpush1.bf16.msra.mxu1 %v2038_v31 }
  0x5c   : > { %644 = vmatprep.subr.bf16.mxu0 %v2043_v32  ;;  %685 = vmatprep.subr.bf16.mxu1 %v2046_v33 }
  0x5f   : > { %645 = vmatpush1.bf16.msra.mxu0 %v2051_v34  ;;  %686 = vmatpush1.bf16.msra.mxu1 %v2054_v35 }
  0x60   : > { %646 = vmatprep.subr.bf16.mxu0 %v2059_v36  ;;  %687 = vmatprep.subr.bf16.mxu1 %v2062_v37 }
  0x63   : > { %647 = vmatpush1.bf16.msra.mxu0 %v2067_v38  ;;  %688 = vmatpush1.bf16.msra.mxu1 %v2070_v39 }
  0x64   : > { %779 = vmatprep.subr.bf16.mxu0 %v1949_v8  ;;  %820 = vmatprep.subr.bf16.mxu1 %v1952_v9 }
 0x106   : > { %v519_v47 = vpop.f32.mrf.mxu0  ;;  %v560_v48 = vpop.f32.mrf.mxu1 }
 0x108   : > { %v521_v50 = vpop.f32.mrf.mxu0  ;;  %v562_v52 = vpop.f32.mrf.mxu1 }
 0x109   : > { %v571_v53 = vcombine.low %v519_v47, %v521_v50  ;;  %v572_v54 = vcombine.low %v560_v48, %v562_v52 }
 0x10a   : > { %v523_v55 = vpop.f32.mrf.mxu0  ;;  %v564_v56 = vpop.f32.mrf.mxu1 }
 0x10b   : > { %v579_v57 = vrot.slane %v571_v53, %v2119_v49  ;;  %v586_v59 = vrot.slane %v572_v54, %v2119_v49 }
 0x10c   : > { %v524_v60 = vpop.f32.mrf.mxu0  ;;  %v565_v61 = vpop.f32.mrf.mxu1 }
 0x10d   : > { %v587_v62 = vcombine.low %v579_v57, %v586_v59  ;;  %v629_v60 = vld [vmem:[%s628_s24] sm:$0xf]  ;;  %s2315_s24 = sadd.s32 %s1861_s11, %s1626_s23 }
 0x10e   : > { %s1627_s25 = sshll.u32 %s2315_s24, 2  ;;  %s1631_s27 = sshll.u32 %s2315_s24, 1 }
 0x10f   : > { %v589_v63 = vadd.f32 %v587_v62, %v323_v58  ;;  %s1209_s28 = scalar_lea.vmem %s2129_s17, %s1631_s27 [#allocation5] }
 0x111   : > { %v1604_v0 = vmul.f32 -1.442695, %v589_v63  ;;  %v597_v1 = vrot.slane %v589_v63, 2  ;;  %v608_v3 = vrot.slane %v589_v63, 6  ;;  %v605_v7 = vrot.slane %v589_v63, 4 }
 0x113   : > { %1735 = vpow2.f32 %v1604_v0  ;;  %v1605_v2 = vmul.f32 -1.442695, %v597_v1  ;;  %v1606_v4 = vmul.f32 -1.442695, %v608_v3  ;;  %v630_v3 = vunpack.c.l.bf16 %v629_v60 }
 0x115   : > { %1737 = vpow2.f32 %v1605_v2 }
 0x116   : > { %1739 = vpow2.f32 %v1606_v4 }
 0x120   : > { %v1736_v5 = vpop.eup %1735 }
 0x121   : > { %v593_v40 = vadd.f32 1.0, %v1736_v5 }
 0x122   : > { %v1738_v41 = vpop.eup %1737 }
 0x123   : > { %1741 = vrcp.f32 %v593_v40  ;;  %v602_v42 = vadd.f32 1.0, %v1738_v41  ;;  %v1740_v43 = vpop.eup %1739 }
 0x124   : > { %1743 = vtanh.f32 %v605_v7  ;;  %v613_v48 = vadd.f32 1.0, %v1740_v43 }
 0x125   : > { %1745 = vrcp.f32 %v602_v42 }
 0x126   : > { %1747 = vrcp.f32 %v613_v48 }
 0x130   : > { %v1742_v44 = vpop.eup %1741 }
 0x131   : > { %v1744_v46 = vpop.eup %1743 }
 0x132   : > { %v1746_v47 = vpop.eup %1745  ;;  %v617_v51 = vmul.f32 %v1744_v46, %v1742_v44 }
 0x133   : > { %v616_v50 = vmul.f32 %v1746_v47, %v318_v45  ;;  %v1748_v53 = vpop.eup %1747 }
 0x135   : > { %v2123_v52 = vadd.f32 %v617_v51, %v616_v50 }
 0x137   : > { %1749 = vtanh.f32 %v2123_v52 }
 0x144   : > { %v1750_v54 = vpop.eup %1749 }
 0x145   : > { %v620_v55 = vmul.f32 %v1750_v54, %v1748_v53 }
 0x147   : > { %623 = vst [vmem:[%s622_s20] sm:$0x3] %v620_v55  ;;  %v631_v56 = vpack.c.bf16 %v620_v55, %v620_v55  ;;  %s922_s20 = scalar_lea.vmem %s2116_s7, %s1621_s16 [#allocation4] }
 0x149   : > { %665 = vmatmul.mubr.bf16.vlgmr.msra.gmra.mxu0 %v631_v56  ;;  %706 = vmatmul.mubr.bf16.vlgmr.msra.gmra.mxu1 %v631_v56 }
 0x14a   : > { %780 = vmatpush1.bf16.msra.mxu0 %v1956_v10  ;;  %821 = vmatpush1.bf16.msra.mxu1 %v1959_v11 }
 0x14b   : > { %781 = vmatprep.subr.bf16.mxu0 %v1963_v12  ;;  %822 = vmatprep.subr.bf16.mxu1 %v1968_v13 }
 0x14c   : > { %811 = vmatprep.mubr.bf16.mxu0 %v1871_v6  ;;  %852 = vmatprep.mubr.bf16.mxu1 %v1871_v6 }
 0x14e   : > { %782 = vmatpush1.bf16.msra.mxu0 %v1971_v14  ;;  %823 = vmatpush1.bf16.msra.mxu1 %v1975_v15 }
 0x14f   : > { %783 = vmatprep.subr.bf16.mxu0 %v1979_v16  ;;  %824 = vmatprep.subr.bf16.mxu1 %v1982_v17 }
 0x152   : > { %784 = vmatpush1.bf16.msra.mxu0 %v1985_v18  ;;  %825 = vmatpush1.bf16.msra.mxu1 %v1988_v19 }
 0x153   : > { %785 = vmatprep.subr.bf16.mxu0 %v1993_v20  ;;  %826 = vmatprep.subr.bf16.mxu1 %v1998_v21 }
 0x156   : > { %786 = vmatpush1.bf16.msra.mxu0 %v2001_v22  ;;  %827 = vmatpush1.bf16.msra.mxu1 %v2006_v23 }
 0x157   : > { %787 = vmatprep.subr.bf16.mxu0 %v2009_v24  ;;  %828 = vmatprep.subr.bf16.mxu1 %v2014_v25 }
 0x15a   : > { %788 = vmatpush1.bf16.msra.mxu0 %v2017_v26  ;;  %829 = vmatpush1.bf16.msra.mxu1 %v2020_v27 }
 0x15b   : > { %789 = vmatprep.subr.bf16.mxu0 %v2025_v28  ;;  %830 = vmatprep.subr.bf16.mxu1 %v2030_v29 }
 0x15e   : > { %790 = vmatpush1.bf16.msra.mxu0 %v2035_v30  ;;  %831 = vmatpush1.bf16.msra.mxu1 %v2038_v31 }
 0x15f   : > { %791 = vmatprep.subr.bf16.mxu0 %v2043_v32  ;;  %832 = vmatprep.subr.bf16.mxu1 %v2046_v33 }
 0x162   : > { %792 = vmatpush1.bf16.msra.mxu0 %v2051_v34  ;;  %833 = vmatpush1.bf16.msra.mxu1 %v2054_v35 }
 0x163   : > { %793 = vmatprep.subr.bf16.mxu0 %v2059_v36  ;;  %834 = vmatprep.subr.bf16.mxu1 %v2062_v37 }
 0x166   : > { %794 = vmatpush1.bf16.msra.mxu0 %v2067_v38  ;;  %835 = vmatpush1.bf16.msra.mxu1 %v2070_v39 }
 0x167   : > { %926 = vmatprep.subr.bf16.mxu0 %v1949_v8  ;;  %967 = vmatprep.subr.bf16.mxu1 %v1952_v9 }
 0x209   : > { %v666_v57 = vpop.f32.mrf.mxu0  ;;  %v707_v58 = vpop.f32.mrf.mxu1 }
 0x20b   : > { %v668_v59 = vpop.f32.mrf.mxu0  ;;  %v709_v61 = vpop.f32.mrf.mxu1 }
 0x20c   : > { %v718_v62 = vcombine.low %v666_v57, %v668_v59  ;;  %v719_v63 = vcombine.low %v707_v58, %v709_v61 }
 0x20d   : > { %v670_v0 = vpop.f32.mrf.mxu0  ;;  %v711_v1 = vpop.f32.mrf.mxu1 }
 0x20e   : > { %v726_v2 = vrot.slane %v718_v62, %v2119_v49  ;;  %v733_v4 = vrot.slane %v719_v63, %v2119_v49 }
 0x20f   : > { %v671_v5 = vpop.f32.mrf.mxu0  ;;  %v712_v7 = vpop.f32.mrf.mxu1 }
 0x210   : > { %v734_v40 = vcombine.low %v726_v2, %v733_v4  ;;  %v776_v4 = vld [vmem:[%s775_s3] sm:$0xf] }
 0x212   : > { %v736_v41 = vadd.f32 %v734_v40, %v630_v3 }
 0x214   : > { %v1610_v42 = vmul.f32 -1.442695, %v736_v41  ;;  %v744_v43 = vrot.slane %v736_v41, 2  ;;  %v755_v45 = vrot.slane %v736_v41, 6  ;;  %v752_v48 = vrot.slane %v736_v41, 4 }
 0x216   : > { %1751 = vpow2.f32 %v1610_v42  ;;  %v1611_v44 = vmul.f32 -1.442695, %v744_v43  ;;  %v1612_v46 = vmul.f32 -1.442695, %v755_v45 }
 0x218   : > { %1753 = vpow2.f32 %v1611_v44  ;;  %v777_v44 = vunpack.c.l.bf16 %v776_v4 }
 0x219   : > { %1755 = vpow2.f32 %v1612_v46 }
 0x223   : > { %v1752_v47 = vpop.eup %1751 }
 0x224   : > { %v740_v50 = vadd.f32 1.0, %v1752_v47 }
 0x225   : > { %v1754_v51 = vpop.eup %1753 }
 0x226   : > { %1757 = vrcp.f32 %v740_v50  ;;  %v749_v53 = vadd.f32 1.0, %v1754_v51  ;;  %v1756_v54 = vpop.eup %1755 }
 0x227   : > { %1759 = vtanh.f32 %v752_v48  ;;  %v760_v58 = vadd.f32 1.0, %v1756_v54 }
 0x228   : > { %1761 = vrcp.f32 %v749_v53 }
 0x229   : > { %1763 = vrcp.f32 %v760_v58 }
 0x233   : > { %v1758_v55 = vpop.eup %1757 }
 0x234   : > { %v1760_v56 = vpop.eup %1759 }
 0x235   : > { %v1762_v57 = vpop.eup %1761  ;;  %v764_v60 = vmul.f32 %v1760_v56, %v1758_v55 }
 0x236   : > { %v763_v59 = vmul.f32 %v1762_v57, %v2123_v52  ;;  %v1764_v62 = vpop.eup %1763 }
 0x238   : > { %v2178_v61 = vadd.f32 %v764_v60, %v763_v59 }
 0x23a   : > { %1765 = vtanh.f32 %v2178_v61 }
 0x247   : > { %v1766_v63 = vpop.eup %1765 }
 0x248   : > { %v767_v0 = vmul.f32 %v1766_v63, %v1764_v62 }
 0x24a   : > { %770 = vst [vmem:[%s769_s26] sm:$0x3] %v767_v0  ;;  %v778_v1 = vpack.c.bf16 %v767_v0, %v767_v0  ;;  %s1068_s26 = scalar_lea.vmem %s2116_s7, %s1627_s25 [#allocation4]  ;;  %s1636_s7 = smul.u32 10, %s2167_s9 }
 0x24b   : > { %s1374_s9 = scalar_lea.vmem (%p1924_p6), %s2360_s2, %s1620_s8 }
 0x24c   : > { %812 = vmatmul.mubr.bf16.vlgmr.msra.gmra.mxu0 %v778_v1  ;;  %853 = vmatmul.mubr.bf16.vlgmr.msra.gmra.mxu1 %v778_v1  ;;  %s1354_s3 = scalar_lea.vmem %s2129_s17, %s1636_s7 [#allocation5] }
 0x24d   : > { %927 = vmatpush1.bf16.msra.mxu0 %v1956_v10  ;;  %968 = vmatpush1.bf16.msra.mxu1 %v1959_v11 }
 0x24e   : > { %928 = vmatprep.subr.bf16.mxu0 %v1963_v12  ;;  %969 = vmatprep.subr.bf16.mxu1 %v1968_v13 }
 0x24f   : > { %958 = vmatprep.mubr.bf16.mxu0 %v1871_v6  ;;  %999 = vmatprep.mubr.bf16.mxu1 %v1871_v6 }
 0x251   : > { %929 = vmatpush1.bf16.msra.mxu0 %v1971_v14  ;;  %970 = vmatpush1.bf16.msra.mxu1 %v1975_v15 }
 0x252   : > { %930 = vmatprep.subr.bf16.mxu0 %v1979_v16  ;;  %971 = vmatprep.subr.bf16.mxu1 %v1982_v17 }
 0x255   : > { %931 = vmatpush1.bf16.msra.mxu0 %v1985_v18  ;;  %972 = vmatpush1.bf16.msra.mxu1 %v1988_v19 }
 0x256   : > { %932 = vmatprep.subr.bf16.mxu0 %v1993_v20  ;;  %973 = vmatprep.subr.bf16.mxu1 %v1998_v21 }
 0x259   : > { %933 = vmatpush1.bf16.msra.mxu0 %v2001_v22  ;;  %974 = vmatpush1.bf16.msra.mxu1 %v2006_v23 }
 0x25a   : > { %934 = vmatprep.subr.bf16.mxu0 %v2009_v24  ;;  %975 = vmatprep.subr.bf16.mxu1 %v2014_v25 }
 0x25d   : > { %935 = vmatpush1.bf16.msra.mxu0 %v2017_v26  ;;  %976 = vmatpush1.bf16.msra.mxu1 %v2020_v27 }
 0x25e   : > { %936 = vmatprep.subr.bf16.mxu0 %v2025_v28  ;;  %977 = vmatprep.subr.bf16.mxu1 %v2030_v29 }
 0x261   : > { %937 = vmatpush1.bf16.msra.mxu0 %v2035_v30  ;;  %978 = vmatpush1.bf16.msra.mxu1 %v2038_v31 }
 0x262   : > { %938 = vmatprep.subr.bf16.mxu0 %v2043_v32  ;;  %979 = vmatprep.subr.bf16.mxu1 %v2046_v33 }
 0x265   : > { %939 = vmatpush1.bf16.msra.mxu0 %v2051_v34  ;;  %980 = vmatpush1.bf16.msra.mxu1 %v2054_v35 }
 0x266   : > { %940 = vmatprep.subr.bf16.mxu0 %v2059_v36  ;;  %981 = vmatprep.subr.bf16.mxu1 %v2062_v37 }
 0x269   : > { %941 = vmatpush1.bf16.msra.mxu0 %v2067_v38  ;;  %982 = vmatpush1.bf16.msra.mxu1 %v2070_v39 }
 0x26a   : > { %1072 = vmatprep.subr.bf16.mxu0 %v1949_v8  ;;  %1113 = vmatprep.subr.bf16.mxu1 %v1952_v9 }
 0x30c   : > { %v813_v52 = vpop.f32.mrf.mxu0  ;;  %v854_v2 = vpop.f32.mrf.mxu1 }
 0x30e   : > { %v815_v3 = vpop.f32.mrf.mxu0  ;;  %v856_v5 = vpop.f32.mrf.mxu1 }
 0x30f   : > { %v865_v7 = vcombine.low %v813_v52, %v815_v3  ;;  %v866_v40 = vcombine.low %v854_v2, %v856_v5 }
 0x310   : > { %v817_v41 = vpop.f32.mrf.mxu0  ;;  %v858_v42 = vpop.f32.mrf.mxu1 }
 0x311   : > { %v873_v43 = vrot.slane %v865_v7, %v2119_v49  ;;  %v880_v45 = vrot.slane %v866_v40, %v2119_v49 }
 0x312   : > { %v818_v46 = vpop.f32.mrf.mxu0  ;;  %v859_v47 = vpop.f32.mrf.mxu1 }
 0x313   : > { %v881_v48 = vcombine.low %v873_v43, %v880_v45  ;;  %v923_v45 = vld [vmem:[%s922_s20] sm:$0xf] }
 0x315   : > { %v883_v50 = vadd.f32 %v881_v48, %v777_v44 }
 0x317   : > { %v1616_v51 = vmul.f32 -1.442695, %v883_v50  ;;  %v891_v53 = vrot.slane %v883_v50, 2  ;;  %v902_v55 = vrot.slane %v883_v50, 6  ;;  %v899_v58 = vrot.slane %v883_v50, 4 }
 0x319   : > { %1767 = vpow2.f32 %v1616_v51  ;;  %v1617_v54 = vmul.f32 -1.442695, %v891_v53  ;;  %v1618_v56 = vmul.f32 -1.442695, %v902_v55 }
 0x31b   : > { %1769 = vpow2.f32 %v1617_v54 }
 0x31c   : > { %1771 = vpow2.f32 %v1618_v56 }
 0x326   : > { %v1768_v57 = vpop.eup %1767 }
 0x327   : > { %v887_v59 = vadd.f32 1.0, %v1768_v57 }
 0x328   : > { %v1770_v60 = vpop.eup %1769 }
 0x329   : > { %1773 = vrcp.f32 %v887_v59  ;;  %v896_v62 = vadd.f32 1.0, %v1770_v60  ;;  %v1772_v63 = vpop.eup %1771 }
 0x32a   : > { %1775 = vtanh.f32 %v899_v58  ;;  %v907_v2 = vadd.f32 1.0, %v1772_v63 }
 0x32b   : > { %1777 = vrcp.f32 %v896_v62 }
 0x32c   : > { %1779 = vrcp.f32 %v907_v2 }
 0x336   : > { %v1774_v0 = vpop.eup %1773 }
 0x337   : > { %v1776_v1 = vpop.eup %1775 }
 0x338   : > { %v1778_v52 = vpop.eup %1777  ;;  %v911_v4 = vmul.f32 %v1776_v1, %v1774_v0 }
 0x339   : > { %v910_v3 = vmul.f32 %v1778_v52, %v2178_v61  ;;  %v1780_v7 = vpop.eup %1779 }
 0x33b   : > { %v2226_v5 = vadd.f32 %v911_v4, %v910_v3 }
 0x33d   : > { %1781 = vtanh.f32 %v2226_v5 }
 0x34a   : > { %v1782_v40 = vpop.eup %1781 }
 0x34b   : > { %v914_v41 = vmul.f32 %v1782_v40, %v1780_v7 }
 0x34d   : > { %917 = vst [vmem:[%s916_s5] sm:$0x3] %v914_v41  ;;  %v925_v42 = vpack.c.bf16 %v914_v41, %v914_v41 }
 0x34f   : > { %959 = vmatmul.mubr.bf16.vlgmr.msra.gmra.mxu0 %v925_v42  ;;  %1000 = vmatmul.mubr.bf16.vlgmr.msra.gmra.mxu1 %v925_v42 }
 0x350   : > { %1073 = vmatpush1.bf16.msra.mxu0 %v1956_v10  ;;  %1114 = vmatpush1.bf16.msra.mxu1 %v1959_v11 }
 0x351   : > { %1074 = vmatprep.subr.bf16.mxu0 %v1963_v12  ;;  %1115 = vmatprep.subr.bf16.mxu1 %v1968_v13 }
 0x352   : > { %1104 = vmatprep.mubr.bf16.mxu0 %v1871_v6  ;;  %1145 = vmatprep.mubr.bf16.mxu1 %v1871_v6 }
 0x354   : > { %1075 = vmatpush1.bf16.msra.mxu0 %v1971_v14  ;;  %1116 = vmatpush1.bf16.msra.mxu1 %v1975_v15 }
 0x355   : > { %1076 = vmatprep.subr.bf16.mxu0 %v1979_v16  ;;  %1117 = vmatprep.subr.bf16.mxu1 %v1982_v17 }
 0x358   : > { %1077 = vmatpush1.bf16.msra.mxu0 %v1985_v18  ;;  %1118 = vmatpush1.bf16.msra.mxu1 %v1988_v19 }
 0x359   : > { %1078 = vmatprep.subr.bf16.mxu0 %v1993_v20  ;;  %1119 = vmatprep.subr.bf16.mxu1 %v1998_v21 }
 0x35c   : > { %1079 = vmatpush1.bf16.msra.mxu0 %v2001_v22  ;;  %1120 = vmatpush1.bf16.msra.mxu1 %v2006_v23 }
 0x35d   : > { %1080 = vmatprep.subr.bf16.mxu0 %v2009_v24  ;;  %1121 = vmatprep.subr.bf16.mxu1 %v2014_v25 }
 0x360   : > { %1081 = vmatpush1.bf16.msra.mxu0 %v2017_v26  ;;  %1122 = vmatpush1.bf16.msra.mxu1 %v2020_v27 }
 0x361   : > { %1082 = vmatprep.subr.bf16.mxu0 %v2025_v28  ;;  %1123 = vmatprep.subr.bf16.mxu1 %v2030_v29 }
 0x364   : > { %1083 = vmatpush1.bf16.msra.mxu0 %v2035_v30  ;;  %1124 = vmatpush1.bf16.msra.mxu1 %v2038_v31 }
 0x365   : > { %1084 = vmatprep.subr.bf16.mxu0 %v2043_v32  ;;  %1125 = vmatprep.subr.bf16.mxu1 %v2046_v33 }
 0x368   : > { %1085 = vmatpush1.bf16.msra.mxu0 %v2051_v34  ;;  %1126 = vmatpush1.bf16.msra.mxu1 %v2054_v35 }
 0x369   : > { %1086 = vmatprep.subr.bf16.mxu0 %v2059_v36  ;;  %1127 = vmatprep.subr.bf16.mxu1 %v2062_v37 }
 0x36c   : > { %1087 = vmatpush1.bf16.msra.mxu0 %v2067_v38  ;;  %1128 = vmatpush1.bf16.msra.mxu1 %v2070_v39 }
 0x36d   : > { %1217 = vmatprep.subr.bf16.mxu0 %v1949_v8  ;;  %1258 = vmatprep.subr.bf16.mxu1 %v1952_v9  ;;  %v924_v9 = vunpack.c.l.bf16 %v923_v45 }
 0x40f   : > { %v960_v61 = vpop.f32.mrf.mxu0  ;;  %v1001_v43 = vpop.f32.mrf.mxu1 }
 0x411   : > { %v962_v44 = vpop.f32.mrf.mxu0  ;;  %v1003_v46 = vpop.f32.mrf.mxu1 }
 0x412   : > { %v1012_v47 = vcombine.low %v960_v61, %v962_v44  ;;  %v1013_v48 = vcombine.low %v1001_v43, %v1003_v46 }
 0x413   : > { %v964_v50 = vpop.f32.mrf.mxu0  ;;  %v1005_v51 = vpop.f32.mrf.mxu1 }
 0x414   : > { %v1020_v8 = vrot.slane %v1012_v47, %v2119_v49  ;;  %v1027_v53 = vrot.slane %v1013_v48, %v2119_v49 }
 0x415   : > { %v965_v54 = vpop.f32.mrf.mxu0  ;;  %v1006_v55 = vpop.f32.mrf.mxu1 }
 0x416   : > { %v1028_v56 = vcombine.low %v1020_v8, %v1027_v53 }
 0x418   : > { %v1030_v57 = vadd.f32 %v1028_v56, %v924_v9 }
 0x41a   : > { %v1622_v58 = vmul.f32 -1.442695, %v1030_v57  ;;  %v1038_v59 = vrot.slane %v1030_v57, 2  ;;  %v1049_v62 = vrot.slane %v1030_v57, 6  ;;  %v1046_v1 = vrot.slane %v1030_v57, 4 }
 0x41c   : > { %1783 = vpow2.f32 %v1622_v58  ;;  %v1623_v60 = vmul.f32 -1.442695, %v1038_v59  ;;  %v1624_v63 = vmul.f32 -1.442695, %v1049_v62  ;;  %v1214_v58 = vld [vmem:[%s1213_s30] sm:$0xf] }
 0x41e   : > { %1785 = vpow2.f32 %v1623_v60 }
 0x41f   : > { %1787 = vpow2.f32 %v1624_v63 }
 0x429   : > { %v1784_v0 = vpop.eup %1783 }
 0x42a   : > { %v1034_v52 = vadd.f32 1.0, %v1784_v0 }
 0x42b   : > { %v1786_v2 = vpop.eup %1785 }
 0x42c   : > { %1789 = vrcp.f32 %v1034_v52  ;;  %v1043_v3 = vadd.f32 1.0, %v1786_v2  ;;  %v1788_v4 = vpop.eup %1787  ;;  %v1215_v52 = vunpack.c.l.bf16 %v1214_v58 }
 0x42d   : > { %1791 = vtanh.f32 %v1046_v1  ;;  %v1054_v42 = vadd.f32 1.0, %v1788_v4 }
 0x42e   : > { %1793 = vrcp.f32 %v1043_v3 }
 0x42f   : > { %1795 = vrcp.f32 %v1054_v42 }
 0x439   : > { %v1790_v7 = vpop.eup %1789 }
 0x43a   : > { %v1792_v40 = vpop.eup %1791 }
 0x43b   : > { %v1794_v41 = vpop.eup %1793  ;;  %v1058_v43 = vmul.f32 %v1792_v40, %v1790_v7 }
 0x43c   : > { %v1057_v61 = vmul.f32 %v1794_v41, %v2226_v5  ;;  %v1796_v45 = vpop.eup %1795 }
 0x43e   : > { %v2276_v44 = vadd.f32 %v1058_v43, %v1057_v61 }
 0x440   : > { %1797 = vtanh.f32 %v2276_v44 }
 0x44d   : > { %v1798_v46 = vpop.eup %1797 }
 0x44e   : > { %v1061_v47 = vmul.f32 %v1798_v46, %v1796_v45 }
 0x450   : > { %1064 = vst [vmem:[%s1063_s22] sm:$0x3] %v1061_v47  ;;  %v1071_v48 = vpack.c.bf16 %v1061_v47, %v1061_v47 }
 0x452   : > { %1105 = vmatmul.mubr.bf16.vlgmr.msra.gmra.mxu0 %v1071_v48  ;;  %1146 = vmatmul.mubr.bf16.vlgmr.msra.gmra.mxu1 %v1071_v48 }
 0x453   : > { %1218 = vmatpush1.bf16.msra.mxu0 %v1956_v10  ;;  %1259 = vmatpush1.bf16.msra.mxu1 %v1959_v11 }
 0x454   : > { %1219 = vmatprep.subr.bf16.mxu0 %v1963_v12  ;;  %1260 = vmatprep.subr.bf16.mxu1 %v1968_v13  ;;  %v1069_v12 = vld [vmem:[%s1068_s26] sm:$0xf] }
 0x455   : > { %1249 = vmatprep.mubr.bf16.mxu0 %v1871_v6  ;;  %1290 = vmatprep.mubr.bf16.mxu1 %v1871_v6 }
 0x457   : > { %1220 = vmatpush1.bf16.msra.mxu0 %v1971_v14  ;;  %1261 = vmatpush1.bf16.msra.mxu1 %v1975_v15 }
 0x458   : > { %1221 = vmatprep.subr.bf16.mxu0 %v1979_v16  ;;  %1262 = vmatprep.subr.bf16.mxu1 %v1982_v17 }
 0x45b   : > { %1222 = vmatpush1.bf16.msra.mxu0 %v1985_v18  ;;  %1263 = vmatpush1.bf16.msra.mxu1 %v1988_v19  ;;  %v1070_v19 = vunpack.c.l.bf16 %v1069_v12 }
 0x45c   : > { %1223 = vmatprep.subr.bf16.mxu0 %v1993_v20  ;;  %1264 = vmatprep.subr.bf16.mxu1 %v1998_v21 }
 0x45f   : > { %1224 = vmatpush1.bf16.msra.mxu0 %v2001_v22  ;;  %1265 = vmatpush1.bf16.msra.mxu1 %v2006_v23 }
 0x460   : > { %1225 = vmatprep.subr.bf16.mxu0 %v2009_v24  ;;  %1266 = vmatprep.subr.bf16.mxu1 %v2014_v25 }
 0x463   : > { %1226 = vmatpush1.bf16.msra.mxu0 %v2017_v26  ;;  %1267 = vmatpush1.bf16.msra.mxu1 %v2020_v27 }
 0x464   : > { %1227 = vmatprep.subr.bf16.mxu0 %v2025_v28  ;;  %1268 = vmatprep.subr.bf16.mxu1 %v2030_v29 }
 0x467   : > { %1228 = vmatpush1.bf16.msra.mxu0 %v2035_v30  ;;  %1269 = vmatpush1.bf16.msra.mxu1 %v2038_v31 }
 0x468   : > { %1229 = vmatprep.subr.bf16.mxu0 %v2043_v32  ;;  %1270 = vmatprep.subr.bf16.mxu1 %v2046_v33 }
 0x46b   : > { %1230 = vmatpush1.bf16.msra.mxu0 %v2051_v34  ;;  %1271 = vmatpush1.bf16.msra.mxu1 %v2054_v35 }
 0x46c   : > { %1231 = vmatprep.subr.bf16.mxu0 %v2059_v36  ;;  %1272 = vmatprep.subr.bf16.mxu1 %v2062_v37 }
 0x46f   : > { %1232 = vmatpush1.bf16.msra.mxu0 %v2067_v38  ;;  %1273 = vmatpush1.bf16.msra.mxu1 %v2070_v39 }
 0x512   : > { %v1106_v6 = vpop.f32.mrf.mxu0  ;;  %v1147_v10 = vpop.f32.mrf.mxu1 }
 0x514   : > { %v1108_v11 = vpop.f32.mrf.mxu0  ;;  %v1149_v13 = vpop.f32.mrf.mxu1 }
 0x515   : > { %v1158_v14 = vcombine.low %v1106_v6, %v1108_v11  ;;  %v1159_v15 = vcombine.low %v1147_v10, %v1149_v13 }
 0x516   : > { %v1110_v16 = vpop.f32.mrf.mxu0  ;;  %v1151_v17 = vpop.f32.mrf.mxu1 }
 0x517   : > { %v1166_v18 = vrot.slane %v1158_v14, %v2119_v49  ;;  %v1173_v20 = vrot.slane %v1159_v15, %v2119_v49 }
 0x518   : > { %v1111_v21 = vpop.f32.mrf.mxu0  ;;  %v1152_v22 = vpop.f32.mrf.mxu1 }
 0x519   : > { %v1174_v23 = vcombine.low %v1166_v18, %v1173_v20 }
 0x51b   : > { %v1176_v24 = vadd.f32 %v1174_v23, %v1070_v19 }
 0x51d   : > { %v1628_v25 = vmul.f32 -1.442695, %v1176_v24  ;;  %v1184_v26 = vrot.slane %v1176_v24, 2  ;;  %v1195_v28 = vrot.slane %v1176_v24, 6  ;;  %v1192_v31 = vrot.slane %v1176_v24, 4 }
 0x51f   : > { %1799 = vpow2.f32 %v1628_v25  ;;  %v1629_v27 = vmul.f32 -1.442695, %v1184_v26  ;;  %v1630_v29 = vmul.f32 -1.442695, %v1195_v28 }
 0x521   : > { %1801 = vpow2.f32 %v1629_v27 }
 0x522   : > { %1803 = vpow2.f32 %v1630_v29 }
 0x52c   : > { %v1800_v30 = vpop.eup %1799 }
 0x52d   : > { %v1180_v32 = vadd.f32 1.0, %v1800_v30 }
 0x52e   : > { %v1802_v33 = vpop.eup %1801 }
 0x52f   : > { %1805 = vrcp.f32 %v1180_v32  ;;  %v1189_v34 = vadd.f32 1.0, %v1802_v33  ;;  %v1804_v35 = vpop.eup %1803 }
 0x530   : > { %1807 = vtanh.f32 %v1192_v31  ;;  %v1200_v39 = vadd.f32 1.0, %v1804_v35 }
 0x531   : > { %1809 = vrcp.f32 %v1189_v34 }
 0x532   : > { %1811 = vrcp.f32 %v1200_v39 }
 0x53c   : > { %v1806_v36 = vpop.eup %1805 }
 0x53d   : > { %v1808_v37 = vpop.eup %1807 }
 0x53e   : > { %v1810_v38 = vpop.eup %1809  ;;  %v1204_v50 = vmul.f32 %v1808_v37, %v1806_v36 }
 0x53f   : > { %v1203_v5 = vmul.f32 %v1810_v38, %v2276_v44  ;;  %v1812_v8 = vpop.eup %1811 }
 0x541   : > { %v1205_v51 = vadd.f32 %v1204_v50, %v1203_v5 }
 0x543   : > { %1813 = vtanh.f32 %v1205_v51 }
 0x550   : > { %v1814_v9 = vpop.eup %1813 }
 0x551   : > { %v1207_v53 = vmul.f32 %v1814_v9, %v1812_v8 }
 0x553   : > { %1210 = vst [vmem:[%s1209_s28] sm:$0x3] %v1207_v53  ;;  %v1216_v54 = vpack.c.bf16 %v1207_v53, %v1207_v53 }
 0x555   : > { %1250 = vmatmul.mubr.bf16.vlgmr.msra.gmra.mxu0 %v1216_v54  ;;  %1291 = vmatmul.mubr.bf16.vlgmr.msra.gmra.mxu1 %v1216_v54 }
 0x615   : > { %v1251_v55 = vpop.f32.mrf.mxu0  ;;  %v1292_v56 = vpop.f32.mrf.mxu1 }
 0x617   : > { %v1253_v57 = vpop.f32.mrf.mxu0  ;;  %v1294_v59 = vpop.f32.mrf.mxu1 }
 0x618   : > { %v1303_v60 = vcombine.low %v1251_v55, %v1253_v57  ;;  %v1304_v62 = vcombine.low %v1292_v56, %v1294_v59 }
 0x619   : > { %v1255_v63 = vpop.f32.mrf.mxu0  ;;  %v1296_v0 = vpop.f32.mrf.mxu1 }
 0x61a   : > { %v1311_v1 = vrot.slane %v1303_v60, %v2119_v49  ;;  %v1318_v2 = vrot.slane %v1304_v62, %v2119_v49 }
 0x61b   : > { %v1256_v3 = vpop.f32.mrf.mxu0  ;;  %v1297_v4 = vpop.f32.mrf.mxu1 }
 0x61c   : > { %v1319_v7 = vcombine.low %v1311_v1, %v1318_v2 }
 0x61e   : > { %v1321_v40 = vadd.f32 %v1319_v7, %v1215_v52 }
 0x620   : > { %v1633_v41 = vmul.f32 -1.442695, %v1321_v40  ;;  %v1329_v42 = vrot.slane %v1321_v40, 2  ;;  %v1340_v43 = vrot.slane %v1321_v40, 6  ;;  %v1337_v46 = vrot.slane %v1321_v40, 4 }
 0x622   : > { %1815 = vpow2.f32 %v1633_v41  ;;  %v1634_v61 = vmul.f32 -1.442695, %v1329_v42  ;;  %v1635_v44 = vmul.f32 -1.442695, %v1340_v43 }
 0x624   : > { %1817 = vpow2.f32 %v1634_v61 }
 0x625   : > { %1819 = vpow2.f32 %v1635_v44 }
 0x62f   : > { %v1816_v45 = vpop.eup %1815 }
 0x630   : > { %v1325_v47 = vadd.f32 1.0, %v1816_v45 }
 0x631   : > { %v1818_v48 = vpop.eup %1817 }
 0x632   : > { %1821 = vrcp.f32 %v1325_v47  ;;  %v1334_v6 = vadd.f32 1.0, %v1818_v48  ;;  %v1820_v49 = vpop.eup %1819 }
 0x633   : > { %1823 = vtanh.f32 %v1337_v46  ;;  %v1345_v13 = vadd.f32 1.0, %v1820_v49 }
 0x634   : > { %1825 = vrcp.f32 %v1334_v6 }
 0x635   : > { %1827 = vrcp.f32 %v1345_v13 }
 0x63f   : > { %v1822_v10 = vpop.eup %1821 }
 0x640   : > { %v1824_v11 = vpop.eup %1823 }
 0x641   : > { %v1826_v12 = vpop.eup %1825  ;;  %v1349_v15 = vmul.f32 %v1824_v11, %v1822_v10 }
 0x642   : > { %v1348_v14 = vmul.f32 %v1826_v12, %v1205_v51  ;;  %v1828_v17 = vpop.eup %1827 }
 0x644   : > { %v1350_v16 = vadd.f32 %v1349_v15, %v1348_v14 }
 0x646   : > { %1829 = vtanh.f32 %v1350_v16  ;;  %1357 = vst [vmem:[#allocation3] sm:$0x3] %v1350_v16 }
 0x652   : > { %1364 = sbr.rel (!%p1924_p6) target bundleno = 1634 (0x662), region = 77 }
 0x653   : > { %v1830_v18 = vpop.eup %1829 }
 0x654   : > { %v1352_v19 = vmul.f32 %v1830_v18, %v1828_v17 }
 0x656   : > { %1355 = vst [vmem:[%s1354_s3] sm:$0x3] %v1352_v19  ;;  %1356 = vst [vmem:[#allocation2] sm:$0x3] %v1352_v19 }
 0x65d   : > { %v1391_v20 = vld [vmem:[%s2129_s17] sm:$0x3]  ;;  %v1393_v21 = vld [vmem:[%s2129_s17 + $0x2] sm:$0x3]  ;;  %v1395_v22 = vld [vmem:[%s2129_s17 + $0x4] sm:$0x3] }
 0x65e   : > { %1392 = vst [vmem:[%s1374_s9] sm:$0x3] %v1391_v20  ;;  %1394 = vst [vmem:[%s1374_s9 + $0x4] sm:$0x3] %v1393_v21  ;;  %v1397_v23 = vld [vmem:[%s2129_s17 + $0x6] sm:$0x3] }
 0x65f   : > { %1396 = vst [vmem:[%s1374_s9 + $0x8] sm:$0x3] %v1395_v22  ;;  %v1399_v24 = vld [vmem:[%s2129_s17 + $0x8] sm:$0x3]  ;;  %v1401_v25 = vld [vmem:[%s2129_s17 + $0xa] sm:$0x3] }
 0x660   : > { %1398 = vst [vmem:[%s1374_s9 + $0xc] sm:$0x3] %v1397_v23  ;;  %1400 = vst [vmem:[%s1374_s9 + $0x10] sm:$0x3] %v1399_v24 }
 0x661   : > { %1402 = vst [vmem:[%s1374_s9 + $0x14] sm:$0x3] %v1401_v25 }
 0x662 PF: > { %s12_s13 = sadd.s32 1, %s1869_s13   ;;  %s2362_s9 = smov %s1857_s10 }
 0x663   : > { %p9_p12 = scmp.ge.s32.totalorder %s12_s13, 4   ;;  %s2363_s10 = smov %s1929_s19 }
 0x664   : > { %s2364_s11 = smov %s1865_s12  ;;  %s2365_s12 = smov %s2367_s14 }
 0x665   :  { %11 = sbr.rel (!%p9_p12) target bundleno = 3 (0x3), region = 164 }

</bundles_post_ra>
